<compile_context>
chip_gen: v5e
topology: v5e:2x2
jax: 0.10.0
libtpu: 0.0.40
codegen_flags: <defaults>
</compile_context>

<pallas_src>
import functools

import jax
import jax.numpy as jnp
from jax.experimental import pallas as pl
from jax.experimental.pallas import tpu as pltpu

IN_DIM = 3            # in_dim
C_PAD = 8             # input channels padded to a sublane-tile multiple
DIM = 16              # dim
HID = DIM * 4         # Mlp hidden
NBLK = 6              # 3 mul_blocks + 3 add_blocks (type='ccc')
BLOCKS_PER_BRANCH = 3
PMAX = 2              # largest spatial pad needed (5x5 depthwise)
LN_EPS = 1e-6
GAMMA_INIT = 1e-2     # CBlock_ln layer-scale init
NEG_SLOPE = 0.2       # LeakyReLU slope

# column indices of the packed per-block (DIM,)-vector array `vecs`
(V_PE_B, V_N1_G, V_N1_B, V_C1_B, V_ATTN_B, V_C2_B,
 V_N2_G, V_N2_B, V_FC2_B, V_G1, V_G2) = range(11)
NVEC = 11


def _gelu(x):
    # tanh-approximate GELU (perf review): tanh runs on the otherwise-idle EUP
    # slot.  ~1e-3 relative deviation vs PyTorch's exact-erf nn.GELU.
    # TODO(synk): switch to exact erf if bit-level parity with PyTorch is needed.
    c = 0.7978845608028654  # sqrt(2/pi)
    return 0.5 * x * (1.0 + jnp.tanh(c * (x + 0.044715 * x * x * x)))


def _roll_lanes(x, off, npad):
    """shifted[:, p] = x[:, (p + off) % npad]  (== jnp.roll(x, -off, axis=1))."""
    if off % npad == 0:
        return x
    return pltpu.roll(x, shift=(-off) % npad, axis=1)


def local_pred_s_kernel(
    img_ref,        # (1, C_PAD, Npad)  zero-padded, flattened NCHW image
    mask_ref,       # (1, Npad)         1.0 on interior pixels, 0.0 on halo/tail
    stem_ref,       # (DIM, 9*C_PAD+1)  [w | b], col = (ky*3+kx)*C_PAD + cin
    pe_w_ref,       # (1, DIM, 9)       depthwise 3x3 for this block
    attn_w_ref,     # (1, DIM, 25)      depthwise 5x5 for this block
    c1_w_ref,       # (1, DIM, DIM)     1x1 conv (Cout, Cin)
    c2_w_ref,       # (1, DIM, DIM)
    fc1_w_ref,      # (1, HID, DIM)
    fc1_b_ref,      # (1, HID, 1)
    fc2_w_ref,      # (1, DIM, HID)
    vecs_ref,       # (1, DIM, NVEC)    packed per-block 16-vectors (V_* order)
    head_ref,       # (1, 3, 9*DIM+1)   [w | b] for this branch's end conv
    out_ref,        # (1, 1, 3, Npad)   packed mul/add output
    img1_sc,        # (DIM, Npad) f32 scratch: stem output (residual source)
    x_sc,           # (DIM, Npad) f32 scratch: carried activation
    *, Wp, Npad,
):
    br = pl.program_id(1)                                    # 0 = mul, 1 = add
    blk = pl.program_id(2)
    mask = mask_ref[...]                                     # (1, Npad)
    inv_dim_row = jnp.full((1, DIM), 1.0 / DIM, jnp.float32)  # hoisted constant

    def ln_cf(x, g, b):
        # channels_first LayerNorm over the 16-channel sublane axis.
        # Two independent M=1 MXU reductions; var = E[x^2] - E[x]^2.
        u = jnp.dot(inv_dim_row, x, preferred_element_type=jnp.float32)       # (1, Npad)
        q = jnp.dot(inv_dim_row, x * x, preferred_element_type=jnp.float32)   # (1, Npad)
        v = jnp.maximum(q - u * u, 0.0)
        return (x - u) * jax.lax.rsqrt(v + LN_EPS) * g + b

    def dwconv(x, w, b, k, p):
        # Depthwise k x k conv (groups=DIM), zero padding p, flat layout.
        # Mask BEFORE any roll (see invariant at top of file).
        xm = x * mask
        # shared-dx decomposition: roll(xm, dy*Wp+dx) = roll(roll(xm, dx), dy*Wp)
        cols = [_roll_lanes(xm, dx, Npad) for dx in range(-p, p + 1)]  # 2p real rolls
        acc = None
        for iy in range(k):                                   # dy = iy - p
            part = None
            for ix in range(k):
                t = iy * k + ix
                term = w[:, t:t + 1] * cols[ix]
                part = term if part is None else part + term
            part = _roll_lanes(part, (iy - p) * Wp, Npad)     # 2p more real rolls
            acc = part if acc is None else acc + part
        return acc + b

    def conv3x3(x, w, b, cin):
        # Full 3x3 conv cin -> Cout via accumulated per-tap MXU dots (no im2col
        # slab).  w: (Cout, 9*cin) with col = (ky*3+kx)*cin + ci ; b: (Cout, 1).
        xm = x * mask
        cols = [_roll_lanes(xm, dx, Npad) for dx in (-1, 0, 1)]
        acc = None
        for iy, dy in enumerate((-1, 0, 1)):
            part = None
            for ix in range(3):
                t = iy * 3 + ix
                wk = w[:, t * cin:(t + 1) * cin]              # (Cout, cin)
                term = jnp.dot(wk, cols[ix], preferred_element_type=jnp.float32)
                part = term if part is None else part + term
            part = _roll_lanes(part, dy * Wp, Npad)           # roll small (Cout, Npad) partial
            acc = part if acc is None else acc + part
        return acc + b

    # ---- stem: conv1 (3x3, 3->16) + LeakyReLU(0.2), recomputed per branch ----
    @pl.when(blk == 0)
    def _():
        acc = conv3x3(img_ref[0], stem_ref[:, :9 * C_PAD],
                      stem_ref[:, 9 * C_PAD:9 * C_PAD + 1], C_PAD)
        img1 = jnp.where(acc >= 0, acc, NEG_SLOPE * acc)      # (DIM, Npad)
        img1_sc[...] = img1
        x_sc[...] = img1

    # ---- one CBlock_ln per grid step (DropPath is identity at inference) ----
    vecs = vecs_ref[0]                                        # (DIM, NVEC)
    col = lambda j: vecs[:, j:j + 1]                          # (DIM, 1)
    x = x_sc[...]
    # x = x + pos_embed(x)                 (depthwise 3x3)
    x = x + dwconv(x, pe_w_ref[0], col(V_PE_B), 3, 1)
    # x = x + gamma_1 * conv2(attn(conv1(norm1(x))))
    y = ln_cf(x, col(V_N1_G), col(V_N1_B))
    y = jnp.dot(c1_w_ref[0], y, preferred_element_type=jnp.float32) + col(V_C1_B)
    y = dwconv(y, attn_w_ref[0], col(V_ATTN_B), 5, 2)
    y = jnp.dot(c2_w_ref[0], y, preferred_element_type=jnp.float32) + col(V_C2_B)
    x = x + col(V_G1) * y
    # x = x + gamma_2 * mlp(norm2(x))
    z = ln_cf(x, col(V_N2_G), col(V_N2_B))
    z = jnp.dot(fc1_w_ref[0], z, preferred_element_type=jnp.float32) + fc1_b_ref[0]
    z = _gelu(z)
    z = jnp.dot(fc2_w_ref[0], z, preferred_element_type=jnp.float32) + col(V_FC2_B)
    x = x + col(V_G2) * z
    x_sc[...] = x

    # ---- branch head after the last block: residual + conv3x3 -> 3 + act ----
    @pl.when(blk == pl.num_programs(2) - 1)
    def _():
        m = x + img1_sc[...]
        hw = head_ref[0]                                      # (3, 9*DIM+1)
        o = conv3x3(m, hw[:, :9 * DIM], hw[:, 9 * DIM:9 * DIM + 1], DIM)

        @pl.when(br == 0)
        def _():
            out_ref[0, 0] = jnp.maximum(o, 0.0)               # mul_end: ReLU

        @pl.when(br == 1)
        def _():
            out_ref[0, 0] = jnp.tanh(o)                       # add_end: Tanh


def init_params(key):
    """Deterministic synthetic params in PyTorch-native (squeezed) shapes,
    matching Local_pred_S._init_weights statistics: conv weights ~ N(0,
    sqrt(2/fan_out)), conv/LN biases = 0, LN weight = 1, gammas = 1e-2."""
    ks = jax.random.split(key, 9)
    normal = lambda k, shape, std: (std * jax.random.normal(k, shape)).astype(jnp.float32)
    zeros = lambda shape: jnp.zeros(shape, jnp.float32)
    ones = lambda shape: jnp.ones(shape, jnp.float32)

    p = {}
    p["conv1_w"] = normal(ks[0], (DIM, IN_DIM, 3, 3), (2.0 / (9 * DIM)) ** 0.5)
    p["conv1_b"] = zeros((DIM,))
    p["pe_w"] = normal(ks[1], (NBLK, DIM, 3, 3), (2.0 / 9) ** 0.5)      # dw 3x3
    p["pe_b"] = zeros((NBLK, DIM))
    p["n1_g"] = ones((NBLK, DIM)); p["n1_b"] = zeros((NBLK, DIM))
    p["c1_w"] = normal(ks[2], (NBLK, DIM, DIM), (2.0 / DIM) ** 0.5)     # 1x1
    p["c1_b"] = zeros((NBLK, DIM))
    p["attn_w"] = normal(ks[3], (NBLK, DIM, 5, 5), (2.0 / 25) ** 0.5)   # dw 5x5
    p["attn_b"] = zeros((NBLK, DIM))
    p["c2_w"] = normal(ks[4], (NBLK, DIM, DIM), (2.0 / DIM) ** 0.5)
    p["c2_b"] = zeros((NBLK, DIM))
    p["n2_g"] = ones((NBLK, DIM)); p["n2_b"] = zeros((NBLK, DIM))
    p["fc1_w"] = normal(ks[5], (NBLK, HID, DIM), (2.0 / HID) ** 0.5)
    p["fc1_b"] = zeros((NBLK, HID))
    p["fc2_w"] = normal(ks[6], (NBLK, DIM, HID), (2.0 / DIM) ** 0.5)
    p["fc2_b"] = zeros((NBLK, DIM))
    p["g1"] = jnp.full((NBLK, DIM), GAMMA_INIT, jnp.float32)
    p["g2"] = jnp.full((NBLK, DIM), GAMMA_INIT, jnp.float32)
    p["mule_w"] = normal(ks[7], (3, DIM, 3, 3), (2.0 / 27) ** 0.5)
    p["mule_b"] = zeros((3,))
    p["adde_w"] = normal(ks[8], (3, DIM, 3, 3), (2.0 / 27) ** 0.5)
    p["adde_b"] = zeros((3,))
    return p


KPARAM_ORDER = ["stem", "pe_w", "attn_w", "c1_w", "c2_w",
                "fc1_w", "fc1_b", "fc2_w", "vecs", "head"]
# params whose leading axis is the block index (br*3 + blk)
PER_BLOCK = {"pe_w", "attn_w", "c1_w", "c2_w", "fc1_w", "fc1_b", "fc2_w", "vecs"}


def pack_params(p):
    """Pack PyTorch-shaped params into the kernel-layout arrays.
    NOTE (real PyTorch weights): Conv2d weight[co, ci, ky, kx] maps to
    column (ky*K + kx)*Cin + ci (Cin zero-padded to C_PAD for the stem);
    depthwise weights are squeezed over their singleton Cin axis."""
    kp = {}
    stem_w = jnp.transpose(p["conv1_w"], (0, 2, 3, 1))                 # (DIM,3,3,IN_DIM)
    stem_w = jnp.pad(stem_w, ((0, 0), (0, 0), (0, 0), (0, C_PAD - IN_DIM)))
    stem_w = stem_w.reshape(DIM, 9 * C_PAD)
    kp["stem"] = jnp.concatenate([stem_w, p["conv1_b"][:, None]], axis=1)   # (16, 73)
    kp["pe_w"] = p["pe_w"].reshape(NBLK, DIM, 9)
    kp["attn_w"] = p["attn_w"].reshape(NBLK, DIM, 25)
    kp["c1_w"] = p["c1_w"]
    kp["c2_w"] = p["c2_w"]
    kp["fc1_w"] = p["fc1_w"]
    kp["fc1_b"] = p["fc1_b"][:, :, None]                                    # (6, 64, 1)
    kp["fc2_w"] = p["fc2_w"]
    kp["vecs"] = jnp.stack(
        [p["pe_b"], p["n1_g"], p["n1_b"], p["c1_b"], p["attn_b"], p["c2_b"],
         p["n2_g"], p["n2_b"], p["fc2_b"], p["g1"], p["g2"]], axis=-1)      # (6, 16, 11)

    def head_pack(w, b):
        hw = jnp.transpose(w, (0, 2, 3, 1)).reshape(3, 9 * DIM)
        return jnp.concatenate([hw, b[:, None]], axis=1)                    # (3, 145)
    kp["head"] = jnp.stack([head_pack(p["mule_w"], p["mule_b"]),
                            head_pack(p["adde_w"], p["adde_b"])], axis=0)   # (2, 3, 145)
    return kp


def local_pred_s(img_nchw, params):
    """img_nchw: (B, 3, H, W) float32.  Returns (mul, add), each (B, 3, H, W)."""
    img_nchw = img_nchw.astype(jnp.float32)
    B, C, H, W = img_nchw.shape
    assert C == IN_DIM
    Hp, Wp = H + 2 * PMAX, W + 2 * PMAX
    n_flat = Hp * Wp
    Npad = pl.cdiv(n_flat, 128) * 128

    # zero-pad spatially by PMAX, pad channels 3->8, flatten HxW into lanes,
    # pad the lane axis to a multiple of 128 (no transposes: stays NCHW-major).
    xpad = jnp.pad(img_nchw, ((0, 0), (0, C_PAD - IN_DIM), (PMAX, PMAX), (PMAX, PMAX)))
    xflat = xpad.reshape(B, C_PAD, n_flat)
    xflat = jnp.pad(xflat, ((0, 0), (0, 0), (0, Npad - n_flat)))

    # interior (non-halo, non-tail) mask, computed once outside the kernel.
    row = jnp.arange(Hp)[:, None]
    colx = jnp.arange(Wp)[None, :]
    m2d = ((row >= PMAX) & (row < PMAX + H) &
           (colx >= PMAX) & (colx < PMAX + W)).astype(jnp.float32)
    mask = jnp.pad(m2d.reshape(1, n_flat), ((0, 0), (0, Npad - n_flat)))

    kp = pack_params(params)

    def full_spec(q):
        return pl.BlockSpec(q.shape, lambda b, br, blk, _n=q.ndim: (0,) * _n)

    def per_block_spec(q):
        # leading axis selects the CBlock: index = branch*3 + block
        return pl.BlockSpec((1,) + q.shape[1:],
                            lambda b, br, blk, _n=q.ndim - 1:
                            (br * BLOCKS_PER_BRANCH + blk,) + (0,) * _n)

    param_specs = []
    for name in KPARAM_ORDER:
        q = kp[name]
        if name in PER_BLOCK:
            param_specs.append(per_block_spec(q))
        elif name == "head":
            param_specs.append(
                pl.BlockSpec((1,) + q.shape[1:], lambda b, br, blk: (br, 0, 0)))
        else:  # stem
            param_specs.append(full_spec(q))

    kernel = functools.partial(local_pred_s_kernel, Wp=Wp, Npad=Npad)
    out_shape = jax.ShapeDtypeStruct((B, 2, 3, Npad), jnp.float32)

    out = pl.pallas_call(
        kernel,
        out_shape=out_shape,
        grid_spec=pltpu.PrefetchScalarGridSpec(
            num_scalar_prefetch=0,
            grid=(B, 2, BLOCKS_PER_BRANCH),
            in_specs=[pl.BlockSpec((1, C_PAD, Npad), lambda b, br, blk: (b, 0, 0)),
                      pl.BlockSpec((1, Npad), lambda b, br, blk: (0, 0))] + param_specs,
            out_specs=pl.BlockSpec((1, 1, 3, Npad), lambda b, br, blk: (b, br, 0, 0)),
            scratch_shapes=[pltpu.VMEM((DIM, Npad), jnp.float32),   # img1 (stem residual)
                            pltpu.VMEM((DIM, Npad), jnp.float32)],  # carried activation
        ),
        compiler_params=pltpu.CompilerParams(
            dimension_semantics=("parallel", "parallel", "arbitrary")),
    )(xflat, mask, *[kp[name] for name in KPARAM_ORDER])

    def crop(o):
        return o[:, :, :n_flat].reshape(B, 3, Hp, Wp)[:, :, PMAX:PMAX + H, PMAX:PMAX + W]

    return crop(out[:, 0]), crop(out[:, 1])


if __name__ == "__main__":
    key = jax.random.PRNGKey(0)
    kparam, kimg = jax.random.split(key)
    params = init_params(kparam)
    img = jax.random.uniform(kimg, (2, 3, 16, 16), dtype=jnp.float32)

    mul, add = jax.jit(lambda x: local_pred_s(x, params))(img)
    jax.block_until_ready((mul, add))

    assert mul.shape == (2, 3, 16, 16) and add.shape == (2, 3, 16, 16)
    assert bool(jnp.all(jnp.isfinite(mul))) and bool(jnp.all(jnp.isfinite(add)))
    assert bool(jnp.all(mul >= 0.0))           # ReLU head
    assert bool(jnp.all(jnp.abs(add) <= 1.0))  # Tanh head
    print("KERNEL_OK")
</pallas_src>

<mosaic_0001>
module attributes {stable_mosaic.version = 11 : i64} {
  func.func @local_pred_s_kernel(%arg0: i32, %arg1: i32, %arg2: i32, %arg3: memref<1x8x512xf32, #tpu.memory_space<vmem>>, %arg4: memref<1x512xf32, #tpu.memory_space<vmem>>, %arg5: memref<16x73xf32, #tpu.memory_space<vmem>>, %arg6: memref<1x16x9xf32, #tpu.memory_space<vmem>>, %arg7: memref<1x16x25xf32, #tpu.memory_space<vmem>>, %arg8: memref<1x16x16xf32, #tpu.memory_space<vmem>>, %arg9: memref<1x16x16xf32, #tpu.memory_space<vmem>>, %arg10: memref<1x64x16xf32, #tpu.memory_space<vmem>>, %arg11: memref<1x64x1xf32, #tpu.memory_space<vmem>>, %arg12: memref<1x16x64xf32, #tpu.memory_space<vmem>>, %arg13: memref<1x16x11xf32, #tpu.memory_space<vmem>>, %arg14: memref<1x3x145xf32, #tpu.memory_space<vmem>>, %arg15: memref<1x1x3x512xf32, #tpu.memory_space<vmem>>, %arg16: memref<16x512xf32, #tpu.memory_space<vmem>>, %arg17: memref<16x512xf32, #tpu.memory_space<vmem>>) attributes {dimension_semantics = [#tpu.dimension_semantics<parallel>, #tpu.dimension_semantics<parallel>, #tpu.dimension_semantics<arbitrary>], iteration_bounds = array<i64: 2, 2, 3>, scalar_prefetch = 0 : i64, scratch_operands = 2 : i64, tpu.core_type = #tpu.core_type<tc>, window_params = [{transform_indices = @transform_0, window_bounds = array<i64: 1, 8, 512>}, {pipeline_mode = #tpu.pipeline_mode<synchronous>, transform_indices = @transform_1, window_bounds = array<i64: 1, 512>}, {pipeline_mode = #tpu.pipeline_mode<synchronous>, transform_indices = @transform_2, window_bounds = array<i64: 16, 73>}, {transform_indices = @transform_3, window_bounds = array<i64: 1, 16, 9>}, {transform_indices = @transform_4, window_bounds = array<i64: 1, 16, 25>}, {transform_indices = @transform_5, window_bounds = array<i64: 1, 16, 16>}, {transform_indices = @transform_6, window_bounds = array<i64: 1, 16, 16>}, {transform_indices = @transform_7, window_bounds = array<i64: 1, 64, 16>}, {transform_indices = @transform_8, window_bounds = array<i64: 1, 64, 1>}, {transform_indices = @transform_9, window_bounds = array<i64: 1, 16, 64>}, {transform_indices = @transform_10, window_bounds = array<i64: 1, 16, 11>}, {transform_indices = @transform_11, window_bounds = array<i64: 1, 3, 145>}, {transform_indices = @transform_12, window_bounds = array<i64: 1, 1, 3, 512>}]} {
    %c0 = arith.constant 0 : index
    %c0_0 = arith.constant 0 : index
    %0 = vector.load %arg4[%c0, %c0_0] : memref<1x512xf32, #tpu.memory_space<vmem>>, vector<1x512xf32>
    %cst = arith.constant 6.250000e-02 : f32
    %1 = vector.broadcast %cst : f32 to vector<1x16xf32>
    %c0_i32 = arith.constant 0 : i32
    %2 = arith.cmpi eq, %arg2, %c0_i32 : i32
    %3 = arith.extui %2 : i1 to i32
    %c0_i32_1 = arith.constant 0 : i32
    %4 = arith.cmpi ne, %3, %c0_i32_1 : i32
    scf.if %4 {
      %c0_52 = arith.constant 0 : index
      %c0_53 = arith.constant 0 : index
      %c0_54 = arith.constant 0 : index
      %259 = vector.load %arg3[%c0_52, %c0_53, %c0_54] : memref<1x8x512xf32, #tpu.memory_space<vmem>>, vector<1x8x512xf32>
      %260 = vector.shape_cast %259 : vector<1x8x512xf32> to vector<8x512xf32>
      %c0_55 = arith.constant 0 : index
      %c0_56 = arith.constant 0 : index
      %261 = vector.load %arg5[%c0_55, %c0_56] : memref<16x73xf32, #tpu.memory_space<vmem>>, vector<16x72xf32>
      %c0_57 = arith.constant 0 : index
      %c72 = arith.constant 72 : index
      %262 = vector.load %arg5[%c0_57, %c72] : memref<16x73xf32, #tpu.memory_space<vmem>>, vector<16x1xf32>
      %263 = vector.broadcast %0 : vector<1x512xf32> to vector<8x512xf32>
      %264 = arith.mulf %260, %263 : vector<8x512xf32>
      %c1_i32_58 = arith.constant 1 : i32
      %265 = tpu.dynamic_rotate %264 by %c1_i32_58 dim 1 : vector<8x512xf32>, i32 -> vector<8x512xf32>
      %c511_i32_59 = arith.constant 511 : i32
      %266 = tpu.dynamic_rotate %264 by %c511_i32_59 dim 1 : vector<8x512xf32>, i32 -> vector<8x512xf32>
      %267 = vector.extract_strided_slice %261 {offsets = [0, 0], sizes = [16, 8], strides = [1, 1]} : vector<16x72xf32> to vector<16x8xf32>
      %cst_60 = arith.constant dense<0.000000e+00> : vector<16x512xf32>
      %268 = tpu.matmul %267, %265, %cst_60 {dimension_numbers = #tpu.dot_dimension_numbers<[1], [0], [0], [1], [0, 0, 1, 1], [], []>} : vector<16x8xf32>, vector<8x512xf32>, vector<16x512xf32> -> vector<16x512xf32>
      %269 = vector.extract_strided_slice %261 {offsets = [0, 8], sizes = [16, 8], strides = [1, 1]} : vector<16x72xf32> to vector<16x8xf32>
      %cst_61 = arith.constant dense<0.000000e+00> : vector<16x512xf32>
      %270 = tpu.matmul %269, %264, %cst_61 {dimension_numbers = #tpu.dot_dimension_numbers<[1], [0], [0], [1], [0, 0, 1, 1], [], []>} : vector<16x8xf32>, vector<8x512xf32>, vector<16x512xf32> -> vector<16x512xf32>
      %271 = arith.addf %268, %270 : vector<16x512xf32>
      %272 = vector.extract_strided_slice %261 {offsets = [0, 16], sizes = [16, 8], strides = [1, 1]} : vector<16x72xf32> to vector<16x8xf32>
      %cst_62 = arith.constant dense<0.000000e+00> : vector<16x512xf32>
      %273 = tpu.matmul %272, %266, %cst_62 {dimension_numbers = #tpu.dot_dimension_numbers<[1], [0], [0], [1], [0, 0, 1, 1], [], []>} : vector<16x8xf32>, vector<8x512xf32>, vector<16x512xf32> -> vector<16x512xf32>
      %274 = arith.addf %271, %273 : vector<16x512xf32>
      %c20_i32_63 = arith.constant 20 : i32
      %275 = tpu.dynamic_rotate %274 by %c20_i32_63 dim 1 : vector<16x512xf32>, i32 -> vector<16x512xf32>
      %276 = vector.extract_strided_slice %261 {offsets = [0, 24], sizes = [16, 8], strides = [1, 1]} : vector<16x72xf32> to vector<16x8xf32>
      %cst_64 = arith.constant dense<0.000000e+00> : vector<16x512xf32>
      %277 = tpu.matmul %276, %265, %cst_64 {dimension_numbers = #tpu.dot_dimension_numbers<[1], [0], [0], [1], [0, 0, 1, 1], [], []>} : vector<16x8xf32>, vector<8x512xf32>, vector<16x512xf32> -> vector<16x512xf32>
      %278 = vector.extract_strided_slice %261 {offsets = [0, 32], sizes = [16, 8], strides = [1, 1]} : vector<16x72xf32> to vector<16x8xf32>
      %cst_65 = arith.constant dense<0.000000e+00> : vector<16x512xf32>
      %279 = tpu.matmul %278, %264, %cst_65 {dimension_numbers = #tpu.dot_dimension_numbers<[1], [0], [0], [1], [0, 0, 1, 1], [], []>} : vector<16x8xf32>, vector<8x512xf32>, vector<16x512xf32> -> vector<16x512xf32>
      %280 = arith.addf %277, %279 : vector<16x512xf32>
      %281 = vector.extract_strided_slice %261 {offsets = [0, 40], sizes = [16, 8], strides = [1, 1]} : vector<16x72xf32> to vector<16x8xf32>
      %cst_66 = arith.constant dense<0.000000e+00> : vector<16x512xf32>
      %282 = tpu.matmul %281, %266, %cst_66 {dimension_numbers = #tpu.dot_dimension_numbers<[1], [0], [0], [1], [0, 0, 1, 1], [], []>} : vector<16x8xf32>, vector<8x512xf32>, vector<16x512xf32> -> vector<16x512xf32>
      %283 = arith.addf %280, %282 : vector<16x512xf32>
      %284 = arith.addf %275, %283 : vector<16x512xf32>
      %285 = vector.extract_strided_slice %261 {offsets = [0, 48], sizes = [16, 8], strides = [1, 1]} : vector<16x72xf32> to vector<16x8xf32>
      %cst_67 = arith.constant dense<0.000000e+00> : vector<16x512xf32>
      %286 = tpu.matmul %285, %265, %cst_67 {dimension_numbers = #tpu.dot_dimension_numbers<[1], [0], [0], [1], [0, 0, 1, 1], [], []>} : vector<16x8xf32>, vector<8x512xf32>, vector<16x512xf32> -> vector<16x512xf32>
      %287 = vector.extract_strided_slice %261 {offsets = [0, 56], sizes = [16, 8], strides = [1, 1]} : vector<16x72xf32> to vector<16x8xf32>
      %cst_68 = arith.constant dense<0.000000e+00> : vector<16x512xf32>
      %288 = tpu.matmul %287, %264, %cst_68 {dimension_numbers = #tpu.dot_dimension_numbers<[1], [0], [0], [1], [0, 0, 1, 1], [], []>} : vector<16x8xf32>, vector<8x512xf32>, vector<16x512xf32> -> vector<16x512xf32>
      %289 = arith.addf %286, %288 : vector<16x512xf32>
      %290 = vector.extract_strided_slice %261 {offsets = [0, 64], sizes = [16, 8], strides = [1, 1]} : vector<16x72xf32> to vector<16x8xf32>
      %cst_69 = arith.constant dense<0.000000e+00> : vector<16x512xf32>
      %291 = tpu.matmul %290, %266, %cst_69 {dimension_numbers = #tpu.dot_dimension_numbers<[1], [0], [0], [1], [0, 0, 1, 1], [], []>} : vector<16x8xf32>, vector<8x512xf32>, vector<16x512xf32> -> vector<16x512xf32>
      %292 = arith.addf %289, %291 : vector<16x512xf32>
      %c492_i32_70 = arith.constant 492 : i32
      %293 = tpu.dynamic_rotate %292 by %c492_i32_70 dim 1 : vector<16x512xf32>, i32 -> vector<16x512xf32>
      %294 = arith.addf %284, %293 : vector<16x512xf32>
      %295 = vector.broadcast %262 : vector<16x1xf32> to vector<16x512xf32>
      %296 = arith.addf %294, %295 : vector<16x512xf32>
      %cst_71 = arith.constant 0.000000e+00 : f32
      %297 = vector.broadcast %cst_71 : f32 to vector<16x512xf32>
      %298 = arith.cmpf oge, %296, %297 : vector<16x512xf32>
      %cst_72 = arith.constant 2.000000e-01 : f32
      %299 = vector.broadcast %cst_72 : f32 to vector<16x512xf32>
      %300 = arith.mulf %299, %296 : vector<16x512xf32>
      %301 = arith.select %298, %296, %300 : vector<16x512xi1>, vector<16x512xf32>
      %c0_73 = arith.constant 0 : index
      %c0_74 = arith.constant 0 : index
      %302 = vector.load %arg16[%c0_73, %c0_74] : memref<16x512xf32, #tpu.memory_space<vmem>>, vector<16x512xf32>
      tpu.vector_store %arg16[%c0_73, %c0_74], %301 {strides = array<i32>} : memref<16x512xf32, #tpu.memory_space<vmem>>, vector<16x512xf32>,
      %c0_75 = arith.constant 0 : index
      %c0_76 = arith.constant 0 : index
      %303 = vector.load %arg17[%c0_75, %c0_76] : memref<16x512xf32, #tpu.memory_space<vmem>>, vector<16x512xf32>
      tpu.vector_store %arg17[%c0_75, %c0_76], %301 {strides = array<i32>} : memref<16x512xf32, #tpu.memory_space<vmem>>, vector<16x512xf32>,
    } else {
    }
    %c0_2 = arith.constant 0 : index
    %c0_3 = arith.constant 0 : index
    %c0_4 = arith.constant 0 : index
    %5 = vector.load %arg13[%c0_2, %c0_3, %c0_4] : memref<1x16x11xf32, #tpu.memory_space<vmem>>, vector<1x16x11xf32>
    %6 = vector.shape_cast %5 : vector<1x16x11xf32> to vector<16x11xf32>
    %c0_5 = arith.constant 0 : index
    %c0_6 = arith.constant 0 : index
    %7 = vector.load %arg17[%c0_5, %c0_6] : memref<16x512xf32, #tpu.memory_space<vmem>>, vector<16x512xf32>
    %c0_7 = arith.constant 0 : index
    %c0_8 = arith.constant 0 : index
    %c0_9 = arith.constant 0 : index
    %8 = vector.load %arg6[%c0_7, %c0_8, %c0_9] : memref<1x16x9xf32, #tpu.memory_space<vmem>>, vector<1x16x9xf32>
    %9 = vector.shape_cast %8 : vector<1x16x9xf32> to vector<16x9xf32>
    %10 = vector.extract_strided_slice %6 {offsets = [0, 0], sizes = [16, 1], strides = [1, 1]} : vector<16x11xf32> to vector<16x1xf32>
    %11 = vector.broadcast %0 : vector<1x512xf32> to vector<16x512xf32>
    %12 = arith.mulf %7, %11 : vector<16x512xf32>
    %c1_i32 = arith.constant 1 : i32
    %13 = tpu.dynamic_rotate %12 by %c1_i32 dim 1 : vector<16x512xf32>, i32 -> vector<16x512xf32>
    %c511_i32 = arith.constant 511 : i32
    %14 = tpu.dynamic_rotate %12 by %c511_i32 dim 1 : vector<16x512xf32>, i32 -> vector<16x512xf32>
    %15 = vector.extract_strided_slice %9 {offsets = [0, 0], sizes = [16, 1], strides = [1, 1]} : vector<16x9xf32> to vector<16x1xf32>
    %16 = vector.broadcast %15 : vector<16x1xf32> to vector<16x512xf32>
    %17 = arith.mulf %16, %13 : vector<16x512xf32>
    %18 = vector.extract_strided_slice %9 {offsets = [0, 1], sizes = [16, 1], strides = [1, 1]} : vector<16x9xf32> to vector<16x1xf32>
    %19 = vector.broadcast %18 : vector<16x1xf32> to vector<16x512xf32>
    %20 = arith.mulf %19, %12 : vector<16x512xf32>
    %21 = arith.addf %17, %20 : vector<16x512xf32>
    %22 = vector.extract_strided_slice %9 {offsets = [0, 2], sizes = [16, 1], strides = [1, 1]} : vector<16x9xf32> to vector<16x1xf32>
    %23 = vector.broadcast %22 : vector<16x1xf32> to vector<16x512xf32>
    %24 = arith.mulf %23, %14 : vector<16x512xf32>
    %25 = arith.addf %21, %24 : vector<16x512xf32>
    %c20_i32 = arith.constant 20 : i32
    %26 = tpu.dynamic_rotate %25 by %c20_i32 dim 1 : vector<16x512xf32>, i32 -> vector<16x512xf32>
    %27 = vector.extract_strided_slice %9 {offsets = [0, 3], sizes = [16, 1], strides = [1, 1]} : vector<16x9xf32> to vector<16x1xf32>
    %28 = vector.broadcast %27 : vector<16x1xf32> to vector<16x512xf32>
    %29 = arith.mulf %28, %13 : vector<16x512xf32>
    %30 = vector.extract_strided_slice %9 {offsets = [0, 4], sizes = [16, 1], strides = [1, 1]} : vector<16x9xf32> to vector<16x1xf32>
    %31 = vector.broadcast %30 : vector<16x1xf32> to vector<16x512xf32>
    %32 = arith.mulf %31, %12 : vector<16x512xf32>
    %33 = arith.addf %29, %32 : vector<16x512xf32>
    %34 = vector.extract_strided_slice %9 {offsets = [0, 5], sizes = [16, 1], strides = [1, 1]} : vector<16x9xf32> to vector<16x1xf32>
    %35 = vector.broadcast %34 : vector<16x1xf32> to vector<16x512xf32>
    %36 = arith.mulf %35, %14 : vector<16x512xf32>
    %37 = arith.addf %33, %36 : vector<16x512xf32>
    %38 = arith.addf %26, %37 : vector<16x512xf32>
    %39 = vector.extract_strided_slice %9 {offsets = [0, 6], sizes = [16, 1], strides = [1, 1]} : vector<16x9xf32> to vector<16x1xf32>
    %40 = vector.broadcast %39 : vector<16x1xf32> to vector<16x512xf32>
    %41 = arith.mulf %40, %13 : vector<16x512xf32>
    %42 = vector.extract_strided_slice %9 {offsets = [0, 7], sizes = [16, 1], strides = [1, 1]} : vector<16x9xf32> to vector<16x1xf32>
    %43 = vector.broadcast %42 : vector<16x1xf32> to vector<16x512xf32>
    %44 = arith.mulf %43, %12 : vector<16x512xf32>
    %45 = arith.addf %41, %44 : vector<16x512xf32>
    %46 = vector.extract_strided_slice %9 {offsets = [0, 8], sizes = [16, 1], strides = [1, 1]} : vector<16x9xf32> to vector<16x1xf32>
    %47 = vector.broadcast %46 : vector<16x1xf32> to vector<16x512xf32>
    %48 = arith.mulf %47, %14 : vector<16x512xf32>
    %49 = arith.addf %45, %48 : vector<16x512xf32>
    %c492_i32 = arith.constant 492 : i32
    %50 = tpu.dynamic_rotate %49 by %c492_i32 dim 1 : vector<16x512xf32>, i32 -> vector<16x512xf32>
    %51 = arith.addf %38, %50 : vector<16x512xf32>
    %52 = vector.broadcast %10 : vector<16x1xf32> to vector<16x512xf32>
    %53 = arith.addf %51, %52 : vector<16x512xf32>
    %54 = arith.addf %7, %53 : vector<16x512xf32>
    %55 = vector.extract_strided_slice %6 {offsets = [0, 1], sizes = [16, 1], strides = [1, 1]} : vector<16x11xf32> to vector<16x1xf32>
    %56 = vector.extract_strided_slice %6 {offsets = [0, 2], sizes = [16, 1], strides = [1, 1]} : vector<16x11xf32> to vector<16x1xf32>
    %cst_10 = arith.constant dense<0.000000e+00> : vector<1x512xf32>
    %57 = tpu.matmul %1, %54, %cst_10 {dimension_numbers = #tpu.dot_dimension_numbers<[1], [0], [0], [1], [0, 0, 1, 1], [], []>} : vector<1x16xf32>, vector<16x512xf32>, vector<1x512xf32> -> vector<1x512xf32>
    %58 = arith.mulf %54, %54 : vector<16x512xf32>
    %cst_11 = arith.constant dense<0.000000e+00> : vector<1x512xf32>
    %59 = tpu.matmul %1, %58, %cst_11 {dimension_numbers = #tpu.dot_dimension_numbers<[1], [0], [0], [1], [0, 0, 1, 1], [], []>} : vector<1x16xf32>, vector<16x512xf32>, vector<1x512xf32> -> vector<1x512xf32>
    %60 = arith.mulf %57, %57 : vector<1x512xf32>
    %61 = arith.subf %59, %60 : vector<1x512xf32>
    %cst_12 = arith.constant 0.000000e+00 : f32
    %62 = vector.broadcast %cst_12 : f32 to vector<1x512xf32>
    %63 = arith.maximumf %61, %62 : vector<1x512xf32>
    %64 = vector.broadcast %57 : vector<1x512xf32> to vector<16x512xf32>
    %65 = arith.subf %54, %64 : vector<16x512xf32>
    %cst_13 = arith.constant 9.99999997E-7 : f32
    %66 = vector.broadcast %cst_13 : f32 to vector<1x512xf32>
    %67 = arith.addf %63, %66 : vector<1x512xf32>
    %68 = math.rsqrt %67 : vector<1x512xf32>
    %69 = vector.broadcast %68 : vector<1x512xf32> to vector<16x512xf32>
    %70 = arith.mulf %65, %69 : vector<16x512xf32>
    %71 = vector.broadcast %55 : vector<16x1xf32> to vector<16x512xf32>
    %72 = arith.mulf %70, %71 : vector<16x512xf32>
    %73 = vector.broadcast %56 : vector<16x1xf32> to vector<16x512xf32>
    %74 = arith.addf %72, %73 : vector<16x512xf32>
    %c0_14 = arith.constant 0 : index
    %c0_15 = arith.constant 0 : index
    %c0_16 = arith.constant 0 : index
    %75 = vector.load %arg8[%c0_14, %c0_15, %c0_16] : memref<1x16x16xf32, #tpu.memory_space<vmem>>, vector<1x16x16xf32>
    %76 = vector.shape_cast %75 : vector<1x16x16xf32> to vector<16x16xf32>
    %cst_17 = arith.constant dense<0.000000e+00> : vector<16x512xf32>
    %77 = tpu.matmul %76, %74, %cst_17 {dimension_numbers = #tpu.dot_dimension_numbers<[1], [0], [0], [1], [0, 0, 1, 1], [], []>} : vector<16x16xf32>, vector<16x512xf32>, vector<16x512xf32> -> vector<16x512xf32>
    %78 = vector.extract_strided_slice %6 {offsets = [0, 3], sizes = [16, 1], strides = [1, 1]} : vector<16x11xf32> to vector<16x1xf32>
    %79 = vector.broadcast %78 : vector<16x1xf32> to vector<16x512xf32>
    %80 = arith.addf %77, %79 : vector<16x512xf32>
    %c0_18 = arith.constant 0 : index
    %c0_19 = arith.constant 0 : index
    %c0_20 = arith.constant 0 : index
    %81 = vector.load %arg7[%c0_18, %c0_19, %c0_20] : memref<1x16x25xf32, #tpu.memory_space<vmem>>, vector<1x16x25xf32>
    %82 = vector.shape_cast %81 : vector<1x16x25xf32> to vector<16x25xf32>
    %83 = vector.extract_strided_slice %6 {offsets = [0, 4], sizes = [16, 1], strides = [1, 1]} : vector<16x11xf32> to vector<16x1xf32>
    %84 = vector.broadcast %0 : vector<1x512xf32> to vector<16x512xf32>
    %85 = arith.mulf %80, %84 : vector<16x512xf32>
    %c2_i32 = arith.constant 2 : i32
    %86 = tpu.dynamic_rotate %85 by %c2_i32 dim 1 : vector<16x512xf32>, i32 -> vector<16x512xf32>
    %c1_i32_21 = arith.constant 1 : i32
    %87 = tpu.dynamic_rotate %85 by %c1_i32_21 dim 1 : vector<16x512xf32>, i32 -> vector<16x512xf32>
    %c511_i32_22 = arith.constant 511 : i32
    %88 = tpu.dynamic_rotate %85 by %c511_i32_22 dim 1 : vector<16x512xf32>, i32 -> vector<16x512xf32>
    %c510_i32 = arith.constant 510 : i32
    %89 = tpu.dynamic_rotate %85 by %c510_i32 dim 1 : vector<16x512xf32>, i32 -> vector<16x512xf32>
    %90 = vector.extract_strided_slice %82 {offsets = [0, 0], sizes = [16, 1], strides = [1, 1]} : vector<16x25xf32> to vector<16x1xf32>
    %91 = vector.broadcast %90 : vector<16x1xf32> to vector<16x512xf32>
    %92 = arith.mulf %91, %86 : vector<16x512xf32>
    %93 = vector.extract_strided_slice %82 {offsets = [0, 1], sizes = [16, 1], strides = [1, 1]} : vector<16x25xf32> to vector<16x1xf32>
    %94 = vector.broadcast %93 : vector<16x1xf32> to vector<16x512xf32>
    %95 = arith.mulf %94, %87 : vector<16x512xf32>
    %96 = arith.addf %92, %95 : vector<16x512xf32>
    %97 = vector.extract_strided_slice %82 {offsets = [0, 2], sizes = [16, 1], strides = [1, 1]} : vector<16x25xf32> to vector<16x1xf32>
    %98 = vector.broadcast %97 : vector<16x1xf32> to vector<16x512xf32>
    %99 = arith.mulf %98, %85 : vector<16x512xf32>
    %100 = arith.addf %96, %99 : vector<16x512xf32>
    %101 = vector.extract_strided_slice %82 {offsets = [0, 3], sizes = [16, 1], strides = [1, 1]} : vector<16x25xf32> to vector<16x1xf32>
    %102 = vector.broadcast %101 : vector<16x1xf32> to vector<16x512xf32>
    %103 = arith.mulf %102, %88 : vector<16x512xf32>
    %104 = arith.addf %100, %103 : vector<16x512xf32>
    %105 = vector.extract_strided_slice %82 {offsets = [0, 4], sizes = [16, 1], strides = [1, 1]} : vector<16x25xf32> to vector<16x1xf32>
    %106 = vector.broadcast %105 : vector<16x1xf32> to vector<16x512xf32>
    %107 = arith.mulf %106, %89 : vector<16x512xf32>
    %108 = arith.addf %104, %107 : vector<16x512xf32>
    %c40_i32 = arith.constant 40 : i32
    %109 = tpu.dynamic_rotate %108 by %c40_i32 dim 1 : vector<16x512xf32>, i32 -> vector<16x512xf32>
    %110 = vector.extract_strided_slice %82 {offsets = [0, 5], sizes = [16, 1], strides = [1, 1]} : vector<16x25xf32> to vector<16x1xf32>
    %111 = vector.broadcast %110 : vector<16x1xf32> to vector<16x512xf32>
    %112 = arith.mulf %111, %86 : vector<16x512xf32>
    %113 = vector.extract_strided_slice %82 {offsets = [0, 6], sizes = [16, 1], strides = [1, 1]} : vector<16x25xf32> to vector<16x1xf32>
    %114 = vector.broadcast %113 : vector<16x1xf32> to vector<16x512xf32>
    %115 = arith.mulf %114, %87 : vector<16x512xf32>
    %116 = arith.addf %112, %115 : vector<16x512xf32>
    %117 = vector.extract_strided_slice %82 {offsets = [0, 7], sizes = [16, 1], strides = [1, 1]} : vector<16x25xf32> to vector<16x1xf32>
    %118 = vector.broadcast %117 : vector<16x1xf32> to vector<16x512xf32>
    %119 = arith.mulf %118, %85 : vector<16x512xf32>
    %120 = arith.addf %116, %119 : vector<16x512xf32>
    %121 = vector.extract_strided_slice %82 {offsets = [0, 8], sizes = [16, 1], strides = [1, 1]} : vector<16x25xf32> to vector<16x1xf32>
    %122 = vector.broadcast %121 : vector<16x1xf32> to vector<16x512xf32>
    %123 = arith.mulf %122, %88 : vector<16x512xf32>
    %124 = arith.addf %120, %123 : vector<16x512xf32>
    %125 = vector.extract_strided_slice %82 {offsets = [0, 9], sizes = [16, 1], strides = [1, 1]} : vector<16x25xf32> to vector<16x1xf32>
    %126 = vector.broadcast %125 : vector<16x1xf32> to vector<16x512xf32>
    %127 = arith.mulf %126, %89 : vector<16x512xf32>
    %128 = arith.addf %124, %127 : vector<16x512xf32>
    %c20_i32_23 = arith.constant 20 : i32
    %129 = tpu.dynamic_rotate %128 by %c20_i32_23 dim 1 : vector<16x512xf32>, i32 -> vector<16x512xf32>
    %130 = arith.addf %109, %129 : vector<16x512xf32>
    %131 = vector.extract_strided_slice %82 {offsets = [0, 10], sizes = [16, 1], strides = [1, 1]} : vector<16x25xf32> to vector<16x1xf32>
    %132 = vector.broadcast %131 : vector<16x1xf32> to vector<16x512xf32>
    %133 = arith.mulf %132, %86 : vector<16x512xf32>
    %134 = vector.extract_strided_slice %82 {offsets = [0, 11], sizes = [16, 1], strides = [1, 1]} : vector<16x25xf32> to vector<16x1xf32>
    %135 = vector.broadcast %134 : vector<16x1xf32> to vector<16x512xf32>
    %136 = arith.mulf %135, %87 : vector<16x512xf32>
    %137 = arith.addf %133, %136 : vector<16x512xf32>
    %138 = vector.extract_strided_slice %82 {offsets = [0, 12], sizes = [16, 1], strides = [1, 1]} : vector<16x25xf32> to vector<16x1xf32>
    %139 = vector.broadcast %138 : vector<16x1xf32> to vector<16x512xf32>
    %140 = arith.mulf %139, %85 : vector<16x512xf32>
    %141 = arith.addf %137, %140 : vector<16x512xf32>
    %142 = vector.extract_strided_slice %82 {offsets = [0, 13], sizes = [16, 1], strides = [1, 1]} : vector<16x25xf32> to vector<16x1xf32>
    %143 = vector.broadcast %142 : vector<16x1xf32> to vector<16x512xf32>
    %144 = arith.mulf %143, %88 : vector<16x512xf32>
    %145 = arith.addf %141, %144 : vector<16x512xf32>
    %146 = vector.extract_strided_slice %82 {offsets = [0, 14], sizes = [16, 1], strides = [1, 1]} : vector<16x25xf32> to vector<16x1xf32>
    %147 = vector.broadcast %146 : vector<16x1xf32> to vector<16x512xf32>
    %148 = arith.mulf %147, %89 : vector<16x512xf32>
    %149 = arith.addf %145, %148 : vector<16x512xf32>
    %150 = arith.addf %130, %149 : vector<16x512xf32>
    %151 = vector.extract_strided_slice %82 {offsets = [0, 15], sizes = [16, 1], strides = [1, 1]} : vector<16x25xf32> to vector<16x1xf32>
    %152 = vector.broadcast %151 : vector<16x1xf32> to vector<16x512xf32>
    %153 = arith.mulf %152, %86 : vector<16x512xf32>
    %154 = vector.extract_strided_slice %82 {offsets = [0, 16], sizes = [16, 1], strides = [1, 1]} : vector<16x25xf32> to vector<16x1xf32>
    %155 = vector.broadcast %154 : vector<16x1xf32> to vector<16x512xf32>
    %156 = arith.mulf %155, %87 : vector<16x512xf32>
    %157 = arith.addf %153, %156 : vector<16x512xf32>
    %158 = vector.extract_strided_slice %82 {offsets = [0, 17], sizes = [16, 1], strides = [1, 1]} : vector<16x25xf32> to vector<16x1xf32>
    %159 = vector.broadcast %158 : vector<16x1xf32> to vector<16x512xf32>
    %160 = arith.mulf %159, %85 : vector<16x512xf32>
    %161 = arith.addf %157, %160 : vector<16x512xf32>
    %162 = vector.extract_strided_slice %82 {offsets = [0, 18], sizes = [16, 1], strides = [1, 1]} : vector<16x25xf32> to vector<16x1xf32>
    %163 = vector.broadcast %162 : vector<16x1xf32> to vector<16x512xf32>
    %164 = arith.mulf %163, %88 : vector<16x512xf32>
    %165 = arith.addf %161, %164 : vector<16x512xf32>
    %166 = vector.extract_strided_slice %82 {offsets = [0, 19], sizes = [16, 1], strides = [1, 1]} : vector<16x25xf32> to vector<16x1xf32>
    %167 = vector.broadcast %166 : vector<16x1xf32> to vector<16x512xf32>
    %168 = arith.mulf %167, %89 : vector<16x512xf32>
    %169 = arith.addf %165, %168 : vector<16x512xf32>
    %c492_i32_24 = arith.constant 492 : i32
    %170 = tpu.dynamic_rotate %169 by %c492_i32_24 dim 1 : vector<16x512xf32>, i32 -> vector<16x512xf32>
    %171 = arith.addf %150, %170 : vector<16x512xf32>
    %172 = vector.extract_strided_slice %82 {offsets = [0, 20], sizes = [16, 1], strides = [1, 1]} : vector<16x25xf32> to vector<16x1xf32>
    %173 = vector.broadcast %172 : vector<16x1xf32> to vector<16x512xf32>
    %174 = arith.mulf %173, %86 : vector<16x512xf32>
    %175 = vector.extract_strided_slice %82 {offsets = [0, 21], sizes = [16, 1], strides = [1, 1]} : vector<16x25xf32> to vector<16x1xf32>
    %176 = vector.broadcast %175 : vector<16x1xf32> to vector<16x512xf32>
    %177 = arith.mulf %176, %87 : vector<16x512xf32>
    %178 = arith.addf %174, %177 : vector<16x512xf32>
    %179 = vector.extract_strided_slice %82 {offsets = [0, 22], sizes = [16, 1], strides = [1, 1]} : vector<16x25xf32> to vector<16x1xf32>
    %180 = vector.broadcast %179 : vector<16x1xf32> to vector<16x512xf32>
    %181 = arith.mulf %180, %85 : vector<16x512xf32>
    %182 = arith.addf %178, %181 : vector<16x512xf32>
    %183 = vector.extract_strided_slice %82 {offsets = [0, 23], sizes = [16, 1], strides = [1, 1]} : vector<16x25xf32> to vector<16x1xf32>
    %184 = vector.broadcast %183 : vector<16x1xf32> to vector<16x512xf32>
    %185 = arith.mulf %184, %88 : vector<16x512xf32>
    %186 = arith.addf %182, %185 : vector<16x512xf32>
    %187 = vector.extract_strided_slice %82 {offsets = [0, 24], sizes = [16, 1], strides = [1, 1]} : vector<16x25xf32> to vector<16x1xf32>
    %188 = vector.broadcast %187 : vector<16x1xf32> to vector<16x512xf32>
    %189 = arith.mulf %188, %89 : vector<16x512xf32>
    %190 = arith.addf %186, %189 : vector<16x512xf32>
    %c472_i32 = arith.constant 472 : i32
    %191 = tpu.dynamic_rotate %190 by %c472_i32 dim 1 : vector<16x512xf32>, i32 -> vector<16x512xf32>
    %192 = arith.addf %171, %191 : vector<16x512xf32>
    %193 = vector.broadcast %83 : vector<16x1xf32> to vector<16x512xf32>
    %194 = arith.addf %192, %193 : vector<16x512xf32>
    %c0_25 = arith.constant 0 : index
    %c0_26 = arith.constant 0 : index
    %c0_27 = arith.constant 0 : index
    %195 = vector.load %arg9[%c0_25, %c0_26, %c0_27] : memref<1x16x16xf32, #tpu.memory_space<vmem>>, vector<1x16x16xf32>
    %196 = vector.shape_cast %195 : vector<1x16x16xf32> to vector<16x16xf32>
    %cst_28 = arith.constant dense<0.000000e+00> : vector<16x512xf32>
    %197 = tpu.matmul %196, %194, %cst_28 {dimension_numbers = #tpu.dot_dimension_numbers<[1], [0], [0], [1], [0, 0, 1, 1], [], []>} : vector<16x16xf32>, vector<16x512xf32>, vector<16x512xf32> -> vector<16x512xf32>
    %198 = vector.extract_strided_slice %6 {offsets = [0, 5], sizes = [16, 1], strides = [1, 1]} : vector<16x11xf32> to vector<16x1xf32>
    %199 = vector.broadcast %198 : vector<16x1xf32> to vector<16x512xf32>
    %200 = arith.addf %197, %199 : vector<16x512xf32>
    %201 = vector.extract_strided_slice %6 {offsets = [0, 9], sizes = [16, 1], strides = [1, 1]} : vector<16x11xf32> to vector<16x1xf32>
    %202 = vector.broadcast %201 : vector<16x1xf32> to vector<16x512xf32>
    %203 = arith.mulf %202, %200 : vector<16x512xf32>
    %204 = arith.addf %54, %203 : vector<16x512xf32>
    %205 = vector.extract_strided_slice %6 {offsets = [0, 6], sizes = [16, 1], strides = [1, 1]} : vector<16x11xf32> to vector<16x1xf32>
    %206 = vector.extract_strided_slice %6 {offsets = [0, 7], sizes = [16, 1], strides = [1, 1]} : vector<16x11xf32> to vector<16x1xf32>
    %cst_29 = arith.constant dense<0.000000e+00> : vector<1x512xf32>
    %207 = tpu.matmul %1, %204, %cst_29 {dimension_numbers = #tpu.dot_dimension_numbers<[1], [0], [0], [1], [0, 0, 1, 1], [], []>} : vector<1x16xf32>, vector<16x512xf32>, vector<1x512xf32> -> vector<1x512xf32>
    %208 = arith.mulf %204, %204 : vector<16x512xf32>
    %cst_30 = arith.constant dense<0.000000e+00> : vector<1x512xf32>
    %209 = tpu.matmul %1, %208, %cst_30 {dimension_numbers = #tpu.dot_dimension_numbers<[1], [0], [0], [1], [0, 0, 1, 1], [], []>} : vector<1x16xf32>, vector<16x512xf32>, vector<1x512xf32> -> vector<1x512xf32>
    %210 = arith.mulf %207, %207 : vector<1x512xf32>
    %211 = arith.subf %209, %210 : vector<1x512xf32>
    %cst_31 = arith.constant 0.000000e+00 : f32
    %212 = vector.broadcast %cst_31 : f32 to vector<1x512xf32>
    %213 = arith.maximumf %211, %212 : vector<1x512xf32>
    %214 = vector.broadcast %207 : vector<1x512xf32> to vector<16x512xf32>
    %215 = arith.subf %204, %214 : vector<16x512xf32>
    %cst_32 = arith.constant 9.99999997E-7 : f32
    %216 = vector.broadcast %cst_32 : f32 to vector<1x512xf32>
    %217 = arith.addf %213, %216 : vector<1x512xf32>
    %218 = math.rsqrt %217 : vector<1x512xf32>
    %219 = vector.broadcast %218 : vector<1x512xf32> to vector<16x512xf32>
    %220 = arith.mulf %215, %219 : vector<16x512xf32>
    %221 = vector.broadcast %205 : vector<16x1xf32> to vector<16x512xf32>
    %222 = arith.mulf %220, %221 : vector<16x512xf32>
    %223 = vector.broadcast %206 : vector<16x1xf32> to vector<16x512xf32>
    %224 = arith.addf %222, %223 : vector<16x512xf32>
    %c0_33 = arith.constant 0 : index
    %c0_34 = arith.constant 0 : index
    %c0_35 = arith.constant 0 : index
    %225 = vector.load %arg10[%c0_33, %c0_34, %c0_35] : memref<1x64x16xf32, #tpu.memory_space<vmem>>, vector<1x64x16xf32>
    %226 = vector.shape_cast %225 : vector<1x64x16xf32> to vector<64x16xf32>
    %cst_36 = arith.constant dense<0.000000e+00> : vector<64x512xf32>
    %227 = tpu.matmul %226, %224, %cst_36 {dimension_numbers = #tpu.dot_dimension_numbers<[1], [0], [0], [1], [0, 0, 1, 1], [], []>} : vector<64x16xf32>, vector<16x512xf32>, vector<64x512xf32> -> vector<64x512xf32>
    %c0_37 = arith.constant 0 : index
    %c0_38 = arith.constant 0 : index
    %c0_39 = arith.constant 0 : index
    %228 = vector.load %arg11[%c0_37, %c0_38, %c0_39] : memref<1x64x1xf32, #tpu.memory_space<vmem>>, vector<1x64x1xf32>
    %229 = vector.shape_cast %228 : vector<1x64x1xf32> to vector<64x1xf32>
    %230 = vector.broadcast %229 : vector<64x1xf32> to vector<64x512xf32>
    %231 = arith.addf %227, %230 : vector<64x512xf32>
    %cst_40 = arith.constant 5.000000e-01 : f32
    %232 = vector.broadcast %cst_40 : f32 to vector<64x512xf32>
    %233 = arith.mulf %232, %231 : vector<64x512xf32>
    %cst_41 = arith.constant 4.471500e-02 : f32
    %234 = vector.broadcast %cst_41 : f32 to vector<64x512xf32>
    %235 = arith.mulf %234, %231 : vector<64x512xf32>
    %236 = arith.mulf %235, %231 : vector<64x512xf32>
    %237 = arith.mulf %236, %231 : vector<64x512xf32>
    %238 = arith.addf %231, %237 : vector<64x512xf32>
    %cst_42 = arith.constant 0.797884583 : f32
    %239 = vector.broadcast %cst_42 : f32 to vector<64x512xf32>
    %240 = arith.mulf %239, %238 : vector<64x512xf32>
    %241 = math.tanh %240 : vector<64x512xf32>
    %cst_43 = arith.constant 1.000000e+00 : f32
    %242 = vector.broadcast %cst_43 : f32 to vector<64x512xf32>
    %243 = arith.addf %242, %241 : vector<64x512xf32>
    %244 = arith.mulf %233, %243 : vector<64x512xf32>
    %c0_44 = arith.constant 0 : index
    %c0_45 = arith.constant 0 : index
    %c0_46 = arith.constant 0 : index
    %245 = vector.load %arg12[%c0_44, %c0_45, %c0_46] : memref<1x16x64xf32, #tpu.memory_space<vmem>>, vector<1x16x64xf32>
    %246 = vector.shape_cast %245 : vector<1x16x64xf32> to vector<16x64xf32>
    %cst_47 = arith.constant dense<0.000000e+00> : vector<16x512xf32>
    %247 = tpu.matmul %246, %244, %cst_47 {dimension_numbers = #tpu.dot_dimension_numbers<[1], [0], [0], [1], [0, 0, 1, 1], [], []>} : vector<16x64xf32>, vector<64x512xf32>, vector<16x512xf32> -> vector<16x512xf32>
    %248 = vector.extract_strided_slice %6 {offsets = [0, 8], sizes = [16, 1], strides = [1, 1]} : vector<16x11xf32> to vector<16x1xf32>
    %249 = vector.broadcast %248 : vector<16x1xf32> to vector<16x512xf32>
    %250 = arith.addf %247, %249 : vector<16x512xf32>
    %251 = vector.extract_strided_slice %6 {offsets = [0, 10], sizes = [16, 1], strides = [1, 1]} : vector<16x11xf32> to vector<16x1xf32>
    %252 = vector.broadcast %251 : vector<16x1xf32> to vector<16x512xf32>
    %253 = arith.mulf %252, %250 : vector<16x512xf32>
    %254 = arith.addf %204, %253 : vector<16x512xf32>
    %c0_48 = arith.constant 0 : index
    %c0_49 = arith.constant 0 : index
    %255 = vector.load %arg17[%c0_48, %c0_49] : memref<16x512xf32, #tpu.memory_space<vmem>>, vector<16x512xf32>
    tpu.vector_store %arg17[%c0_48, %c0_49], %254 {strides = array<i32>} : memref<16x512xf32, #tpu.memory_space<vmem>>, vector<16x512xf32>,
    %c2_i32_50 = arith.constant 2 : i32
    %256 = arith.cmpi eq, %arg2, %c2_i32_50 : i32
    %257 = arith.extui %256 : i1 to i32
    %c0_i32_51 = arith.constant 0 : i32
    %258 = arith.cmpi ne, %257, %c0_i32_51 : i32
    scf.if %258 {
      %c0_52 = arith.constant 0 : index
      %c0_53 = arith.constant 0 : index
      %259 = vector.load %arg16[%c0_52, %c0_53] : memref<16x512xf32, #tpu.memory_space<vmem>>, vector<16x512xf32>
      %260 = arith.addf %254, %259 : vector<16x512xf32>
      %c0_54 = arith.constant 0 : index
      %c0_55 = arith.constant 0 : index
      %c0_56 = arith.constant 0 : index
      %261 = vector.load %arg14[%c0_54, %c0_55, %c0_56] : memref<1x3x145xf32, #tpu.memory_space<vmem>>, vector<1x3x145xf32>
      %262 = vector.shape_cast %261 : vector<1x3x145xf32> to vector<3x145xf32>
      %263 = vector.extract_strided_slice %262 {offsets = [0, 0], sizes = [3, 144], strides = [1, 1]} : vector<3x145xf32> to vector<3x144xf32>
      %264 = vector.extract_strided_slice %262 {offsets = [0, 144], sizes = [3, 1], strides = [1, 1]} : vector<3x145xf32> to vector<3x1xf32>
      %265 = vector.broadcast %0 : vector<1x512xf32> to vector<16x512xf32>
      %266 = arith.mulf %260, %265 : vector<16x512xf32>
      %c1_i32_57 = arith.constant 1 : i32
      %267 = tpu.dynamic_rotate %266 by %c1_i32_57 dim 1 : vector<16x512xf32>, i32 -> vector<16x512xf32>
      %c511_i32_58 = arith.constant 511 : i32
      %268 = tpu.dynamic_rotate %266 by %c511_i32_58 dim 1 : vector<16x512xf32>, i32 -> vector<16x512xf32>
      %269 = vector.extract_strided_slice %263 {offsets = [0, 0], sizes = [3, 16], strides = [1, 1]} : vector<3x144xf32> to vector<3x16xf32>
      %cst_59 = arith.constant dense<0.000000e+00> : vector<3x512xf32>
      %270 = tpu.matmul %269, %267, %cst_59 {dimension_numbers = #tpu.dot_dimension_numbers<[1], [0], [0], [1], [0, 0, 1, 1], [], []>} : vector<3x16xf32>, vector<16x512xf32>, vector<3x512xf32> -> vector<3x512xf32>
      %271 = vector.extract_strided_slice %263 {offsets = [0, 16], sizes = [3, 16], strides = [1, 1]} : vector<3x144xf32> to vector<3x16xf32>
      %cst_60 = arith.constant dense<0.000000e+00> : vector<3x512xf32>
      %272 = tpu.matmul %271, %266, %cst_60 {dimension_numbers = #tpu.dot_dimension_numbers<[1], [0], [0], [1], [0, 0, 1, 1], [], []>} : vector<3x16xf32>, vector<16x512xf32>, vector<3x512xf32> -> vector<3x512xf32>
      %273 = arith.addf %270, %272 : vector<3x512xf32>
      %274 = vector.extract_strided_slice %263 {offsets = [0, 32], sizes = [3, 16], strides = [1, 1]} : vector<3x144xf32> to vector<3x16xf32>
      %cst_61 = arith.constant dense<0.000000e+00> : vector<3x512xf32>
      %275 = tpu.matmul %274, %268, %cst_61 {dimension_numbers = #tpu.dot_dimension_numbers<[1], [0], [0], [1], [0, 0, 1, 1], [], []>} : vector<3x16xf32>, vector<16x512xf32>, vector<3x512xf32> -> vector<3x512xf32>
      %276 = arith.addf %273, %275 : vector<3x512xf32>
      %c20_i32_62 = arith.constant 20 : i32
      %277 = tpu.dynamic_rotate %276 by %c20_i32_62 dim 1 : vector<3x512xf32>, i32 -> vector<3x512xf32>
      %278 = vector.extract_strided_slice %263 {offsets = [0, 48], sizes = [3, 16], strides = [1, 1]} : vector<3x144xf32> to vector<3x16xf32>
      %cst_63 = arith.constant dense<0.000000e+00> : vector<3x512xf32>
      %279 = tpu.matmul %278, %267, %cst_63 {dimension_numbers = #tpu.dot_dimension_numbers<[1], [0], [0], [1], [0, 0, 1, 1], [], []>} : vector<3x16xf32>, vector<16x512xf32>, vector<3x512xf32> -> vector<3x512xf32>
      %280 = vector.extract_strided_slice %263 {offsets = [0, 64], sizes = [3, 16], strides = [1, 1]} : vector<3x144xf32> to vector<3x16xf32>
      %cst_64 = arith.constant dense<0.000000e+00> : vector<3x512xf32>
      %281 = tpu.matmul %280, %266, %cst_64 {dimension_numbers = #tpu.dot_dimension_numbers<[1], [0], [0], [1], [0, 0, 1, 1], [], []>} : vector<3x16xf32>, vector<16x512xf32>, vector<3x512xf32> -> vector<3x512xf32>
      %282 = arith.addf %279, %281 : vector<3x512xf32>
      %283 = vector.extract_strided_slice %263 {offsets = [0, 80], sizes = [3, 16], strides = [1, 1]} : vector<3x144xf32> to vector<3x16xf32>
      %cst_65 = arith.constant dense<0.000000e+00> : vector<3x512xf32>
      %284 = tpu.matmul %283, %268, %cst_65 {dimension_numbers = #tpu.dot_dimension_numbers<[1], [0], [0], [1], [0, 0, 1, 1], [], []>} : vector<3x16xf32>, vector<16x512xf32>, vector<3x512xf32> -> vector<3x512xf32>
      %285 = arith.addf %282, %284 : vector<3x512xf32>
      %286 = arith.addf %277, %285 : vector<3x512xf32>
      %287 = vector.extract_strided_slice %263 {offsets = [0, 96], sizes = [3, 16], strides = [1, 1]} : vector<3x144xf32> to vector<3x16xf32>
      %cst_66 = arith.constant dense<0.000000e+00> : vector<3x512xf32>
      %288 = tpu.matmul %287, %267, %cst_66 {dimension_numbers = #tpu.dot_dimension_numbers<[1], [0], [0], [1], [0, 0, 1, 1], [], []>} : vector<3x16xf32>, vector<16x512xf32>, vector<3x512xf32> -> vector<3x512xf32>
      %289 = vector.extract_strided_slice %263 {offsets = [0, 112], sizes = [3, 16], strides = [1, 1]} : vector<3x144xf32> to vector<3x16xf32>
      %cst_67 = arith.constant dense<0.000000e+00> : vector<3x512xf32>
      %290 = tpu.matmul %289, %266, %cst_67 {dimension_numbers = #tpu.dot_dimension_numbers<[1], [0], [0], [1], [0, 0, 1, 1], [], []>} : vector<3x16xf32>, vector<16x512xf32>, vector<3x512xf32> -> vector<3x512xf32>
      %291 = arith.addf %288, %290 : vector<3x512xf32>
      %292 = vector.extract_strided_slice %263 {offsets = [0, 128], sizes = [3, 16], strides = [1, 1]} : vector<3x144xf32> to vector<3x16xf32>
      %cst_68 = arith.constant dense<0.000000e+00> : vector<3x512xf32>
      %293 = tpu.matmul %292, %268, %cst_68 {dimension_numbers = #tpu.dot_dimension_numbers<[1], [0], [0], [1], [0, 0, 1, 1], [], []>} : vector<3x16xf32>, vector<16x512xf32>, vector<3x512xf32> -> vector<3x512xf32>
      %294 = arith.addf %291, %293 : vector<3x512xf32>
      %c492_i32_69 = arith.constant 492 : i32
      %295 = tpu.dynamic_rotate %294 by %c492_i32_69 dim 1 : vector<3x512xf32>, i32 -> vector<3x512xf32>
      %296 = arith.addf %286, %295 : vector<3x512xf32>
      %297 = vector.broadcast %264 : vector<3x1xf32> to vector<3x512xf32>
      %298 = arith.addf %296, %297 : vector<3x512xf32>
      %c0_i32_70 = arith.constant 0 : i32
      %299 = arith.cmpi eq, %arg1, %c0_i32_70 : i32
      %300 = arith.extui %299 : i1 to i32
      %c0_i32_71 = arith.constant 0 : i32
      %301 = arith.cmpi ne, %300, %c0_i32_71 : i32
      scf.if %301 {
        %cst_74 = arith.constant 0.000000e+00 : f32
        %305 = vector.broadcast %cst_74 : f32 to vector<3x512xf32>
        %306 = arith.maximumf %298, %305 : vector<3x512xf32>
        %c0_75 = arith.constant 0 : index
        %c0_76 = arith.constant 0 : index
        %c0_77 = arith.constant 0 : index
        %c0_78 = arith.constant 0 : index
        %307 = vector.load %arg15[%c0_75, %c0_76, %c0_77, %c0_78] : memref<1x1x3x512xf32, #tpu.memory_space<vmem>>, vector<1x1x3x512xf32>
        %308 = vector.shape_cast %307 : vector<1x1x3x512xf32> to vector<3x512xf32>
        %309 = vector.shape_cast %306 : vector<3x512xf32> to vector<1x1x3x512xf32>
        tpu.vector_store %arg15[%c0_75, %c0_76, %c0_77, %c0_78], %309 {strides = array<i32>} : memref<1x1x3x512xf32, #tpu.memory_space<vmem>>, vector<1x1x3x512xf32>,
      } else {
      }
      %c1_i32_72 = arith.constant 1 : i32
      %302 = arith.cmpi eq, %arg1, %c1_i32_72 : i32
      %303 = arith.extui %302 : i1 to i32
      %c0_i32_73 = arith.constant 0 : i32
      %304 = arith.cmpi ne, %303, %c0_i32_73 : i32
      scf.if %304 {
        %305 = math.tanh %298 : vector<3x512xf32>
        %c0_74 = arith.constant 0 : index
        %c0_75 = arith.constant 0 : index
        %c0_76 = arith.constant 0 : index
        %c0_77 = arith.constant 0 : index
        %306 = vector.load %arg15[%c0_74, %c0_75, %c0_76, %c0_77] : memref<1x1x3x512xf32, #tpu.memory_space<vmem>>, vector<1x1x3x512xf32>
        %307 = vector.shape_cast %306 : vector<1x1x3x512xf32> to vector<3x512xf32>
        %308 = vector.shape_cast %305 : vector<3x512xf32> to vector<1x1x3x512xf32>
        tpu.vector_store %arg15[%c0_74, %c0_75, %c0_76, %c0_77], %308 {strides = array<i32>} : memref<1x1x3x512xf32, #tpu.memory_space<vmem>>, vector<1x1x3x512xf32>,
      } else {
      }
    } else {
    }
    return
  }
  func.func @transform_0(%arg0: i32, %arg1: i32, %arg2: i32) -> (i32, i32, i32) {
    %c0_i32 = arith.constant 0 : i32
    %c0_i32_0 = arith.constant 0 : i32
    %c0_i32_1 = arith.constant 0 : i32
    return %arg0, %c0_i32, %c0_i32_0 : i32, i32, i32
  }
  func.func @transform_1(%arg0: i32, %arg1: i32, %arg2: i32) -> (i32, i32) {
    %c0_i32 = arith.constant 0 : i32
    %c0_i32_0 = arith.constant 0 : i32
    %c0_i32_1 = arith.constant 0 : i32
    return %c0_i32, %c0_i32_0 : i32, i32
  }
  func.func @transform_2(%arg0: i32, %arg1: i32, %arg2: i32) -> (i32, i32) {
    %c0_i32 = arith.constant 0 : i32
    %c0_i32_0 = arith.constant 0 : i32
    %c0_i32_1 = arith.constant 0 : i32
    return %c0_i32, %c0_i32_0 : i32, i32
  }
  func.func @transform_3(%arg0: i32, %arg1: i32, %arg2: i32) -> (i32, i32, i32) {
    %c3_i32 = arith.constant 3 : i32
    %0 = arith.muli %arg1, %c3_i32 : i32
    %1 = arith.addi %0, %arg2 : i32
    %c0_i32 = arith.constant 0 : i32
    %c0_i32_0 = arith.constant 0 : i32
    %c0_i32_1 = arith.constant 0 : i32
    return %1, %c0_i32, %c0_i32_0 : i32, i32, i32
  }
  func.func @transform_4(%arg0: i32, %arg1: i32, %arg2: i32) -> (i32, i32, i32) {
    %c3_i32 = arith.constant 3 : i32
    %0 = arith.muli %arg1, %c3_i32 : i32
    %1 = arith.addi %0, %arg2 : i32
    %c0_i32 = arith.constant 0 : i32
    %c0_i32_0 = arith.constant 0 : i32
    %c0_i32_1 = arith.constant 0 : i32
    return %1, %c0_i32, %c0_i32_0 : i32, i32, i32
  }
  func.func @transform_5(%arg0: i32, %arg1: i32, %arg2: i32) -> (i32, i32, i32) {
    %c3_i32 = arith.constant 3 : i32
    %0 = arith.muli %arg1, %c3_i32 : i32
    %1 = arith.addi %0, %arg2 : i32
    %c0_i32 = arith.constant 0 : i32
    %c0_i32_0 = arith.constant 0 : i32
    %c0_i32_1 = arith.constant 0 : i32
    return %1, %c0_i32, %c0_i32_0 : i32, i32, i32
  }
  func.func @transform_6(%arg0: i32, %arg1: i32, %arg2: i32) -> (i32, i32, i32) {
    %c3_i32 = arith.constant 3 : i32
    %0 = arith.muli %arg1, %c3_i32 : i32
    %1 = arith.addi %0, %arg2 : i32
    %c0_i32 = arith.constant 0 : i32
    %c0_i32_0 = arith.constant 0 : i32
    %c0_i32_1 = arith.constant 0 : i32
    return %1, %c0_i32, %c0_i32_0 : i32, i32, i32
  }
  func.func @transform_7(%arg0: i32, %arg1: i32, %arg2: i32) -> (i32, i32, i32) {
    %c3_i32 = arith.constant 3 : i32
    %0 = arith.muli %arg1, %c3_i32 : i32
    %1 = arith.addi %0, %arg2 : i32
    %c0_i32 = arith.constant 0 : i32
    %c0_i32_0 = arith.constant 0 : i32
    %c0_i32_1 = arith.constant 0 : i32
    return %1, %c0_i32, %c0_i32_0 : i32, i32, i32
  }
  func.func @transform_8(%arg0: i32, %arg1: i32, %arg2: i32) -> (i32, i32, i32) {
    %c3_i32 = arith.constant 3 : i32
    %0 = arith.muli %arg1, %c3_i32 : i32
    %1 = arith.addi %0, %arg2 : i32
    %c0_i32 = arith.constant 0 : i32
    %c0_i32_0 = arith.constant 0 : i32
    %c0_i32_1 = arith.constant 0 : i32
    return %1, %c0_i32, %c0_i32_0 : i32, i32, i32
  }
  func.func @transform_9(%arg0: i32, %arg1: i32, %arg2: i32) -> (i32, i32, i32) {
    %c3_i32 = arith.constant 3 : i32
    %0 = arith.muli %arg1, %c3_i32 : i32
    %1 = arith.addi %0, %arg2 : i32
    %c0_i32 = arith.constant 0 : i32
    %c0_i32_0 = arith.constant 0 : i32
    %c0_i32_1 = arith.constant 0 : i32
    return %1, %c0_i32, %c0_i32_0 : i32, i32, i32
  }
  func.func @transform_10(%arg0: i32, %arg1: i32, %arg2: i32) -> (i32, i32, i32) {
    %c3_i32 = arith.constant 3 : i32
    %0 = arith.muli %arg1, %c3_i32 : i32
    %1 = arith.addi %0, %arg2 : i32
    %c0_i32 = arith.constant 0 : i32
    %c0_i32_0 = arith.constant 0 : i32
    %c0_i32_1 = arith.constant 0 : i32
    return %1, %c0_i32, %c0_i32_0 : i32, i32, i32
  }
  func.func @transform_11(%arg0: i32, %arg1: i32, %arg2: i32) -> (i32, i32, i32) {
    %c0_i32 = arith.constant 0 : i32
    %c0_i32_0 = arith.constant 0 : i32
    %c0_i32_1 = arith.constant 0 : i32
    return %arg1, %c0_i32, %c0_i32_0 : i32, i32, i32
  }
  func.func @transform_12(%arg0: i32, %arg1: i32, %arg2: i32) -> (i32, i32, i32, i32) {
    %c0_i32 = arith.constant 0 : i32
    %c0_i32_0 = arith.constant 0 : i32
    %c0_i32_1 = arith.constant 0 : i32
    return %arg0, %arg1, %c0_i32, %c0_i32_0 : i32, i32, i32, i32
  }
}

</mosaic_0001>

<bundles_post_ra>
// kernel: _lambda_.1
= control target key start
LH: loop header
LB: loop body
LE: loop exit
PB: predicated region body
PF: predicated region fallthrough
CT: control target
= control target key end

     0   :  { %s6403_s21 = smov 0   ;;  %s6405_s22 = smov 0   ;;  %s9588_s0 = inlined_call_operand.vmem [shape: f32[2,8,512], index: 0, kind: input, shape index: {}]   ;;  %s9589_s1 = inlined_call_operand.vmem [shape: f32[1,512], index: 1, kind: input, shape index: {}]   ;;  %s9590_s2 = inlined_call_operand.vmem [shape: f32[16,73], index: 2, kind: input, shape index: {}]   ;;  %s9591_s3 = inlined_call_operand.vmem [shape: f32[6,16,9], index: 3, kind: input, shape index: {}]   ;;  %s9592_s4 = inlined_call_operand.vmem [shape: f32[6,16,25], index: 4, kind: input, shape index: {}]   ;;  %s9593_s5 = inlined_call_operand.vmem [shape: f32[6,16,16], index: 5, kind: input, shape index: {}]   ;;  %s9594_s6 = inlined_call_operand.vmem [shape: f32[6,16,16], index: 6, kind: input, shape index: {}]   ;;  %s9595_s7 = inlined_call_operand.vmem [shape: f32[6,64,16], index: 7, kind: input, shape index: {}]   ;;  %s9596_s8 = inlined_call_operand.vmem [shape: f32[6,64,1], index: 8, kind: input, shape index: {}]   ;;  %s9597_s9 = inlined_call_operand.vmem [shape: f32[6,16,64], index: 9, kind: input, shape index: {}]   ;;  %s9598_s10 = inlined_call_operand.vmem [shape: f32[6,16,11], index: 10, kind: input, shape index: {}]   ;;  %s9599_s11 = inlined_call_operand.vmem [shape: f32[2,3,145], index: 11, kind: input, shape index: {}]   ;;  %s9600_s12 = inlined_call_operand.vmem [shape: f32[2,2,3,512], index: 12, kind: output, shape index: {}]  }
   0x1   :  { %9738 = sst [smem:[#allocation133_spill]] %s9588_s0  ;;  %s6407_s23 = smov 0  }
   0x2   :  { %9739 = sst [smem:[#allocation134_spill]] %s9589_s1  ;;  %s6409_s24 = smov 0  }
   0x3   :  { %9740 = sst [smem:[#allocation135_spill]] %s9590_s2  ;;  %s6411_s25 = smov 0  }
   0x4   :  { %9741 = sst [smem:[#allocation136_spill]] %s9591_s3  ;;  %s6413_s26 = smov 0  }
   0x5   :  { %9742 = sst [smem:[#allocation137_spill]] %s9592_s4  ;;  %s6415_s27 = smov 0  }
   0x6   :  { %9743 = sst [smem:[#allocation138_spill]] %s9593_s5 }
   0x7   :  { %9744 = sst [smem:[#allocation139_spill]] %s9594_s6 }
   0x8   :  { %9745 = sst [smem:[#allocation140_spill]] %s9595_s7 }
   0x9   :  { %9746 = sst [smem:[#allocation141_spill]] %s9596_s8 }
   0xa LB: > { %9747 = sst [smem:[#allocation4_spill]] %s6264_s24  ;;  %s34_s28 = sadd.s32 1, %s6264_s24  ;;  %s6276_s27 = sphi %s6415_s27, %s22_s27   ;;  %s6272_s26 = sphi %s6413_s26, %s10147_s26   ;;  %s6268_s25 = sphi %s6411_s25, %s10146_s25   ;;  %s6264_s24 = sphi %s6409_s24, %s10145_s24   ;;  %s6260_s23 = sphi %s6407_s23, %s10144_s23   ;;  %s6256_s22 = sphi %s6405_s22, %s10143_s22   ;;  %s6252_s21 = sphi %s6403_s21, %s10142_s21  }
   0xb   : > { %9748 = sst [smem:[#allocation5_spill]] %s6268_s25  ;;  %p35_p0 = scmp.ge.s32.totalorder %s34_s28, 3 }
   0xc   : > { %9749 = sst [smem:[#allocation6_spill]] %s6272_s26  ;;  %s37_s29 = sadd.s32 1, %s6268_s25 }
   0xd   : > { %9750 = sst [smem:[#allocation7_spill]] %s6276_s27  ;;  %p5652_p1 = scmp.ge.s32.totalorder %s6276_s27, 1 }
   0xe   : > { %p537_p2 = scmp.lt.s32.totalorder %s6276_s27, 13  ;;  %s10149_s28 = smov (%p35_p0, %s34_s28), 0 }
   0xf   : > { %9751 = sst [smem:[#allocation8_spill]] %s10149_s28  ;;  %s10151_s29 = smov (!%p35_p0, %s37_s29), %s6268_s25 }
  0x10   : > { %p538_p3 = pnand %p5652_p1, %p537_p2  ;;  %p39_p4 = scmp.ge.s32.totalorder %s10151_s29, 2 }
  0x11   : > { %s41_s30 = sadd.s32 1, %s6272_s26 }
  0x12   : > { %s10153_s29 = smov (%p39_p4, %s10151_s29), 0  ;;  %s10155_s30 = smov (!%p39_p4, %s41_s30), %s6272_s26 }
  0x13   : > { %9752 = sst [smem:[#allocation9_spill]] %s10153_s29  ;;  %p43_p5 = scmp.ge.s32.totalorder %s10155_s30, 2 }
  0x14   : > { %541 = sbr.rel (%p538_p3) target bundleno = 2835 (0xb13), region = 68 }
  0x15   : > { %s10157_s30 = smov (%p43_p5, %s10155_s30), 0 }
  0x16   : > { %9753 = sst [smem:[#allocation10_spill]] %s10157_s30 }
  0x19   : > { %p644_p6 = scmp.lt.s32.totalorder %s6260_s23, 1  ;;  %s649_s13 = smul.u32 3, %s6256_s22 }
  0x1a   : > { %s9754_s1 = sld [smem:[#allocation134_spill]]  ;;  %p721_p7 = scmp.lt.s32.totalorder %s6256_s22, 1 }
  0x1b   : > { %s10159_s23 = smov (!%p644_p6, %s6260_s23), 1  ;;  %s650_s16 = sadd.s32 %s6252_s21, %s649_s13 }
  0x1c   : > { %s5862_s17 = sshll.u32 %s10159_s23, 5  ;;  %p651_p8 = scmp.lt.s32.totalorder %s650_s16, 5 }
  0x1d   : > { %s9755_s0 = sld [smem:[#allocation133_spill]]  ;;  %s5674_s30 = sshll.u32 %s10159_s23, 3 }
  0x1e   : > { %s10161_s16 = smov (!%p651_p8, %s650_s16), 5  ;;  %s9756_s3 = sld [smem:[#allocation136_spill]] }
  0x1f   : > { %s722_s29 = scalar_select %p721_p7, %s6256_s22, 1 }
  0x20   : > { %v6453_v0 = vld [vmem:[%s9754_s1] sm:$0xf]  ;;  %s5863_s28 = sshll.u32 %s10161_s16, 4  ;;  %s5867_s26 = sshll.u32 %s10161_s16, 6 }
  0x21   : > { %s9757_s4 = sld [smem:[#allocation137_spill]]  ;;  %s6496_s2 = scalar_lea.vmem %s9597_s9, %s5863_s28 }
  0x22   : > { %s9758_s5 = sld [smem:[#allocation138_spill]]  ;;  %s6501_s23 = scalar_lea.vmem %s9598_s10, %s5863_s28 }
  0x23   : > { %s6460_s20 = scalar_lea.vmem %s9755_s0, %s5862_s17  ;;  %s9759_s6 = sld [smem:[#allocation139_spill]] }
  0x24   : > { %s6466_s14 = scalar_lea.vmem %s9756_s3, %s5863_s28  ;;  %s9760_s7 = sld [smem:[#allocation140_spill]] }
  0x25   : > { %s9761_s8 = sld [smem:[#allocation141_spill]]  ;;  %s5871_s18 = sshll.u32 %s722_s29, 3 }
  0x26   : > { %p5676_p9 = scmp.ne.s32.totalorder %s6252_s21, 0 }
  0x27   : > { %s6471_s1 = scalar_lea.vmem %s9757_s4, %s5863_s28  ;;  %s9762_s13 = sld [smem:[#allocation135_spill]] (!%p5676_p9) }
  0x28   : > { %s6476_s17 = scalar_lea.vmem %s9758_s5, %s5863_s28  ;;  %s6281_s27 = smov (!%p5676_p9), 112  }
  0x29   : > { %s6481_s19 = scalar_lea.vmem %s9759_s6, %s5863_s28  ;;  %s5673_s6 = sshll.u32 %s722_s29, 2 }
  0x2a   : > { %s6486_s24 = scalar_lea.vmem %s9760_s7, %s5867_s26  ;;  %s6506_s7 = scalar_lea.vmem %s9599_s11, %s5871_s18 }
  0x2b   : > { %s6491_s15 = scalar_lea.vmem %s9761_s8, %s5867_s26  ;;  %s732_s3 = sadd.s32 %s5674_s30, %s5673_s6 }
  0x2c   : > { %s5675_s26 = sshll.u32 %s732_s3, 2  ;;  %739 = sbr.rel (%p5676_p9) target bundleno = 574 (0x23e), region = 72 }
  0x2d   : > { %s6511_s4 = scalar_lea.vmem %s9600_s12, %s5675_s26  ;;  %s6278_s6 = smov (!%p5676_p9), 120  }
  0x2e   : > { %s6279_s8 = smov (!%p5676_p9), 1   ;;  %s6282_s18 = smov (!%p5676_p9), 96  }
  0x2f   : > { %s6283_s0 = smov (!%p5676_p9), 104   ;;  %s6284_s16 = smov (!%p5676_p9), 88  }
  0x30   : > { %s6285_s3 = smov (!%p5676_p9), 72   ;;  %s6286_s26 = smov (!%p5676_p9), 80  }
  0x31   : > { %v6517_v1 = vld [vmem:[%s9762_s13] sm:$0xff]  ;;  %v741_v2 = vld [vmem:[%s6460_s20 + $0x8] sm:$0xff]  ;;  %v742_v3 = vld [vmem:[%s6460_s20 + $0x10] sm:$0xff]  ;;  %v748_v4 = vperm.slane %v6453_v0, 1  ;;  %v749_v5 = vperm.slane %v6453_v0, 2  ;;  %v750_v7 = vperm.slane %v6453_v0, 3  ;;  %v767_v19 = vlaneseq }
  0x32   : > { %789 = vrot.lane.b32.xlu0 %v6517_v1, %s6278_s6  ;;  %v743_v6 = vld [vmem:[%s6460_s20 + $0x18] sm:$0xff]  ;;  %v740_v8 = vld [vmem:[%s6460_s20] sm:$0xff]  ;;  %v747_v11 = vperm.slane %v6453_v0, 0  ;;  %v6544_v15 = vld [vmem:[%s9762_s13 + $0x8] sm:$0xff]  ;;  %s6280_s20 = smov 127   ;;  %s6287_s25 = smov 64  }
  0x33   : > { %v6527_v9 = vmul.f32 %v748_v4, %v741_v2  ;;  %v6529_v10 = vmul.f32 %v749_v5, %v742_v3  ;;  %v6532_v12 = vmul.f32 %v750_v7, %v743_v6  ;;  %vm793_vm0 = vcmask 64512   ;;  %s6288_s5 = smov 20   ;;  %s6290_s28 = smov 108  }
  0x34   : > { %v6536_v14 = vmul.f32 %v747_v11, %v740_v8  ;;  %v6570_v21 = vand.u32 127, %v767_v19 }
  0x35   : > { %v5988_v13 = vpack.i.bf16 %v6529_v10, %v6527_v9  ;;  %836 = vmatpush.msra.mxu1 %v6527_v9  ;;  %859 = vmatpush.msra.mxu2 %v6529_v10 }
  0x36   : > { %882 = vmatpush.msra.mxu3 %v6532_v12  ;;  %759 = vrot.lane.b32.xlu2 %v6536_v14, %s6279_s8  ;;  %v5993_v16 = vpack.i.bf16 %v6529_v10, %v6536_v14  ;;  %vm769_vm1 = vcmp.lt.s32.totalorder %v6570_v21, 1  ;;  %vm782_vm2 = vcmp.lt.s32.totalorder %v6570_v21, 127  ;;  %vm1110_vm3 = vcmp.lt.s32.totalorder %v6570_v21, 20 }
  0x37   : > { %5989 = vrot.lane.b32.xlu1 %v5988_v13, %s6279_s8  ;;  %813 = vmatpush.msra.mxu0 %v6536_v14  ;;  %vm1759_vm4 = vcmp.lt.s32.totalorder %v6570_v21, 108 }
  0x3a   : > { %791 = vrot.lane.b32.xlu0 %v6544_v15, %s6278_s6 }
  0x3e   : > { %5994 = vrot.lane.b32.xlu2 %v5993_v16, %s6280_s20 }
  0x3f   : > { %765 = vrot.lane.b32.xlu1 %v6532_v12, %s6279_s8 }
  0x42   : > { %780 = vrot.lane.b32.xlu0 %v6532_v12, %s6280_s20 }
  0x46   : > { %776 = vrot.lane.b32.xlu2 %v6527_v9, %s6280_s20 }
  0x47   : > { %986 = vrot.lane.b32.xlu1 %v6517_v1, %s6281_s27 }
  0x4a   : > { %988 = vrot.lane.b32.xlu0 %v6544_v15, %s6281_s27 }
  0x4e   : > { %1121 = vrot.lane.b32.xlu2 %v6544_v15, %s6282_s18 }
  0x4f   : > { %1119 = vrot.lane.b32.xlu1 %v6517_v1, %s6282_s18 }
  0x52   : > { %1219 = vrot.lane.b32.xlu0 %v6517_v1, %s6283_s0 }
  0x56   : > { %1319 = vrot.lane.b32.xlu2 %v6517_v1, %s6284_s16 }
  0x57   : > { %1221 = vrot.lane.b32.xlu1 %v6544_v15, %s6283_s0 }
  0x5a   : > { %1321 = vrot.lane.b32.xlu0 %v6544_v15, %s6284_s16 }
  0x5e   : > { %1437 = vrot.lane.b32.xlu2 %v6544_v15, %s6285_s3 }
  0x5f   : > { %1435 = vrot.lane.b32.xlu1 %v6517_v1, %s6285_s3 }
  0x62   : > { %1535 = vrot.lane.b32.xlu0 %v6517_v1, %s6286_s26 }
  0x66   : > { %1635 = vrot.lane.b32.xlu2 %v6517_v1, %s6287_s25 }
  0x67   : > { %1537 = vrot.lane.b32.xlu1 %v6544_v15, %s6286_s26 }
  0x6a   : > { %1637 = vrot.lane.b32.xlu0 %v6544_v15, %s6287_s25 }
  0x90   : > { %v760_v17 = vpop.permute.xlu2 %759 }
  0x98   : > { %v5995_v18 = vpop.permute.xlu2 %5994 }
  0x99   : > { %v5997_v23 = vunpack.i.h.bf16 %v5995_v18  ;;  %v5996_v30 = vunpack.i.l.bf16 %v5995_v18 }
  0xa0   : > { %v777_v26 = vpop.permute.xlu2 %776 }
  0xa1   : > { %v6588_v31 = vsel %vm782_vm2, %v777_v26, %v5997_v23  ;;  %v6597_v33 = vsel %vm782_vm2, %v5996_v30, %v777_v26 }
  0xa4   : > { %v790_v20 = vpop.permute.xlu0 %789 }
  0xa5   : > { %5677 = vmatmul.msk.f32.vlgmr.msra.gmra.mxu0 %vm793_vm0, %v790_v20  ;;  %5679 = vmatmul.msk.f32.vlgmr.msra.gmra.mxu1 %vm793_vm0, %v790_v20 }
  0xa6   : > { %5681 = vmatmul.msk.f32.vlgmr.msra.gmra.mxu2 %vm793_vm0, %v790_v20  ;;  %5683 = vmatmul.msk.f32.vlgmr.msra.gmra.mxu3 %vm793_vm0, %v790_v20 }
  0xa8   : > { %v1122_v42 = vpop.permute.xlu2 %1121 }
  0xa9   : > { %v5990_v22 = vpop.permute.xlu1 %5989 }
  0xaa   : > { %v5992_v24 = vunpack.i.h.bf16 %v5990_v22  ;;  %v5991_v25 = vunpack.i.l.bf16 %v5990_v22 }
  0xac   : > { %v792_v27 = vpop.permute.xlu0 %791  ;;  %v6578_v28 = vsel %vm769_vm1, %v760_v17, %v5991_v25  ;;  %v6582_v29 = vsel %vm769_vm1, %v5991_v25, %v5992_v24 }
  0xad   : > { %5678 = vmatmul.msk.f32.gmra.mxu0 %vm793_vm0, %v792_v27  ;;  %5680 = vmatmul.msk.f32.gmra.mxu1 %vm793_vm0, %v792_v27 }
  0xae   : > { %5682 = vmatmul.msk.f32.gmra.mxu2 %vm793_vm0, %v792_v27  ;;  %5684 = vmatmul.msk.f32.gmra.mxu3 %vm793_vm0, %v792_v27 }
  0xaf   : > { %932 = vmatpush.msrb.mxu1 %v6578_v28  ;;  %955 = vmatpush.msrb.mxu2 %v6582_v29 }
  0xb0   : > { %v1320_v45 = vpop.permute.xlu2 %1319 }
  0xb1   : > { %1032 = vmatpush.msra.mxu1 %v6588_v31  ;;  %v766_v32 = vpop.permute.xlu1 %765 }
  0xb2   : > { %v6601_v34 = vsel %vm769_vm1, %v5992_v24, %v766_v32  ;;  %v6605_v35 = vsel %vm769_vm1, %v766_v32, %v760_v17 }
  0xb3   : > { %978 = vmatpush.msrb.mxu3 %v6601_v34  ;;  %909 = vmatpush.msrb.mxu0 %v6605_v35 }
  0xb4   : > { %v781_v36 = vpop.permute.xlu0 %780 }
  0xb5   : > { %1009 = vmatpush.msra.mxu0 %v6597_v33  ;;  %5687 = vmatmul.msk.f32.vlgmr.msrb.gmra.mxu1 %vm793_vm0, %v6517_v1  ;;  %v6616_v37 = vsel %vm782_vm2, %v5997_v23, %v781_v36  ;;  %v6620_v38 = vsel %vm782_vm2, %v781_v36, %v5996_v30 }
  0xb6   : > { %5685 = vmatmul.msk.f32.vlgmr.msrb.gmra.mxu0 %vm793_vm0, %v6517_v1  ;;  %5689 = vmatmul.msk.f32.vlgmr.msrb.gmra.mxu2 %vm793_vm0, %v6517_v1 }
  0xb7   : > { %5691 = vmatmul.msk.f32.vlgmr.msrb.gmra.mxu3 %vm793_vm0, %v6517_v1  ;;  %1055 = vmatpush.msra.mxu2 %v6616_v37 }
  0xb8   : > { %1078 = vmatpush.msra.mxu3 %v6620_v38  ;;  %1142 = vmatpush.msrb.mxu0 %v6536_v14  ;;  %v1438_v48 = vpop.permute.xlu2 %1437 }
  0xb9   : > { %1165 = vmatpush.msrb.mxu1 %v6527_v9  ;;  %1188 = vmatpush.msrb.mxu2 %v6529_v10  ;;  %v987_v39 = vpop.permute.xlu1 %986 }
  0xba   : > { %1211 = vmatpush.msrb.mxu3 %v6532_v12 }
  0xbc   : > { %v989_v40 = vpop.permute.xlu0 %988 }
  0xbd   : > { %5688 = vmatmul.msk.f32.gmra.mxu1 %vm793_vm0, %v6544_v15 }
  0xbe   : > { %5686 = vmatmul.msk.f32.gmra.mxu0 %vm793_vm0, %v6544_v15  ;;  %5690 = vmatmul.msk.f32.gmra.mxu2 %vm793_vm0, %v6544_v15 }
  0xbf   : > { %5692 = vmatmul.msk.f32.gmra.mxu3 %vm793_vm0, %v6544_v15 }
  0xc0   : > { %v1636_v51 = vpop.permute.xlu2 %1635 }
  0xc1   : > { %v1120_v41 = vpop.permute.xlu1 %1119 }
  0xc4   : > { %v1220_v43 = vpop.permute.xlu0 %1219 }
  0xc5   : > { %5695 = vmatmul.msk.f32.vlgmr.msra.gmra.mxu1 %vm793_vm0, %v987_v39 }
  0xc6   : > { %5693 = vmatmul.msk.f32.vlgmr.msra.gmra.mxu0 %vm793_vm0, %v987_v39  ;;  %5697 = vmatmul.msk.f32.vlgmr.msra.gmra.mxu2 %vm793_vm0, %v987_v39 }
  0xc7   : > { %5699 = vmatmul.msk.f32.vlgmr.msra.gmra.mxu3 %vm793_vm0, %v987_v39  ;;  %1242 = vmatpush.msra.mxu0 %v6605_v35 }
  0xc8   : > { %1265 = vmatpush.msra.mxu1 %v6578_v28  ;;  %1288 = vmatpush.msra.mxu2 %v6582_v29 }
  0xc9   : > { %1311 = vmatpush.msra.mxu3 %v6601_v34  ;;  %v1222_v44 = vpop.permute.xlu1 %1221 }
  0xcc   : > { %v1322_v46 = vpop.permute.xlu0 %1321 }
  0xcd   : > { %5696 = vmatmul.msk.f32.gmra.mxu1 %vm793_vm0, %v989_v40 }
  0xce   : > { %5694 = vmatmul.msk.f32.gmra.mxu0 %vm793_vm0, %v989_v40  ;;  %5698 = vmatmul.msk.f32.gmra.mxu2 %vm793_vm0, %v989_v40 }
  0xcf   : > { %5700 = vmatmul.msk.f32.gmra.mxu3 %vm793_vm0, %v989_v40 }
  0xd1   : > { %v1436_v47 = vpop.permute.xlu1 %1435 }
  0xd4   : > { %v1536_v49 = vpop.permute.xlu0 %1535 }
  0xd5   : > { %5703 = vmatmul.msk.f32.vlgmr.msrb.gmra.mxu1 %vm793_vm0, %v1120_v41 }
  0xd6   : > { %5701 = vmatmul.msk.f32.vlgmr.msrb.gmra.mxu0 %vm793_vm0, %v1120_v41  ;;  %5705 = vmatmul.msk.f32.vlgmr.msrb.gmra.mxu2 %vm793_vm0, %v1120_v41 }
  0xd7   : > { %5707 = vmatmul.msk.f32.vlgmr.msrb.gmra.mxu3 %vm793_vm0, %v1120_v41  ;;  %1342 = vmatpush.msrb.mxu0 %v6597_v33 }
  0xd8   : > { %1365 = vmatpush.msrb.mxu1 %v6588_v31  ;;  %1388 = vmatpush.msrb.mxu2 %v6616_v37 }
  0xd9   : > { %1411 = vmatpush.msrb.mxu3 %v6620_v38  ;;  %v1538_v50 = vpop.permute.xlu1 %1537 }
  0xdc   : > { %v1638_v54 = vpop.permute.xlu0 %1637 }
  0xdd   : > { %5704 = vmatmul.msk.f32.gmra.mxu1 %vm793_vm0, %v1122_v42 }
  0xde   : > { %5702 = vmatmul.msk.f32.gmra.mxu0 %vm793_vm0, %v1122_v42  ;;  %5706 = vmatmul.msk.f32.gmra.mxu2 %vm793_vm0, %v1122_v42 }
  0xdf   : > { %5708 = vmatmul.msk.f32.gmra.mxu3 %vm793_vm0, %v1122_v42 }
  0xe5   : > { %5711 = vmatmul.msk.f32.vlgmr.msra.gmra.mxu1 %vm793_vm0, %v1220_v43 }
  0xe6   : > { %5709 = vmatmul.msk.f32.vlgmr.msra.gmra.mxu0 %vm793_vm0, %v1220_v43  ;;  %5713 = vmatmul.msk.f32.vlgmr.msra.gmra.mxu2 %vm793_vm0, %v1220_v43 }
  0xe7   : > { %5715 = vmatmul.msk.f32.vlgmr.msra.gmra.mxu3 %vm793_vm0, %v1220_v43  ;;  %1458 = vmatpush.msra.mxu0 %v6536_v14 }
  0xe8   : > { %1481 = vmatpush.msra.mxu1 %v6527_v9  ;;  %1504 = vmatpush.msra.mxu2 %v6529_v10 }
  0xe9   : > { %1527 = vmatpush.msra.mxu3 %v6532_v12 }
  0xed   : > { %5712 = vmatmul.msk.f32.gmra.mxu1 %vm793_vm0, %v1222_v44 }
  0xee   : > { %5710 = vmatmul.msk.f32.gmra.mxu0 %vm793_vm0, %v1222_v44  ;;  %5714 = vmatmul.msk.f32.gmra.mxu2 %vm793_vm0, %v1222_v44 }
  0xef   : > { %5716 = vmatmul.msk.f32.gmra.mxu3 %vm793_vm0, %v1222_v44 }
  0xf5   : > { %5719 = vmatmul.msk.f32.vlgmr.msrb.gmra.mxu1 %vm793_vm0, %v1320_v45 }
  0xf6   : > { %5717 = vmatmul.msk.f32.vlgmr.msrb.gmra.mxu0 %vm793_vm0, %v1320_v45  ;;  %5721 = vmatmul.msk.f32.vlgmr.msrb.gmra.mxu2 %vm793_vm0, %v1320_v45 }
  0xf7   : > { %5723 = vmatmul.msk.f32.vlgmr.msrb.gmra.mxu3 %vm793_vm0, %v1320_v45  ;;  %1558 = vmatpush.msrb.mxu0 %v6605_v35 }
  0xf8   : > { %1581 = vmatpush.msrb.mxu1 %v6578_v28  ;;  %1604 = vmatpush.msrb.mxu2 %v6582_v29 }
  0xf9   : > { %1627 = vmatpush.msrb.mxu3 %v6601_v34 }
  0xfd   : > { %5720 = vmatmul.msk.f32.gmra.mxu1 %vm793_vm0, %v1322_v46 }
  0xfe   : > { %5718 = vmatmul.msk.f32.gmra.mxu0 %vm793_vm0, %v1322_v46  ;;  %5722 = vmatmul.msk.f32.gmra.mxu2 %vm793_vm0, %v1322_v46 }
  0xff   : > { %5724 = vmatmul.msk.f32.gmra.mxu3 %vm793_vm0, %v1322_v46 }
 0x105   : > { %5727 = vmatmul.msk.f32.vlgmr.msra.gmra.mxu1 %vm793_vm0, %v1436_v47 }
 0x106   : > { %5725 = vmatmul.msk.f32.vlgmr.msra.gmra.mxu0 %vm793_vm0, %v1436_v47  ;;  %5729 = vmatmul.msk.f32.vlgmr.msra.gmra.mxu2 %vm793_vm0, %v1436_v47 }
 0x107   : > { %5731 = vmatmul.msk.f32.vlgmr.msra.gmra.mxu3 %vm793_vm0, %v1436_v47  ;;  %1658 = vmatpush.msra.mxu0 %v6597_v33 }
 0x108   : > { %1681 = vmatpush.msra.mxu1 %v6588_v31  ;;  %1704 = vmatpush.msra.mxu2 %v6616_v37 }
 0x109   : > { %1727 = vmatpush.msra.mxu3 %v6620_v38 }
 0x10d   : > { %5728 = vmatmul.msk.f32.gmra.mxu1 %vm793_vm0, %v1438_v48 }
 0x10e   : > { %5726 = vmatmul.msk.f32.gmra.mxu0 %vm793_vm0, %v1438_v48  ;;  %5730 = vmatmul.msk.f32.gmra.mxu2 %vm793_vm0, %v1438_v48 }
 0x10f   : > { %5732 = vmatmul.msk.f32.gmra.mxu3 %vm793_vm0, %v1438_v48 }
 0x115   : > { %5735 = vmatmul.msk.f32.vlgmr.msrb.gmra.mxu1 %vm793_vm0, %v1536_v49 }
 0x116   : > { %5733 = vmatmul.msk.f32.vlgmr.msrb.gmra.mxu0 %vm793_vm0, %v1536_v49  ;;  %5737 = vmatmul.msk.f32.vlgmr.msrb.gmra.mxu2 %vm793_vm0, %v1536_v49 }
 0x117   : > { %5739 = vmatmul.msk.f32.vlgmr.msrb.gmra.mxu3 %vm793_vm0, %v1536_v49 }
 0x11d   : > { %5736 = vmatmul.msk.f32.gmra.mxu1 %vm793_vm0, %v1538_v50 }
 0x11e   : > { %5734 = vmatmul.msk.f32.gmra.mxu0 %vm793_vm0, %v1538_v50  ;;  %5738 = vmatmul.msk.f32.gmra.mxu2 %vm793_vm0, %v1538_v50 }
 0x11f   : > { %5740 = vmatmul.msk.f32.gmra.mxu3 %vm793_vm0, %v1538_v50 }
 0x122   : > { %v815_v52 = vpop.f32.mrf.mxu0  ;;  %v838_v53 = vpop.f32.mrf.mxu1 }
 0x125   : > { %5743 = vmatmul.msk.f32.vlgmr.msra.gmra.mxu1 %vm793_vm0, %v1636_v51 }
 0x126   : > { %5741 = vmatmul.msk.f32.vlgmr.msra.gmra.mxu0 %vm793_vm0, %v1636_v51  ;;  %5745 = vmatmul.msk.f32.vlgmr.msra.gmra.mxu2 %vm793_vm0, %v1636_v51 }
 0x127   : > { %5747 = vmatmul.msk.f32.vlgmr.msra.gmra.mxu3 %vm793_vm0, %v1636_v51 }
 0x129   : > { %v861_v55 = vpop.f32.mrf.mxu2  ;;  %v884_v56 = vpop.f32.mrf.mxu3 }
 0x12a   : > { %v818_v57 = vpop.f32.mrf.mxu0  ;;  %v841_v58 = vpop.f32.mrf.mxu1 }
 0x12d   : > { %5744 = vmatmul.msk.f32.gmra.mxu1 %vm793_vm0, %v1638_v54 }
 0x12e   : > { %5742 = vmatmul.msk.f32.gmra.mxu0 %vm793_vm0, %v1638_v54  ;;  %5746 = vmatmul.msk.f32.gmra.mxu2 %vm793_vm0, %v1638_v54 }
 0x12f   : > { %5748 = vmatmul.msk.f32.gmra.mxu3 %vm793_vm0, %v1638_v54 }
 0x131   : > { %v864_v59 = vpop.f32.mrf.mxu2  ;;  %v887_v60 = vpop.f32.mrf.mxu3 }
 0x132   : > { %v934_v62 = vpop.f32.mrf.mxu1 }
 0x133   : > { %v911_v61 = vpop.f32.mrf.mxu0  ;;  %v935_v6 = vadd.f32 %v934_v62, %v838_v53 }
 0x134   : > { %v912_v5 = vadd.f32 %v911_v61, %v815_v52 }
 0x139   : > { %v957_v63 = vpop.f32.mrf.mxu2 }
 0x13a   : > { %v980_v2 = vpop.f32.mrf.mxu3  ;;  %v937_v4 = vpop.f32.mrf.mxu1  ;;  %v958_v13 = vadd.f32 %v957_v63, %v861_v55 }
 0x13b   : > { %v914_v3 = vpop.f32.mrf.mxu0  ;;  %v981_v14 = vadd.f32 %v980_v2, %v884_v56  ;;  %v938_v25 = vadd.f32 %v937_v4, %v841_v58 }
 0x13c   : > { %v915_v23 = vadd.f32 %v914_v3, %v818_v57 }
 0x141   : > { %v960_v7 = vpop.f32.mrf.mxu2 }
 0x142   : > { %v983_v8 = vpop.f32.mrf.mxu3  ;;  %v1034_v10 = vpop.f32.mrf.mxu1  ;;  %v961_v24 = vadd.f32 %v960_v7, %v864_v59 }
 0x143   : > { %v1011_v9 = vpop.f32.mrf.mxu0  ;;  %v1087_v12 = vadd.f32 %v1034_v10, %v935_v6  ;;  %v984_v33 = vadd.f32 %v983_v8, %v887_v60 }
 0x144   : > { %v1086_v11 = vadd.f32 %v1011_v9, %v912_v5 }
 0x145   : > { %1098 = vrot.lane.b32.xlu0 %v1087_v12, %s6288_s5 }
 0x146   : > { %1094 = vrot.lane.b32.xlu1 %v1086_v11, %s6288_s5 }
 0x149   : > { %v1057_v16 = vpop.f32.mrf.mxu2 }
 0x14a   : > { %v1080_v17 = vpop.f32.mrf.mxu3  ;;  %v1088_v18 = vadd.f32 %v1057_v16, %v958_v13  ;;  %v1037_v20 = vpop.f32.mrf.mxu1 }
 0x14b   : > { %v1014_v19 = vpop.f32.mrf.mxu0  ;;  %v1089_v22 = vadd.f32 %v1080_v17, %v981_v14  ;;  %v1091_v32 = vadd.f32 %v1037_v20, %v938_v25 }
 0x14c   : > { %1102 = vrot.lane.b32.xlu2 %v1088_v18, %s6288_s5  ;;  %v1090_v28 = vadd.f32 %v1014_v19, %v915_v23 }
 0x14e   : > { %1106 = vrot.lane.b32.xlu1 %v1089_v22, %s6288_s5 }
 0x151   : > { %v1060_v26 = vpop.f32.mrf.mxu2 }
 0x152   : > { %v1083_v27 = vpop.f32.mrf.mxu3  ;;  %v1092_v29 = vadd.f32 %v1060_v26, %v961_v24  ;;  %v1167_v31 = vpop.f32.mrf.mxu1 }
 0x153   : > { %v1144_v30 = vpop.f32.mrf.mxu0  ;;  %v1093_v36 = vadd.f32 %v1083_v27, %v984_v33  ;;  %v6289_v27 = vmov 72  }
 0x154   : > { %1104 = vrot.lane.b32.xlu0 %v1092_v29, %s6288_s5  ;;  %1096 = vrot.lane.b32.xlu2 %v1090_v28, %s6288_s5 }
 0x155   : > { %5999 = vset.pattern.permute.xlu0 %v6289_v27  ;;  %5998 = vset.pattern.permute.xlu2 %v6289_v27 }
 0x156   : > { %1100 = vrot.lane.b32.xlu1 %v1091_v32, %s6288_s5 }
 0x159   : > { %v1190_v34 = vpop.f32.mrf.mxu2 }
 0x15a   : > { %v1213_v35 = vpop.f32.mrf.mxu3  ;;  %v1170_v38 = vpop.f32.mrf.mxu1 }
 0x15b   : > { %v1147_v37 = vpop.f32.mrf.mxu0 }
 0x15c   : > { %1108 = vrot.lane.b32.xlu2 %v1093_v36, %s6288_s5 }
 0x161   : > { %v1193_v39 = vpop.f32.mrf.mxu2 }
 0x162   : > { %v1216_v40 = vpop.f32.mrf.mxu3  ;;  %v1267_v42 = vpop.f32.mrf.mxu1 }
 0x163   : > { %v1244_v41 = vpop.f32.mrf.mxu0  ;;  %v1268_v44 = vadd.f32 %v1267_v42, %v1167_v31 }
 0x164   : > { %v1245_v43 = vadd.f32 %v1244_v41, %v1144_v30 }
 0x169   : > { %v1290_v45 = vpop.f32.mrf.mxu2 }
 0x16a   : > { %v1313_v46 = vpop.f32.mrf.mxu3  ;;  %v1291_v47 = vadd.f32 %v1290_v45, %v1190_v34  ;;  %v1270_v50 = vpop.f32.mrf.mxu1 }
 0x16b   : > { %v1314_v48 = vadd.f32 %v1313_v46, %v1213_v35  ;;  %v1247_v49 = vpop.f32.mrf.mxu0  ;;  %v1271_v52 = vadd.f32 %v1270_v50, %v1170_v38 }
 0x16c   : > { %v1248_v51 = vadd.f32 %v1247_v49, %v1147_v37 }
 0x171   : > { %v1293_v53 = vpop.f32.mrf.mxu2 }
 0x172   : > { %v1316_v54 = vpop.f32.mrf.mxu3  ;;  %v1294_v55 = vadd.f32 %v1293_v53, %v1193_v39  ;;  %v1367_v58 = vpop.f32.mrf.mxu1 }
 0x173   : > { %v1317_v56 = vadd.f32 %v1316_v54, %v1216_v40  ;;  %v1344_v57 = vpop.f32.mrf.mxu0  ;;  %v6726_v60 = vadd.f32 %v1367_v58, %v1268_v44 }
 0x174   : > { %v6724_v59 = vadd.f32 %v1344_v57, %v1245_v43 }
 0x179   : > { %v1390_v61 = vpop.f32.mrf.mxu2 }
 0x17a   : > { %v1413_v62 = vpop.f32.mrf.mxu3  ;;  %v6728_v63 = vadd.f32 %v1390_v61, %v1291_v47  ;;  %v1370_v4 = vpop.f32.mrf.mxu1 }
 0x17b   : > { %v6730_v2 = vadd.f32 %v1413_v62, %v1314_v48  ;;  %v1347_v3 = vpop.f32.mrf.mxu0  ;;  %v6734_v6 = vadd.f32 %v1370_v4, %v1271_v52 }
 0x17c   : > { %v6732_v5 = vadd.f32 %v1347_v3, %v1248_v51 }
 0x181   : > { %v1393_v7 = vpop.f32.mrf.mxu2 }
 0x182   : > { %v1416_v8 = vpop.f32.mrf.mxu3  ;;  %v6736_v9 = vadd.f32 %v1393_v7, %v1294_v55  ;;  %v1483_v12 = vpop.f32.mrf.mxu1 }
 0x183   : > { %v6738_v10 = vadd.f32 %v1416_v8, %v1317_v56  ;;  %v1460_v11 = vpop.f32.mrf.mxu0 }
 0x189   : > { %v1506_v13 = vpop.f32.mrf.mxu2 }
 0x18a   : > { %v1529_v14 = vpop.f32.mrf.mxu3  ;;  %v1486_v17 = vpop.f32.mrf.mxu1 }
 0x18b   : > { %v1463_v16 = vpop.f32.mrf.mxu0 }
 0x191   : > { %v1509_v18 = vpop.f32.mrf.mxu2 }
 0x192   : > { %v1532_v19 = vpop.f32.mrf.mxu3  ;;  %v1583_v22 = vpop.f32.mrf.mxu1 }
 0x193   : > { %v1560_v20 = vpop.f32.mrf.mxu0  ;;  %v1584_v29 = vadd.f32 %v1583_v22, %v1483_v12 }
 0x194   : > { %v1561_v28 = vadd.f32 %v1560_v20, %v1460_v11 }
 0x199   : > { %v1606_v23 = vpop.f32.mrf.mxu2 }
 0x19a   : > { %v1629_v24 = vpop.f32.mrf.mxu3  ;;  %v1586_v26 = vpop.f32.mrf.mxu1  ;;  %v1607_v36 = vadd.f32 %v1606_v23, %v1506_v13 }
 0x19b   : > { %v1563_v25 = vpop.f32.mrf.mxu0  ;;  %v1630_v37 = vadd.f32 %v1629_v24, %v1529_v14  ;;  %v1587_v46 = vadd.f32 %v1586_v26, %v1486_v17 }
 0x19c   : > { %v1564_v43 = vadd.f32 %v1563_v25, %v1463_v16 }
 0x1a1   : > { %v1609_v30 = vpop.f32.mrf.mxu2 }
 0x1a2   : > { %v1632_v31 = vpop.f32.mrf.mxu3  ;;  %v1683_v33 = vpop.f32.mrf.mxu1  ;;  %v1610_v44 = vadd.f32 %v1609_v30, %v1509_v18 }
 0x1a3   : > { %v1660_v32 = vpop.f32.mrf.mxu0  ;;  %v1736_v35 = vadd.f32 %v1683_v33, %v1584_v29  ;;  %v1633_v52 = vadd.f32 %v1632_v31, %v1532_v19 }
 0x1a4   : > { %v1735_v34 = vadd.f32 %v1660_v32, %v1561_v28 }
 0x1a5   : > { %1747 = vrot.lane.b32.xlu2 %v1736_v35, %s6290_s28 }
 0x1a6   : > { %1743 = vrot.lane.b32.xlu0 %v1735_v34, %s6290_s28  ;;  %v1103_v54 = vpop.permute.xlu2 %1102 }
 0x1a9   : > { %v1706_v38 = vpop.f32.mrf.mxu2 }
 0x1aa   : > { %v1729_v39 = vpop.f32.mrf.mxu3  ;;  %v1737_v40 = vadd.f32 %v1706_v38, %v1607_v36  ;;  %v1686_v45 = vpop.f32.mrf.mxu1 }
 0x1ab   : > { %v1738_v41 = vadd.f32 %v1729_v39, %v1630_v37  ;;  %v1663_v42 = vpop.f32.mrf.mxu0  ;;  %v1740_v50 = vadd.f32 %v1686_v45, %v1587_v46 }
 0x1ac   : > { %1751 = vrot.lane.b32.xlu1 %v1737_v40, %s6290_s28  ;;  %v1739_v48 = vadd.f32 %v1663_v42, %v1564_v43 }
 0x1ae   : > { %1755 = vrot.lane.b32.xlu0 %v1738_v41, %s6290_s28  ;;  %v1097_v55 = vpop.permute.xlu2 %1096 }
 0x1b1   : > { %v1709_v47 = vpop.f32.mrf.mxu2 }
 0x1b2   : > { %v1741_v49 = vadd.f32 %v1709_v47, %v1610_v44  ;;  %v1732_v51 = vpop.f32.mrf.mxu3 }
 0x1b3   : > { %v1742_v53 = vadd.f32 %v1732_v51, %v1633_v52 }
 0x1b4   : > { %1753 = vrot.lane.b32.xlu2 %v1741_v49, %s6290_s28  ;;  %1745 = vrot.lane.b32.xlu1 %v1739_v48, %s6290_s28 }
 0x1b6   : > { %1749 = vrot.lane.b32.xlu0 %v1740_v50, %s6290_s28  ;;  %v1109_v56 = vpop.permute.xlu2 %1108 }
 0x1b7   : > { %v1099_v58 = vpop.permute.xlu0 %1098  ;;  %v1118_v40 = vsel %vm1110_vm3, %v1109_v56, %v1097_v55 }
 0x1b8   : > { %v1095_v57 = vpop.permute.xlu1 %1094  ;;  %v1113_v17 = vsel %vm1110_vm3, %v1099_v58, %v1103_v54  ;;  %v1431_v46 = vadd.f32 %v6732_v5, %v1118_v40 }
 0x1b9   : > { %v1115_v14 = vsel %vm1110_vm3, %v1095_v57, %v1099_v58  ;;  %v1429_v22 = vadd.f32 %v6728_v63, %v1113_v17 }
 0x1bc   : > { %1757 = vrot.lane.b32.xlu1 %v1742_v53, %s6290_s28  ;;  %1777 = vperm.xlu2 %5998, %v6517_v1  }
 0x1be   : > { %1781 = vperm.xlu0 %5999, %v6544_v15  }
 0x1c0   : > { %v1107_v62 = vpop.permute.xlu1 %1106 }
 0x1c1   : > { %v1117_v7 = vsel %vm1110_vm3, %v1107_v62, %v1095_v57  ;;  %v1111_v18 = vsel %vm1110_vm3, %v1103_v54, %v1107_v62 }
 0x1c2   : > { %v1427_v15 = vadd.f32 %v6724_v59, %v1117_v7  ;;  %v1428_v59 = vadd.f32 %v6726_v60, %v1115_v14  ;;  %v1430_v23 = vadd.f32 %v6730_v2, %v1111_v18 }
 0x1c6   : > { %v1105_v3 = vpop.permute.xlu0 %1104 }
 0x1c7   : > { %v1112_v42 = vsel %vm1110_vm3, %v1105_v3, %v1109_v56 }
 0x1c8   : > { %v1101_v1 = vpop.permute.xlu1 %1100  ;;  %v1434_v48 = vadd.f32 %v6738_v10, %v1112_v42 }
 0x1c9   : > { %v1116_v41 = vsel %vm1110_vm3, %v1097_v55, %v1101_v1  ;;  %v1114_v43 = vsel %vm1110_vm3, %v1101_v1, %v1105_v3 }
 0x1ca   : > { %v1432_v47 = vadd.f32 %v6734_v6, %v1116_v41  ;;  %v1433_v49 = vadd.f32 %v6736_v9, %v1114_v43 }
 0x1ff   : > { %v1748_v61 = vpop.permute.xlu2 %1747 }
 0x20e   : > { %v6742_v4 = vpop.permute.xlu2 %1753 }
 0x216   : > { %v1778_v12 = vpop.permute.xlu2 %1777 }
 0x218   : > { %v1744_v8 = vpop.permute.xlu0 %1743 }
 0x219   : > { %v1764_v11 = vsel %vm1759_vm4, %v1744_v8, %v1748_v61 }
 0x21a   : > { %v1768_v13 = vadd.f32 %v1764_v11, %v1427_v15 }
 0x21c   : > { %v1784_v16 = vadd.f32 %v1778_v12, %v1768_v13 }
 0x21e   : > { %vm1792_vm5 = vcmp.ge.f32.partialorder %v1784_v16, 0.0  ;;  %v1800_v19 = vmul.f32 0.2, %v1784_v16  ;;  %v1752_v20 = vpop.permute.xlu1 %1751 }
 0x21f   : > { %v1762_v25 = vsel %vm1759_vm4, %v1748_v61, %v1752_v20 }
 0x220   : > { %v1808_v24 = vsel %vm1792_vm5, %v1784_v16, %v1800_v19  ;;  %v1756_v26 = vpop.permute.xlu0 %1755  ;;  %v1769_v27 = vadd.f32 %v1762_v25, %v1428_v59 }
 0x221   : > { %1816 = vst [vmem:[#allocation2 + $0x30] sm:$0xff] %v1808_v24  ;;  %v1760_v28 = vsel %vm1759_vm4, %v1752_v20, %v1756_v26  ;;  %v1766_v29 = vsel %vm1759_vm4, %v1756_v26, %v1744_v8 }
 0x222   : > { %1824 = vst [vmem:[#allocation3] sm:$0xff] %v1808_v24  ;;  %v1770_v60 = vadd.f32 %v1760_v28, %v1429_v22  ;;  %v1771_v30 = vadd.f32 %v1766_v29, %v1430_v23  ;;  %v1785_v31 = vadd.f32 %v1778_v12, %v1769_v27 }
 0x224   : > { %v1786_v63 = vadd.f32 %v1778_v12, %v1770_v60  ;;  %v1787_v32 = vadd.f32 %v1778_v12, %v1771_v30  ;;  %vm1793_vm6 = vcmp.ge.f32.partialorder %v1785_v31, 0.0  ;;  %v1801_v2 = vmul.f32 0.2, %v1785_v31 }
 0x226   : > { %vm1794_vm7 = vcmp.ge.f32.partialorder %v1786_v63, 0.0  ;;  %vm1795_vm8 = vcmp.ge.f32.partialorder %v1787_v32, 0.0  ;;  %v1802_v33 = vmul.f32 0.2, %v1786_v63  ;;  %v1803_v34 = vmul.f32 0.2, %v1787_v32  ;;  %v1746_v36 = vpop.permute.xlu1 %1745 }
 0x227   : > { %v1809_v35 = vsel %vm1793_vm6, %v1785_v31, %v1801_v2 }
 0x228   : > { %1817 = vst [vmem:[#allocation2] sm:$0xff] %v1809_v35  ;;  %v1810_v37 = vsel %vm1794_vm7, %v1786_v63, %v1802_v33  ;;  %v1811_v38 = vsel %vm1795_vm8, %v1787_v32, %v1803_v34  ;;  %v1750_v39 = vpop.permute.xlu0 %1749 }
 0x229   : > { %1825 = vst [vmem:[#allocation3 + $0x18] sm:$0xff] %v1809_v35  ;;  %v1763_v44 = vsel %vm1759_vm4, %v1750_v39, %v6742_v4  ;;  %v1765_v45 = vsel %vm1759_vm4, %v1746_v36, %v1750_v39 }
 0x22a   : > { %1818 = vst [vmem:[#allocation2 + $0x18] sm:$0xff] %v1810_v37  ;;  %v1772_v50 = vadd.f32 %v1765_v45, %v1431_v46  ;;  %v1773_v51 = vadd.f32 %v1763_v44, %v1432_v47 }
 0x22b   : > { %1819 = vst [vmem:[#allocation2 + $0x10] sm:$0xff] %v1811_v38 }
 0x22c   : > { %1826 = vst [vmem:[#allocation3 + $0x10] sm:$0xff] %v1810_v37 }
 0x22d   : > { %1827 = vst [vmem:[#allocation3 + $0x20] sm:$0xff] %v1811_v38 }
 0x22e   : > { %v1758_v52 = vpop.permute.xlu1 %1757 }
 0x22f   : > { %v1761_v53 = vsel %vm1759_vm4, %v6742_v4, %v1758_v52  ;;  %v1767_v54 = vsel %vm1759_vm4, %v1758_v52, %v1746_v36 }
 0x230   : > { %v1782_v55 = vpop.permute.xlu0 %1781  ;;  %v1774_v56 = vadd.f32 %v1761_v53, %v1433_v49  ;;  %v1775_v5 = vadd.f32 %v1767_v54, %v1434_v48 }
 0x231   : > { %v1788_v57 = vadd.f32 %v1782_v55, %v1772_v50  ;;  %v1789_v6 = vadd.f32 %v1782_v55, %v1773_v51 }
 0x232   : > { %v1790_v58 = vadd.f32 %v1782_v55, %v1774_v56  ;;  %v1791_v61 = vadd.f32 %v1782_v55, %v1775_v5 }
 0x233   : > { %vm1796_vm9 = vcmp.ge.f32.partialorder %v1788_v57, 0.0  ;;  %vm1797_vm10 = vcmp.ge.f32.partialorder %v1789_v6, 0.0  ;;  %v1804_v9 = vmul.f32 0.2, %v1788_v57  ;;  %v1805_v10 = vmul.f32 0.2, %v1789_v6 }
 0x234   : > { %vm1798_vm11 = vcmp.ge.f32.partialorder %v1790_v58, 0.0  ;;  %vm1799_vm12 = vcmp.ge.f32.partialorder %v1791_v61, 0.0  ;;  %v1806_v62 = vmul.f32 0.2, %v1790_v58  ;;  %v1807_v3 = vmul.f32 0.2, %v1791_v61 }
 0x235   : > { %v1812_v7 = vsel %vm1796_vm9, %v1788_v57, %v1804_v9  ;;  %v1813_v4 = vsel %vm1797_vm10, %v1789_v6, %v1805_v10 }
 0x236   : > { %v1814_v1 = vsel %vm1798_vm11, %v1790_v58, %v1806_v62  ;;  %v1815_v21 = vsel %vm1799_vm12, %v1791_v61, %v1807_v3  ;;  %1820 = vst [vmem:[#allocation2 + $0x8] sm:$0xff] %v1812_v7 }
 0x237   : > { %1821 = vst [vmem:[#allocation2 + $0x20] sm:$0xff] %v1813_v4 }
 0x238   : > { %1822 = vst [vmem:[#allocation2 + $0x28] sm:$0xff] %v1814_v1 }
 0x239   : > { %1823 = vst [vmem:[#allocation2 + $0x38] sm:$0xff] %v1815_v21 }
 0x23a   : > { %1828 = vst [vmem:[#allocation3 + $0x28] sm:$0xff] %v1812_v7 }
 0x23b   : > { %1829 = vst [vmem:[#allocation3 + $0x8] sm:$0xff] %v1813_v4 }
 0x23c   : > { %1830 = vst [vmem:[#allocation3 + $0x30] sm:$0xff] %v1814_v1 }
 0x23d   : > { %1831 = vst [vmem:[#allocation3 + $0x38] sm:$0xff] %v1815_v21 }
 0x23e PF: > { %v6789_v15 = vld [vmem:[%s6466_s14 + $0x8] sm:$0xff]  ;;  %v6794_v11 = vperm.slane %v6453_v0, 2  ;;  %v9616_v13 = vmov 0   ;;  %v6800_v14 = vperm.slane %v6453_v0, 0  ;;  %v9614_v17 = vmov 1   ;;  %s6293_s6 = smov 1  }
 0x23f   : > { %6000 = vset.pattern.permute.xlu2 %v9616_v13  ;;  %6003 = vset.pattern.permute.xlu0 %v9614_v17  ;;  %v6815_v19 = vperm.slane %v6453_v0, 3  ;;  %v6822_v20 = vperm.slane %v6453_v0, 1  ;;  %v9620_v23 = vmov 2   ;;  %v6839_v0 = vld [vmem:[#allocation3 + $0x10] sm:$0xff]  ;;  %v6843_v26 = vld [vmem:[#allocation3 + $0x18] sm:$0xff]  ;;  %v6845_v27 = vld [vmem:[#allocation3] sm:$0xff]  ;;  %v1877_v49 = vlaneseq }
 0x240   : > { %9763 = vst [vmem:[#allocation11_spill] sm:$0xff] %v6794_v11  ;;  %1920 = vperm.xlu2 %6000, %v6789_v15   ;;  %6004 = vset.pattern.permute.xlu1 %v9620_v23  ;;  %v6849_v28 = vmul.f32 %v6794_v11, %v6839_v0  ;;  %v6857_v60 = vmul.f32 %v6800_v14, %v6845_v27  ;;  %v6866_v30 = vld [vmem:[#allocation3 + $0x20] sm:$0xff]  ;;  %s6295_s8 = smov 127   ;;  %v1842_v63 = vld [vmem:[%s6466_s14] sm:$0xff]  ;;  %v9612_v32 = vmov 6   ;;  %v9610_v2 = vmov 7  }
 0x241   : > { %v6796_v12 = vld [vmem:[#allocation3 + $0x28] sm:$0xff]  ;;  %9765 = vst [vmem:[#allocation13_spill] sm:$0xff] %v6800_v14  ;;  %v6853_v29 = vmul.f32 %v6822_v20, %v6843_v26  ;;  %v6870_v31 = vmul.f32 %v6815_v19, %v6866_v30  ;;  %v9622_v33 = vmov 3   ;;  %v9608_v34 = vmov 8   ;;  %s6302_s14 = smov 20   ;;  %s6303_s29 = smov 108  }
 0x242   : > { %9764 = vst [vmem:[#allocation12_spill] sm:$0xff] %v6796_v12  ;;  %v6810_v18 = vmul.f32 %v6800_v14, %v6796_v12  ;;  %v6824_v22 = vld [vmem:[#allocation3 + $0x8] sm:$0xff]  ;;  %v9618_v35 = vmov 5   ;;  %v9606_v36 = vmov 4   ;;  %v6933_v52 = vand.u32 127, %v1877_v49  ;;  %s6323_s30 = smov 40  }
 0x243   : > { %v6791_v8 = vld [vmem:[#allocation3 + $0x30] sm:$0xff]  ;;  %9766 = vst [vmem:[#allocation14_spill] sm:$0xff] %v6815_v19  ;;  %v6833_v25 = vmul.f32 %v6822_v20, %v6824_v22  ;;  %vm2199_vm1 = vcmask 130048   ;;  %s6324_s20 = smov 88   ;;  %p5821_p10 = scmp.ne.s32.totalorder %s6252_s21, 2 }
 0x244   : > { %v6805_v16 = vmul.f32 %v6794_v11, %v6791_v8  ;;  %1863 = vrot.lane.b32.xlu0 %v6810_v18, %s6293_s6  ;;  %v6819_v59 = vld [vmem:[#allocation3 + $0x38] sm:$0xff]  ;;  %9767 = vst [vmem:[#allocation15_spill] sm:$0xff] %v6822_v20  ;;  %vm1879_vm13 = vcmp.lt.s32.totalorder %v6933_v52, 1  ;;  %vm1904_vm14 = vcmp.lt.s32.totalorder %v6933_v52, 127  ;;  %vm1995_vm15 = vcmp.lt.s32.totalorder %v6933_v52, 20  ;;  %s6326_s21 = smov (!%p5821_p10), 112  }
 0x245   : > { %9768 = vst [vmem:[#allocation16_spill] sm:$0xff] %v6824_v22  ;;  %v6829_v24 = vmul.f32 %v6815_v19, %v6819_v59  ;;  %vm2156_vm0 = vcmp.lt.s32.totalorder %v6933_v52, 108  ;;  %s6332_s27 = smov (!%p5821_p10), 16   ;;  %s6333_s18 = smov (!%p5821_p10), 32  }
 0x246   : > { %1871 = vrot.lane.b32.xlu1 %v6805_v16, %s6293_s6  ;;  %9769 = vst [vmem:[#allocation17_spill] sm:$0xff] %v6843_v26  ;;  %s6334_s0 = smov (!%p5821_p10), 20   ;;  %s6336_s16 = smov (!%p5821_p10), 108  }
 0x247   : > { %9770 = vst [vmem:[#allocation18_spill] sm:$0xff] %v6845_v27  ;;  %p5858_p11 = scmp.ne.s32.totalorder (!%p5821_p10), %s6256_s22, 0 }
 0x248   : > { %6001 = vset.pattern.permute.xlu2 %v9614_v17  ;;  %9771 = vst [vmem:[#allocation19_spill] sm:$0xff] %v6866_v30 }
 0x249   : > { %1936 = vperm.xlu2 %6001, %v6789_v15   ;;  %9772 = vst [vmem:[#allocation20_spill] sm:$0xff] %v6933_v52 }
 0x24c   : > { %1867 = vrot.lane.b32.xlu0 %v6833_v25, %s6293_s6 }
 0x24e   : > { %1875 = vrot.lane.b32.xlu1 %v6829_v24, %s6293_s6 }
 0x251   : > { %1869 = vrot.lane.b32.xlu2 %v6849_v28, %s6293_s6 }
 0x252   : > { %6002 = vset.pattern.permute.xlu2 %v9616_v13 }
 0x254   : > { %1861 = vrot.lane.b32.xlu0 %v6857_v60, %s6293_s6 }
 0x256   : > { %1865 = vrot.lane.b32.xlu1 %v6853_v29, %s6293_s6 }
 0x259   : > { %1894 = vrot.lane.b32.xlu2 %v6833_v25, %s6295_s8 }
 0x25c   : > { %1873 = vrot.lane.b32.xlu0 %v6870_v31, %s6293_s6 }
 0x25e   : > { %1890 = vrot.lane.b32.xlu1 %v6810_v18, %s6295_s8 }
 0x261   : > { %1915 = vperm.xlu2 %6002, %v1842_v63  }
 0x264   : > { %1898 = vrot.lane.b32.xlu0 %v6805_v16, %s6295_s8 }
 0x266   : > { %1902 = vrot.lane.b32.xlu1 %v6829_v24, %s6295_s8 }
 0x269   : > { %6005 = vset.pattern.permute.xlu2 %v9612_v32 }
 0x26a   : > { %2081 = vperm.xlu2 %6005, %v6789_v15  }
 0x26c   : > { %1932 = vperm.xlu0 %6003, %v1842_v63  }
 0x26e   : > { %1960 = vperm.xlu1 %6004, %v6789_v15  }
 0x272   : > { %1888 = vrot.lane.b32.xlu2 %v6857_v60, %s6295_s8 }
 0x273   : > { %6009 = vset.pattern.permute.xlu2 %v9610_v2 }
 0x274   : > { %1892 = vrot.lane.b32.xlu0 %v6853_v29, %s6295_s8 }
 0x275   : > { %6007 = vset.pattern.permute.xlu0 %v9620_v23 }
 0x276   : > { %6006 = vset.pattern.permute.xlu1 %v9610_v2 }
 0x277   : > { %2097 = vperm.xlu1 %6006, %v6789_v15  }
 0x27a   : > { %1900 = vrot.lane.b32.xlu2 %v6870_v31, %s6295_s8 }
 0x27c   : > { %1956 = vperm.xlu0 %6007, %v1842_v63  }
 0x27f   : > { %1896 = vrot.lane.b32.xlu1 %v6849_v28, %s6295_s8 }
 0x280   : > { %6008 = vset.pattern.permute.xlu1 %v9612_v32 }
 0x282   : > { %2093 = vperm.xlu2 %6009, %v1842_v63  }
 0x284   : > { %6012 = vset.pattern.permute.xlu0 %v9622_v33 }
 0x285   : > { %2009 = vperm.xlu0 %6012, %v6789_v15  }
 0x287   : > { %2077 = vperm.xlu1 %6008, %v1842_v63  }
 0x28a   : > { %6011 = vset.pattern.permute.xlu2 %v9608_v34 }
 0x28b   : > { %2117 = vperm.xlu2 %6011, %v1842_v63  }
 0x28d   : > { %6016 = vset.pattern.permute.xlu0 %v9618_v35 }
 0x28e   : > { %2045 = vperm.xlu0 %6016, %v1842_v63  }
 0x28f   : > { %6010 = vset.pattern.permute.xlu1 %v9608_v34 }
 0x290   : > { %2121 = vperm.xlu1 %6010, %v6789_v15  }
 0x293   : > { %6014 = vset.pattern.permute.xlu2 %v9622_v33 }
 0x294   : > { %2005 = vperm.xlu2 %6014, %v1842_v63  }
 0x296   : > { %6018 = vset.pattern.permute.xlu0 %v9616_v13 }
 0x298   : > { %6013 = vset.pattern.permute.xlu1 %v9606_v36 }
 0x299   : > { %2025 = vperm.xlu1 %6013, %v6789_v15  }
 0x29a   : > { %v6909_v37 = vpop.permute.xlu2 %1920 }
 0x29c   : > { %6015 = vset.pattern.permute.xlu2 %v9618_v35 }
 0x29d   : > { %2049 = vperm.xlu2 %6015, %v6789_v15  }
 0x2a1   : > { %2021 = vperm.xlu1 %6013, %v1842_v63  }
 0x2a3   : > { %v6913_v38 = vpop.permute.xlu2 %1936 }
 0x2a4   : > { %v1944_v58 = vmul.f32 %v6913_v38, %v6833_v25  ;;  %v1945_v61 = vmul.f32 %v6913_v38, %v6805_v16  ;;  %v1943_v14 = vmul.f32 %v6913_v38, %v6810_v18 }
 0x2a5   : > { %6017 = vset.pattern.permute.xlu2 %v9616_v13 }
 0x2a9   : > { %6019 = vset.pattern.permute.xlu1 %v9614_v17 }
 0x2ab   : > { %v1870_v39 = vpop.permute.xlu2 %1869 }
 0x2b3   : > { %v6919_v42 = vpop.permute.xlu2 %1894 }
 0x2b6   : > { %v6917_v41 = vpop.permute.xlu0 %1863 }
 0x2b8   : > { %v1872_v40 = vpop.permute.xlu1 %1871 }
 0x2bb   : > { %v6923_v45 = vpop.permute.xlu2 %1915 }
 0x2be   : > { %v1868_v44 = vpop.permute.xlu0 %1867 }
 0x2bf   : > { %v6940_v56 = vsel %vm1879_vm13, %v1868_v44, %v1872_v40  ;;  %v6945_v5 = vsel %vm1879_vm13, %v6917_v41, %v1868_v44 }
 0x2c0   : > { %v6921_v43 = vpop.permute.xlu1 %1875  ;;  %v1928_v57 = vmul.f32 %v6909_v37, %v6945_v5  ;;  %v1929_v6 = vmul.f32 %v6909_v37, %v6940_v56 }
 0x2c1   : > { %v6976_v63 = vsel %vm1879_vm13, %v1872_v40, %v6921_v43 }
 0x2c2   : > { %v1952_v4 = vadd.f32 %v1944_v58, %v1928_v57  ;;  %v1953_v21 = vadd.f32 %v1945_v61, %v1929_v6  ;;  %v1946_v57 = vmul.f32 %v6913_v38, %v6829_v24 }
 0x2c4   : > { %v6927_v48 = vpop.permute.xlu2 %2081 }
 0x2c6   : > { %v6925_v47 = vpop.permute.xlu0 %1861 }
 0x2c8   : > { %v1866_v46 = vpop.permute.xlu1 %1865 }
 0x2cc   : > { %v6935_v53 = vpop.permute.xlu2 %1888 }
 0x2ce   : > { %v6931_v51 = vpop.permute.xlu0 %1873 }
 0x2d0   : > { %v6929_v50 = vpop.permute.xlu1 %1890 }
 0x2d4   : > { %v1901_v62 = vpop.permute.xlu2 %1900 }
 0x2d6   : > { %v1899_v55 = vpop.permute.xlu0 %1898 }
 0x2d7   : > { %v6963_v10 = vsel %vm1904_vm14, %v6919_v42, %v1899_v55 }
 0x2d8   : > { %v1903_v54 = vpop.permute.xlu1 %1902 }
 0x2d9   : > { %v6958_v9 = vsel %vm1904_vm14, %v1899_v55, %v1903_v54  ;;  %v1930_v55 = vmul.f32 %v6909_v37, %v6976_v63  ;;  %v6987_v6 = vsel %vm1904_vm14, %v1903_v54, %v6929_v50  ;;  %v7005_v54 = vsel %vm1879_vm13, %v1866_v46, %v1870_v39 }
 0x2de   : > { %v6967_v7 = vpop.permute.xlu0 %1932 }
 0x2e0   : > { %v6965_v3 = vpop.permute.xlu1 %1960 }
 0x2e1   : > { %v1968_v1 = vmul.f32 %v6965_v3, %v6963_v10  ;;  %v1969_v15 = vmul.f32 %v6965_v3, %v6958_v9  ;;  %v1970_v40 = vmul.f32 %v6965_v3, %v6987_v6 }
 0x2e3   : > { %v1976_v44 = vadd.f32 %v1968_v1, %v1952_v4  ;;  %v1977_v49 = vadd.f32 %v1969_v15, %v1953_v21  ;;  %v1954_v4 = vadd.f32 %v1946_v57, %v1930_v55  ;;  %v6995_v1 = vpop.permute.xlu2 %2093  ;;  %v7000_v15 = vsel %vm1879_vm13, %v1870_v39, %v6931_v51 }
 0x2e4   : > { %v7017_v55 = vsel %vm1904_vm14, %v1901_v62, %v6935_v53  ;;  %v1940_v57 = vmul.f32 %v6967_v7, %v6853_v29  ;;  %v1941_v39 = vmul.f32 %v6967_v7, %v6849_v28 }
 0x2e5   : > { %1985 = vrot.lane.b32.xlu1 %v1976_v44, %s6302_s14  ;;  %1989 = vrot.lane.b32.xlu2 %v1977_v49, %s6302_s14  ;;  %v1978_v21 = vadd.f32 %v1970_v40, %v1954_v4  ;;  %v7010_v44 = vsel %vm1879_vm13, %v6925_v47, %v1866_v46  ;;  %v1942_v49 = vmul.f32 %v6967_v7, %v6870_v31 }
 0x2e6   : > { %v6991_v58 = vpop.permute.xlu0 %1892  ;;  %v1926_v40 = vmul.f32 %v6923_v45, %v7000_v15  ;;  %v1925_v46 = vmul.f32 %v6923_v45, %v7005_v54  ;;  %v1924_v4 = vmul.f32 %v6923_v45, %v7010_v44 }
 0x2e8   : > { %v1950_v17 = vadd.f32 %v1942_v49, %v1926_v40  ;;  %v1949_v23 = vadd.f32 %v1941_v39, %v1925_v46  ;;  %v1948_v33 = vadd.f32 %v1940_v57, %v1924_v4  ;;  %v2103_v39 = vmul.f32 %v6995_v1, %v6870_v31 }
 0x2e9   : > { %v6993_v61 = vpop.permute.xlu1 %2097 }
 0x2ea   : > { %v2107_v40 = vmul.f32 %v6993_v61, %v6829_v24  ;;  %v2106_v57 = vmul.f32 %v6993_v61, %v6805_v16 }
 0x2eb   : > { %v7046_v11 = vpop.permute.xlu2 %2117 }
 0x2ed   : > { %1993 = vrot.lane.b32.xlu1 %v1978_v21, %s6302_s14 }
 0x2ee   : > { %v7029_v21 = vpop.permute.xlu0 %1956 }
 0x2ef   : > { %v1966_v34 = vmul.f32 %v7029_v21, %v7017_v55 }
 0x2f1   : > { %v1897_v36 = vpop.permute.xlu1 %1896  ;;  %v1974_v19 = vadd.f32 %v1966_v34, %v1950_v17  ;;  %v2104_v17 = vmul.f32 %v6993_v61, %v6810_v18  ;;  %v7078_v34 = vsel %vm1879_vm13, %v6931_v51, %v6925_v47 }
 0x2f2   : > { %v7035_v2 = vsel %vm1904_vm14, %v1897_v36, %v1901_v62  ;;  %v7040_v32 = vsel %vm1904_vm14, %v6991_v58, %v1897_v36 }
 0x2f3   : > { %v1964_v13 = vmul.f32 %v7029_v21, %v7040_v32  ;;  %v1965_v35 = vmul.f32 %v7029_v21, %v7035_v2  ;;  %v7053_v49 = vpop.permute.xlu2 %2005  ;;  %v2126_v38 = vmul.f32 %v7046_v11, %v7035_v2 }
 0x2f5   : > { %v1973_v20 = vadd.f32 %v1965_v35, %v1949_v23  ;;  %v1972_v62 = vadd.f32 %v1964_v13, %v1948_v33  ;;  %1991 = vrot.lane.b32.xlu1 %v1974_v19, %s6302_s14  ;;  %v1887_v13 = vsel %vm1879_vm13, %v6921_v43, %v6917_v41  ;;  %v2091_v19 = vmul.f32 %v6927_v48, %v6976_v63 }
 0x2f6   : > { %v1910_v23 = vsel %vm1904_vm14, %v6929_v50, %v6919_v42  ;;  %v2088_v33 = vmul.f32 %v6927_v48, %v1887_v13  ;;  %v1927_v26 = vmul.f32 %v6909_v37, %v1887_v13 }
 0x2f7   : > { %1987 = vrot.lane.b32.xlu0 %v1973_v20, %s6302_s14  ;;  %1983 = vrot.lane.b32.xlu2 %v1972_v62, %s6302_s14  ;;  %v2090_v20 = vmul.f32 %v6927_v48, %v6940_v56  ;;  %v2115_v41 = vadd.f32 %v2107_v40, %v2091_v19  ;;  %v2102_v62 = vmul.f32 %v6995_v1, %v6849_v28 }
 0x2f8   : > { %v2112_v50 = vadd.f32 %v2104_v17, %v2088_v33  ;;  %v2100_v40 = vmul.f32 %v6995_v1, %v6857_v60  ;;  %v2010_v33 = vpop.permute.xlu0 %2009 }
 0x2f9   : > { %v7051_v36 = vpop.permute.xlu1 %2077  ;;  %v2114_v43 = vadd.f32 %v2106_v57, %v2090_v20 }
 0x2fa   : > { %v2087_v47 = vmul.f32 %v7051_v36, %v7000_v15  ;;  %v2086_v51 = vmul.f32 %v7051_v36, %v7005_v54  ;;  %v2084_v17 = vmul.f32 %v7051_v36, %v7078_v34 }
 0x302   : > { %v7080_v35 = vpop.permute.xlu1 %2121 }
 0x303   : > { %v2131_v46 = vmul.f32 %v7080_v35, %v6987_v6  ;;  %v2130_v42 = vmul.f32 %v7080_v35, %v6958_v9  ;;  %v2128_v4 = vmul.f32 %v7080_v35, %v1910_v23 }
 0x305   : > { %v2139_v57 = vadd.f32 %v2131_v46, %v2115_v41  ;;  %v2138_v19 = vadd.f32 %v2130_v42, %v2114_v43  ;;  %v2136_v20 = vadd.f32 %v2128_v4, %v2112_v50  ;;  %v7108_v41 = vsel %vm1904_vm14, %v6935_v53, %v6991_v58  ;;  %v2050_v43 = vpop.permute.xlu2 %2049 }
 0x306   : > { %v2127_v46 = vmul.f32 %v7046_v11, %v7017_v55  ;;  %v1967_v42 = vmul.f32 %v6965_v3, %v1910_v23  ;;  %v2111_v50 = vadd.f32 %v2103_v39, %v2087_v47  ;;  %v2110_v4 = vadd.f32 %v2102_v62, %v2086_v51 }
 0x307   : > { %2154 = vrot.lane.b32.xlu1 %v2139_v57, %s6303_s29  ;;  %2150 = vrot.lane.b32.xlu0 %v2138_v19, %s6303_s29  ;;  %v2108_v57 = vadd.f32 %v2100_v40, %v2084_v17  ;;  %v2124_v37 = vmul.f32 %v7046_v11, %v7108_v41  ;;  %v2016_v19 = vmul.f32 %v2010_v33, %v1887_v13 }
 0x308   : > { %2142 = vrot.lane.b32.xlu2 %v2136_v20, %s6303_s29  ;;  %v2017_v53 = vmul.f32 %v2010_v33, %v6945_v5  ;;  %v2018_v58 = vmul.f32 %v2010_v33, %v6940_v56  ;;  %v2019_v20 = vmul.f32 %v2010_v33, %v6976_v63  ;;  %v2058_v22 = vmul.f32 %v2050_v43, %v6958_v9 }
 0x309   : > { %v2059_v3 = vmul.f32 %v2050_v43, %v6987_v6  ;;  %v2056_v39 = vmul.f32 %v2050_v43, %v1910_v23  ;;  %v2135_v40 = vadd.f32 %v2127_v46, %v2111_v50  ;;  %v2134_v17 = vadd.f32 %v2126_v38, %v2110_v4  ;;  %v2046_v23 = vpop.permute.xlu0 %2045 }
 0x30a   : > { %v2132_v12 = vadd.f32 %v2124_v37, %v2108_v57  ;;  %v2057_v56 = vmul.f32 %v2050_v43, %v6963_v10  ;;  %v2012_v46 = vmul.f32 %v7053_v49, %v7078_v34  ;;  %v1832_v57 = vld [vmem:[%s6501_s23] sm:$0xff]  ;;  %v2052_v37 = vmul.f32 %v2046_v23, %v7108_v41 }
 0x30b   : > { %v2026_v27 = vpop.permute.xlu1 %2025  ;;  %v2053_v38 = vmul.f32 %v2046_v23, %v7040_v32 }
 0x30c   : > { %v2032_v47 = vmul.f32 %v2026_v27, %v6810_v18  ;;  %v2033_v51 = vmul.f32 %v2026_v27, %v6833_v25  ;;  %v2034_v62 = vmul.f32 %v2026_v27, %v6805_v16  ;;  %v2035_v13 = vmul.f32 %v2026_v27, %v6829_v24 }
 0x30d   : > { %v1951_v18 = vadd.f32 %v1943_v14, %v1927_v26  ;;  %v2013_v14 = vmul.f32 %v7053_v49, %v7010_v44 }
 0x30e   : > { %v2042_v63 = vadd.f32 %v2034_v62, %v2018_v58  ;;  %v2043_v33 = vadd.f32 %v2035_v13, %v2019_v20  ;;  %v2040_v30 = vadd.f32 %v2032_v47, %v2016_v19  ;;  %v2041_v9 = vadd.f32 %v2033_v51, %v2017_v53  ;;  %v7157_v53 = vld [vmem:[%s6501_s23 + $0x8] sm:$0xff] }
 0x30f   : > { %2152 = vrot.lane.b32.xlu1 %v2135_v40, %s6303_s29  ;;  %2148 = vrot.lane.b32.xlu0 %v2134_v17, %s6303_s29  ;;  %v1975_v43 = vadd.f32 %v1967_v42, %v1951_v18  ;;  %v2054_v19 = vmul.f32 %v2046_v23, %v7035_v2  ;;  %v2089_v47 = vmul.f32 %v6927_v48, %v6945_v5  ;;  %v9773_v48 = vmov 3  }
 0x310   : > { %2140 = vrot.lane.b32.xlu2 %v2132_v12, %s6303_s29  ;;  %v7131_v16 = vadd.f32 %v2058_v22, %v2042_v63  ;;  %v7133_v24 = vadd.f32 %v2059_v3, %v2043_v33  ;;  %v7135_v27 = vadd.f32 %v2056_v39, %v2040_v30  ;;  %v7137_v6 = vadd.f32 %v2057_v56, %v2041_v9 }
 0x311   : > { %v2014_v12 = vmul.f32 %v7053_v49, %v7005_v54  ;;  %v2015_v22 = vmul.f32 %v7053_v49, %v7000_v15  ;;  %v2055_v54 = vmul.f32 %v2046_v23, %v7017_v55  ;;  %v2085_v40 = vmul.f32 %v7051_v36, %v7010_v44 }
 0x312   : > { %v2101_v17 = vmul.f32 %v6995_v1, %v6853_v29  ;;  %v9775_v44 = vmov 5   ;;  %v9777_v1 = vmov 1  }
 0x313   : > { %v2022_v26 = vpop.permute.xlu1 %2021 }
 0x314   : > { %v2028_v30 = vmul.f32 %v2022_v26, %v6857_v60  ;;  %v2029_v50 = vmul.f32 %v2022_v26, %v6853_v29  ;;  %v2030_v4 = vmul.f32 %v2022_v26, %v6849_v28  ;;  %v2031_v42 = vmul.f32 %v2022_v26, %v6870_v31 }
 0x315   : > { %v1939_v28 = vmul.f32 %v6967_v7, %v6857_v60  ;;  %v2105_v31 = vmul.f32 %v6993_v61, %v6833_v25  ;;  %v2129_v60 = vmul.f32 %v7080_v35, %v6963_v10  ;;  %v1923_v7 = vmul.f32 %v6923_v45, %v7078_v34 }
 0x316   : > { %v2038_v15 = vadd.f32 %v2030_v4, %v2014_v12  ;;  %v2039_v49 = vadd.f32 %v2031_v42, %v2015_v22  ;;  %v2036_v58 = vadd.f32 %v2028_v30, %v2012_v46  ;;  %v2037_v20 = vadd.f32 %v2029_v50, %v2013_v14 }
 0x317   : > { %1981 = vrot.lane.b32.xlu1 %v1975_v43, %s6302_s14  ;;  %2175 = vperm.xlu0 %6018, %v1832_v57   ;;  %v1963_v25 = vmul.f32 %v7029_v21, %v7108_v41  ;;  %v2113_v61 = vadd.f32 %v2105_v31, %v2089_v47  ;;  %v1947_v51 = vadd.f32 %v1939_v28, %v1923_v7  ;;  %v9774_v45 = vmov 2  }
 0x318   : > { %2180 = vperm.xlu2 %6017, %v7157_v53   ;;  %v7165_v2 = vadd.f32 %v2054_v19, %v2038_v15  ;;  %v7167_v55 = vadd.f32 %v2055_v54, %v2039_v49  ;;  %v7169_v3 = vadd.f32 %v2052_v37, %v2036_v58  ;;  %v7171_v39 = vadd.f32 %v2053_v38, %v2037_v20  ;;  %v7231_v54 = vld [vmem:[%s6471_s1 + $0x8] sm:$0xff] }
 0x319   : > { %v2137_v62 = vadd.f32 %v2129_v60, %v2113_v61  ;;  %v1971_v13 = vadd.f32 %v1963_v25, %v1947_v51  ;;  %v2109_v5 = vadd.f32 %v2101_v17, %v2085_v40  ;;  %v2125_v10 = vmul.f32 %v7046_v11, %v7040_v32 }
 0x31a   : > { %v9776_v29 = vmov 0  }
 0x31b   : > { %v2133_v21 = vadd.f32 %v2125_v10, %v2109_v5 }
 0x31f   : > { %2146 = vrot.lane.b32.xlu1 %v2137_v62, %s6303_s29  ;;  %6023 = vset.pattern.permute.xlu0 %v9773_v48 }
 0x320   : > { %1979 = vrot.lane.b32.xlu2 %v1971_v13, %s6302_s14  ;;  %2486 = vperm.xlu0 %6023, %v1832_v57   ;;  %v9783_v13 = vmov 6  }
 0x321   : > { %6020 = vset.pattern.permute.xlu2 %v9774_v45 }
 0x327   : > { %2452 = vperm.xlu1 %6019, %v1832_v57  }
 0x328   : > { %2144 = vrot.lane.b32.xlu2 %v2133_v21, %s6303_s29  ;;  %6026 = vset.pattern.permute.xlu0 %v9775_v44 }
 0x329   : > { %2843 = vperm.xlu0 %6026, %v7231_v54  }
 0x32f   : > { %6021 = vset.pattern.permute.xlu1 %v9774_v45 }
 0x330   : > { %2468 = vperm.xlu1 %6021, %v1832_v57   ;;  %2472 = vperm.xlu2 %6020, %v7157_v53  }
 0x331   : > { %6027 = vset.pattern.permute.xlu0 %v9777_v1 }
 0x332   : > { %2456 = vperm.xlu0 %6027, %v7157_v53  }
 0x338   : > { %6024 = vset.pattern.permute.xlu1 %v9776_v29  ;;  %6022 = vset.pattern.permute.xlu2 %v9773_v48 }
 0x339   : > { %2490 = vperm.xlu2 %6022, %v7157_v53   ;;  %2706 = vperm.xlu1 %6024, %v7231_v54  }
 0x33f   : > { %v1990_v11 = vpop.permute.xlu2 %1989 }
 0x341   : > { %6025 = vset.pattern.permute.xlu2 %v9777_v1  ;;  %6028 = vset.pattern.permute.xlu1 %v9783_v13 }
 0x342   : > { %2722 = vperm.xlu2 %6025, %v7231_v54   ;;  %2859 = vperm.xlu1 %6028, %v7231_v54  }
 0x34a   : > { %6029 = vset.pattern.permute.xlu2 %v9776_v29  ;;  %6030 = vset.pattern.permute.xlu1 %v9774_v45 }
 0x34b   : > { %2746 = vperm.xlu1 %6030, %v7231_v54  }
 0x351   : > { %v1984_v32 = vpop.permute.xlu2 %1983 }
 0x353   : > { %6032 = vset.pattern.permute.xlu1 %v9783_v13 }
 0x357   : > { %v1986_v36 = vpop.permute.xlu1 %1985 }
 0x358   : > { %v1999_v33 = vsel %vm1995_vm15, %v1986_v36, %v1990_v11 }
 0x359   : > { %v2074_v23 = vadd.f32 %v7131_v16, %v1999_v33 }
 0x35f   : > { %v1994_v35 = vpop.permute.xlu1 %1993 }
 0x360   : > { %v1997_v9 = vsel %vm1995_vm15, %v1990_v11, %v1994_v35 }
 0x361   : > { %v2075_v43 = vadd.f32 %v7133_v24, %v1997_v9 }
 0x362   : > { %v7199_v34 = vpop.permute.xlu2 %2142 }
 0x367   : > { %v1992_v56 = vpop.permute.xlu1 %1991 }
 0x369   : > { %v1988_v63 = vpop.permute.xlu0 %1987 }
 0x36a   : > { %v2141_v41 = vpop.permute.xlu2 %2140  ;;  %v1996_v38 = vsel %vm1995_vm15, %v1988_v63, %v1992_v56  ;;  %v1998_v19 = vsel %vm1995_vm15, %v1984_v32, %v1988_v63 }
 0x36b   : > { %v2070_v15 = vadd.f32 %v7165_v2, %v1998_v19  ;;  %v2071_v49 = vadd.f32 %v7167_v55, %v1996_v38  ;;  %v9781_v2 = vld [vmem:[#allocation19_spill] sm:$0xff]  ;;  %v9792_v19 = vmov 7  }
 0x372   : > { %v7207_v18 = vpop.permute.xlu2 %2180 }
 0x379   : > { %v2155_v46 = vpop.permute.xlu1 %2154  ;;  %v2151_v14 = vpop.permute.xlu0 %2150 }
 0x37a   : > { %v2164_v12 = vsel %vm2156_vm0, %v2155_v46, %v7199_v34  ;;  %v2158_v22 = vsel %vm2156_vm0, %v2151_v14, %v2155_v46  ;;  %v1980_v37 = vpop.permute.xlu2 %1979 }
 0x37b   : > { %v2172_v26 = vadd.f32 %v2164_v12, %v2075_v43  ;;  %v2171_v30 = vadd.f32 %v2158_v22, %v2074_v23  ;;  %v2000_v7 = vsel %vm1995_vm15, %v1980_v37, %v1984_v32  ;;  %v2002_v25 = vsel %vm1995_vm15, %v1992_v56, %v1980_v37  ;;  %v9786_v22 = vld [vmem:[#allocation16_spill] sm:$0xff] }
 0x37c   : > { %v2068_v1 = vadd.f32 %v7169_v3, %v2002_v25  ;;  %v9643_v32 = vmov 0.0625  }
 0x37d   : > { %v2190_v50 = vadd.f32 %v7207_v18, %v2172_v26  ;;  %v2189_v4 = vadd.f32 %v7207_v18, %v2171_v30  ;;  %v9788_v30 = vld [vmem:[#allocation18_spill] sm:$0xff] }
 0x37f   : > { %v7219_v16 = vadd.f32 %v2189_v4, %v6791_v8  ;;  %v7222_v24 = vadd.f32 %v2190_v50, %v6819_v59  ;;  %v9790_v50 = vld [vmem:[#allocation17_spill] sm:$0xff] }
 0x381   : > { %9778 = vst [vmem:[#allocation21_spill] sm:$0xff] %v7219_v16  ;;  %v2153_v42 = vpop.permute.xlu1 %2152  ;;  %v2149_v57 = vpop.permute.xlu0 %2148  ;;  %2257 = vmatpush.msra.mxu2 %v7219_v16  ;;  %2277 = vmatpush.msra.mxu3 %v7222_v24  ;;  %v2289_v55 = vmul.f32 %v7219_v16, %v7219_v16 }
 0x382   : > { %9779 = vst [vmem:[#allocation22_spill] sm:$0xff] %v7222_v24  ;;  %v2163_v8 = vsel %vm2156_vm0, %v2153_v42, %v2141_v41  ;;  %v2157_v59 = vsel %vm2156_vm0, %v2149_v57, %v2153_v42  ;;  %v2145_v61 = vpop.permute.xlu2 %2144 }
 0x383   : > { %v2168_v58 = vadd.f32 %v2163_v8, %v2071_v49  ;;  %v2167_v20 = vadd.f32 %v2157_v59, %v2070_v15  ;;  %v2161_v5 = vsel %vm2156_vm0, %v2141_v41, %v2145_v61  ;;  %v2159_v11 = vsel %vm2156_vm0, %v2145_v61, %v2149_v57 }
 0x384   : > { %v2165_v56 = vadd.f32 %v2161_v5, %v2068_v1  ;;  %v9793_v8 = vmov 8   ;;  %v6305_v59 = vmov 16   ;;  %v9645_v15 = vmov 9  }
 0x385   : > { %v9794_v49 = vmov 4  }
 0x389   : > { %v1982_v28 = vpop.permute.xlu1 %1981  ;;  %v2176_v31 = vpop.permute.xlu0 %2175 }
 0x38a   : > { %v2185_v47 = vadd.f32 %v2176_v31, %v2167_v20  ;;  %v2186_v60 = vadd.f32 %v2176_v31, %v2168_v58  ;;  %v2001_v40 = vsel %vm1995_vm15, %v1982_v28, %v1986_v36  ;;  %v2003_v17 = vsel %vm1995_vm15, %v1994_v35, %v1982_v28 }
 0x38b   : > { %v2069_v36 = vadd.f32 %v7171_v39, %v2000_v7  ;;  %v2072_v35 = vadd.f32 %v7135_v27, %v2003_v17  ;;  %v2073_v41 = vadd.f32 %v7137_v6, %v2001_v40  ;;  %v7289_v27 = vld [vmem:[%s6471_s1] sm:$0xff]  ;;  %v2183_v6 = vadd.f32 %v2176_v31, %v2165_v56  ;;  %s6321_s1 = smov 2  }
 0x38c   : > { %v7247_v51 = vadd.f32 %v2185_v47, %v6839_v0  ;;  %v7250_v62 = vadd.f32 %v2186_v60, %v9781_v2  ;;  %v2290_v0 = vmul.f32 %v7222_v24, %v7222_v24  ;;  %2701 = vperm.xlu2 %6029, %v7289_v27   ;;  %2718 = vperm.xlu0 %6027, %v7289_v27   ;;  %v6309_v58 = vmov 18  }
 0x38d   : > { %v2166_v9 = vadd.f32 %v2159_v11, %v2069_v36  ;;  %2855 = vperm.xlu1 %6032, %v7289_v27   ;;  %v6310_v20 = vmov 19   ;;  %v6311_v28 = vmov 17   ;;  %v6313_v17 = vmov 24  }
 0x38e   : > { %9780 = vst [vmem:[#allocation23_spill] sm:$0xff] %v7247_v51  ;;  %2258 = vmatpush.msra.mxu2 %v7247_v51  ;;  %2278 = vmatpush.msra.mxu3 %v7250_v62  ;;  %v2285_v10 = vmul.f32 %v7247_v51, %v7247_v51  ;;  %v2286_v21 = vmul.f32 %v7250_v62, %v7250_v62 }
 0x38f   : > { %9782 = vst [vmem:[#allocation19_spill] sm:$0xff] %v7250_v62  ;;  %5751 = vmatmul.msk.f32.vlgmr.msra.gmra.mxu2 %vm2199_vm1, %v9643_v32  ;;  %5752 = vmatmul.msk.f32.vlgmr.msra.gmra.mxu3 %vm2199_vm1, %v9643_v32  ;;  %v2184_v43 = vadd.f32 %v2176_v31, %v2166_v9  ;;  %v6312_v31 = vmov 23  }
 0x390   : > { %2345 = vmatpush.msrb.mxu2 %v2289_v55  ;;  %2365 = vmatpush.msrb.mxu3 %v2290_v0 }
 0x391   : > { %v2147_v3 = vpop.permute.xlu1 %2146  ;;  %v7313_v4 = vadd.f32 %v2184_v43, %v9790_v50  ;;  %v9641_v43 = vmov 10  }
 0x392   : > { %v2160_v63 = vsel %vm2156_vm0, %v2147_v3, %v2151_v14  ;;  %v2162_v33 = vsel %vm2156_vm0, %v7199_v34, %v2147_v3  ;;  %2346 = vmatpush.msrb.mxu2 %v2285_v10  ;;  %2366 = vmatpush.msrb.mxu3 %v2286_v21  ;;  %v9784_v34 = vld [vmem:[#allocation12_spill] sm:$0xff]  ;;  %v7385_v10 = vpop.permute.xlu2 %2472 }
 0x393   : > { %v2169_v23 = vadd.f32 %v2162_v33, %v2072_v35  ;;  %v2170_v39 = vadd.f32 %v2160_v63, %v2073_v41  ;;  %9791 = vst [vmem:[#allocation17_spill] sm:$0xff] %v7313_v4  ;;  %v2284_v38 = vmul.f32 %v7313_v4, %v7313_v4  ;;  %v6314_v35 = vmov 20  }
 0x394   : > { %6031 = vset.pattern.permute.xlu2 %v9775_v44  ;;  %6036 = vset.pattern.permute.xlu0 %v9792_v19 }
 0x395   : > { %v2187_v46 = vadd.f32 %v7207_v18, %v2169_v23  ;;  %v2188_v14 = vadd.f32 %v7207_v18, %v2170_v39  ;;  %v7308_v18 = vadd.f32 %v2183_v6, %v9788_v30  ;;  %2839 = vperm.xlu2 %6031, %v7289_v27   ;;  %2879 = vperm.xlu0 %6036, %v7289_v27   ;;  %v7393_v23 = vpop.permute.xlu0 %2486 }
 0x396   : > { %6034 = vset.pattern.permute.xlu1 %v9774_v45  ;;  %v6306_v45 = vmov 15  }
 0x397   : > { %v7297_v12 = vadd.f32 %v2187_v46, %v9784_v34  ;;  %v7300_v26 = vadd.f32 %v2188_v14, %v9786_v22  ;;  %5755 = vmatmul.msk.f32.vlgmr.msrb.gmra.mxu2 %vm2199_vm1, %v9643_v32  ;;  %5756 = vmatmul.msk.f32.vlgmr.msrb.gmra.mxu3 %vm2199_vm1, %v9643_v32  ;;  %9789 = vst [vmem:[#allocation18_spill] sm:$0xff] %v7308_v18 }
 0x398   : > { %v2283_v37 = vmul.f32 %v7308_v18, %v7308_v18  ;;  %2742 = vperm.xlu1 %6034, %v7289_v27  }
 0x399   : > { %9785 = vst [vmem:[#allocation12_spill] sm:$0xff] %v7297_v12  ;;  %2217 = vmatpush.msra.mxu0 %v7297_v12  ;;  %2237 = vmatpush.msra.mxu1 %v7300_v26  ;;  %v2287_v42 = vmul.f32 %v7297_v12, %v7297_v12  ;;  %v2288_v57 = vmul.f32 %v7300_v26, %v7300_v26 }
 0x39a   : > { %9787 = vst [vmem:[#allocation16_spill] sm:$0xff] %v7300_v26  ;;  %v7397_v46 = vpop.permute.xlu2 %2490 }
 0x39b   : > { %2218 = vmatpush.msra.mxu0 %v7308_v18  ;;  %2238 = vmatpush.msra.mxu1 %v7313_v4 }
 0x39c   : > { %5749 = vmatmul.msk.f32.vlgmr.msra.gmra.mxu0 %vm2199_vm1, %v9643_v32  ;;  %5750 = vmatmul.msk.f32.vlgmr.msra.gmra.mxu1 %vm2199_vm1, %v9643_v32 }
 0x39d   : > { %2305 = vmatpush.msrb.mxu0 %v2287_v42  ;;  %2325 = vmatpush.msrb.mxu1 %v2288_v57  ;;  %v6316_v42 = vmov 22  }
 0x39e   : > { %6033 = vset.pattern.permute.xlu2 %v9792_v19  ;;  %6042 = vset.pattern.permute.xlu0 %v9793_v8 }
 0x39f   : > { %2306 = vmatpush.msrb.mxu0 %v2283_v37  ;;  %2326 = vmatpush.msrb.mxu1 %v2284_v38  ;;  %v7408_v38 = vpop.permute.xlu0 %2843 }
 0x3a0   : > { %2883 = vperm.xlu2 %6033, %v7231_v54   ;;  %2903 = vperm.xlu0 %6042, %v7289_v27   ;;  %9795 = vst [vmem:[#allocation24_spill] sm:$0xff] %v7408_v38 }
 0x3a1   : > { %6037 = vset.pattern.permute.xlu1 %v9793_v8 }
 0x3a2   : > { %2907 = vperm.xlu1 %6037, %v7231_v54  }
 0x3a4   : > { %5753 = vmatmul.msk.f32.vlgmr.msrb.gmra.mxu0 %vm2199_vm1, %v9643_v32  ;;  %5754 = vmatmul.msk.f32.vlgmr.msrb.gmra.mxu1 %vm2199_vm1, %v9643_v32 }
 0x3a8   : > { %6035 = vset.pattern.permute.xlu2 %v9773_v48  ;;  %6047 = vset.pattern.permute.xlu0 %v6314_v35 }
 0x3a9   : > { %2770 = vperm.xlu2 %6035, %v7231_v54   ;;  %3251 = vperm.xlu0 %6047, %v7231_v54  }
 0x3aa   : > { %6039 = vset.pattern.permute.xlu1 %v6305_v59 }
 0x3ab   : > { %3123 = vperm.xlu1 %6039, %v7231_v54  }
 0x3b1   : > { %6038 = vset.pattern.permute.xlu2 %v6306_v45  ;;  %6051 = vset.pattern.permute.xlu0 %v6311_v28 }
 0x3b2   : > { %3107 = vperm.xlu2 %6038, %v7231_v54   ;;  %3143 = vperm.xlu0 %6051, %v7289_v27  }
 0x3b3   : > { %6040 = vset.pattern.permute.xlu1 %v9773_v48  ;;  %v6308_v48 = vmov 21  }
 0x3b4   : > { %2766 = vperm.xlu1 %6040, %v7289_v27  }
 0x3ba   : > { %6041 = vset.pattern.permute.xlu2 %v9794_v49  ;;  %6056 = vset.pattern.permute.xlu0 %v6309_v58 }
 0x3bb   : > { %2794 = vperm.xlu2 %6041, %v7231_v54   ;;  %3167 = vperm.xlu0 %6056, %v7289_v27  }
 0x3bc   : > { %6043 = vset.pattern.permute.xlu1 %v9645_v15 }
 0x3bd   : > { %2931 = vperm.xlu1 %6043, %v7231_v54  }
 0x3c3   : > { %6044 = vset.pattern.permute.xlu2 %v6306_v45  ;;  %6060 = vset.pattern.permute.xlu0 %v6312_v31 }
 0x3c4   : > { %3103 = vperm.xlu2 %6044, %v7289_v27   ;;  %3311 = vperm.xlu0 %6060, %v7289_v27  }
 0x3c5   : > { %6045 = vset.pattern.permute.xlu1 %v6305_v59 }
 0x3c6   : > { %3119 = vperm.xlu1 %6045, %v7289_v27  }
 0x3cc   : > { %6046 = vset.pattern.permute.xlu2 %v6311_v28  ;;  %6065 = vset.pattern.permute.xlu0 %v9641_v43 }
 0x3cd   : > { %3147 = vperm.xlu2 %6046, %v7231_v54   ;;  %2983 = vperm.xlu0 %6065, %v7289_v27  }
 0x3ce   : > { %6048 = vset.pattern.permute.xlu1 %v6308_v48 }
 0x3cf   : > { %3267 = vperm.xlu1 %6048, %v7231_v54  }
 0x3d5   : > { %6050 = vset.pattern.permute.xlu2 %v9645_v15 }
 0x3d6   : > { %2927 = vperm.xlu2 %6050, %v7289_v27  }
 0x3d7   : > { %6049 = vset.pattern.permute.xlu1 %v9794_v49 }
 0x3d8   : > { %2790 = vperm.xlu1 %6049, %v7289_v27  }
 0x3de   : > { %6053 = vset.pattern.permute.xlu2 %v6314_v35 }
 0x3df   : > { %3247 = vperm.xlu2 %6053, %v7289_v27  }
 0x3e0   : > { %6052 = vset.pattern.permute.xlu1 %v6309_v58 }
 0x3e1   : > { %3171 = vperm.xlu1 %6052, %v7231_v54  }
 0x3e7   : > { %6055 = vset.pattern.permute.xlu2 %v6316_v42 }
 0x3e8   : > { %3291 = vperm.xlu2 %6055, %v7231_v54  }
 0x3e9   : > { %6054 = vset.pattern.permute.xlu1 %v6308_v48  ;;  %v7411_v48 = vpop.permute.xlu2 %2722 }
 0x3ea   : > { %3263 = vperm.xlu1 %6054, %v7289_v27   ;;  %9796 = vst [vmem:[#allocation25_spill] sm:$0xff] %v7411_v48 }
 0x3f0   : > { %3287 = vperm.xlu2 %6055, %v7289_v27  }
 0x3f2   : > { %6057 = vset.pattern.permute.xlu1 %v6310_v20 }
 0x3f3   : > { %3195 = vperm.xlu1 %6057, %v7231_v54  }
 0x3f8   : > { %6059 = vset.pattern.permute.xlu2 %v6310_v20 }
 0x3f9   : > { %3191 = vperm.xlu2 %6059, %v7289_v27  }
 0x3fb   : > { %6058 = vset.pattern.permute.xlu1 %v6312_v31 }
 0x3fc   : > { %3315 = vperm.xlu1 %6058, %v7231_v54  }
 0x401   : > { %6062 = vset.pattern.permute.xlu2 %v6313_v17 }
 0x402   : > { %3335 = vperm.xlu2 %6062, %v7289_v27  }
 0x404   : > { %6061 = vset.pattern.permute.xlu1 %v6313_v17 }
 0x405   : > { %3339 = vperm.xlu1 %6061, %v7231_v54  }
 0x40d   : > { %6063 = vset.pattern.permute.xlu1 %v9641_v43 }
 0x40e   : > { %2987 = vperm.xlu1 %6063, %v7231_v54  }
 0x412   : > { %v7369_v47 = vpop.f32.mrf.mxu2  ;;  %v7371_v60 = vpop.f32.mrf.mxu3 }
 0x413   : > { %v2373_v7 = vmul.f32 %v7369_v47, %v7369_v47  ;;  %v2374_v25 = vmul.f32 %v7371_v60, %v7371_v60  ;;  %v2385_v59 = vperm.slane %v7369_v47, 0  ;;  %v2386_v28 = vperm.slane %v7371_v60, 0 }
 0x415   : > { %v2393_v35 = vsub.f32 %v7219_v16, %v2385_v59 }
 0x419   : > { %v7379_v61 = vpop.f32.mrf.mxu0  ;;  %v7381_v2 = vpop.f32.mrf.mxu1 }
 0x41a   : > { %v2348_v55 = vpop.f32.mrf.mxu2  ;;  %v2368_v40 = vpop.f32.mrf.mxu3  ;;  %v2371_v21 = vmul.f32 %v7379_v61, %v7379_v61  ;;  %v2372_v36 = vmul.f32 %v7381_v2, %v7381_v2 }
 0x41b   : > { %v2377_v0 = vsub.f32 %v2348_v55, %v2373_v7  ;;  %v2378_v5 = vsub.f32 %v2368_v40, %v2374_v25  ;;  %v6317_v55 = vmov 11  }
 0x41c   : > { %6066 = vset.pattern.permute.xlu1 %v6317_v55  ;;  %6064 = vset.pattern.permute.xlu2 %v6317_v55 }
 0x41d   : > { %v2381_v1 = vmax.f32 %v2377_v0, 0.0  ;;  %v2382_v11 = vmax.f32 %v2378_v5, 0.0  ;;  %2999 = vperm.xlu1 %6066, %v7289_v27   ;;  %3003 = vperm.xlu2 %6064, %v7231_v54  }
 0x41f   : > { %v2397_v41 = vadd.f32 1e-06, %v2381_v1  ;;  %v2398_v3 = vadd.f32 1e-06, %v2382_v11  ;;  %v2389_v1 = vsub.f32 %v7247_v51, %v2385_v59 }
 0x421   : > { %v2308_v56 = vpop.f32.mrf.mxu0  ;;  %v2328_v63 = vpop.f32.mrf.mxu1  ;;  %6091 = vrsqrt.f32 %v2397_v41  ;;  %vm2425_vm2 = vweird.f32 %v2397_v41  ;;  %vm2435_vm4 = vweird.f32 %v2398_v3 }
 0x422   : > { %v2375_v33 = vsub.f32 %v2308_v56, %v2371_v21  ;;  %v2376_v9 = vsub.f32 %v2328_v63, %v2372_v36  ;;  %6093 = vrsqrt.f32 %v2398_v3  ;;  %v7429_v63 = vpop.permute.xlu1 %2452 }
 0x424   : > { %v2379_v39 = vmax.f32 %v2375_v33, 0.0  ;;  %v2380_v6 = vmax.f32 %v2376_v9, 0.0  ;;  %v2390_v9 = vsub.f32 %v7250_v62, %v2386_v28  ;;  %v9829_v62 = vld [vmem:[#allocation11_spill] sm:$0xff] }
 0x426   : > { %v7399_v14 = vadd.f32 1e-06, %v2379_v39  ;;  %v7401_v34 = vadd.f32 1e-06, %v2380_v6  ;;  %v2394_v39 = vsub.f32 %v7222_v24, %v2386_v28 }
 0x427   : > { %v6092_v22 = vpop.eup %6091 }
 0x428   : > { %6095 = vrsqrt.f32 %v7399_v14  ;;  %v6094_v30 = vpop.eup %6093  ;;  %v2420_v50 = vmul.f32 %v6092_v22, %v2397_v41  ;;  %vm2426_vm3 = vweird.f32 %v6092_v22  ;;  %v2383_v41 = vperm.slane %v7379_v61, 0 }
 0x429   : > { %6097 = vrsqrt.f32 %v7401_v34  ;;  %v2430_v57 = vmul.f32 %v6094_v30, %v2398_v3  ;;  %vm2436_vm5 = vweird.f32 %v6094_v30  ;;  %vm7419_vm6 = vmor %vm2425_vm2, %vm2426_vm3  ;;  %v2384_v61 = vperm.slane %v7381_v2, 0 }
 0x42a   : > { %v2421_v37 = vmul.f32 %v6092_v22, %v2420_v50  ;;  %vm7425_vm7 = vmor %vm2435_vm4, %vm2436_vm5  ;;  %vm2405_vm10 = vweird.f32 %v7399_v14  ;;  %vm2415_vm12 = vweird.f32 %v7401_v34  ;;  %vm2617_vm3 = vcmp.lt.s32.totalorder %v6933_v52, 2 }
 0x42b   : > { %v2431_v45 = vmul.f32 %v6094_v30, %v2430_v57  ;;  %vm2690_vm4 = vcmp.lt.s32.totalorder %v6933_v52, 126  ;;  %vm2829_vm5 = vcmp.lt.s32.totalorder %v6933_v52, 40 }
 0x42c   : > { %v2422_v25 = vmul.f32 0.5, %v2421_v37 }
 0x42d   : > { %v2432_v0 = vmul.f32 0.5, %v2431_v45  ;;  %v2387_v45 = vsub.f32 %v7308_v18, %v2383_v41 }
 0x42e   : > { %v6096_v7 = vpop.eup %6095  ;;  %v2423_v47 = vsub.f32 1.5, %v2422_v25 }
 0x42f   : > { %v6098_v40 = vpop.eup %6097  ;;  %v2400_v5 = vmul.f32 %v6096_v7, %v7399_v14  ;;  %v2433_v11 = vsub.f32 1.5, %v2432_v0  ;;  %vm2406_vm8 = vweird.f32 %v6096_v7  ;;  %v2457_v0 = vpop.permute.xlu0 %2456 }
 0x430   : > { %v2410_v21 = vmul.f32 %v6098_v40, %v7401_v34  ;;  %v2424_v3 = vmul.f32 %v6092_v22, %v2423_v47  ;;  %vm2416_vm9 = vweird.f32 %v6098_v40  ;;  %vm2407_vm11 = vmor %vm2405_vm10, %vm2406_vm8  ;;  %v2388_v34 = vsub.f32 %v7313_v4, %v2384_v61 }
 0x431   : > { %v2401_v36 = vmul.f32 %v6096_v7, %v2400_v5  ;;  %v2434_v6 = vmul.f32 %v6094_v30, %v2433_v11  ;;  %v7442_v5 = vpop.permute.xlu2 %2701  ;;  %vm2417_vm2 = vmor %vm2415_vm12, %vm2416_vm9 }
 0x432   : > { %v2411_v33 = vmul.f32 %v6098_v40, %v2410_v21  ;;  %v2428_v42 = vsel %vm7419_vm6, %v6092_v22, %v2424_v3  ;;  %v6318_v21 = vmov 12   ;;  %vm3374_vm6 = vcmp.lt.s32.totalorder %v6933_v52, 88 }
 0x433   : > { %v2402_v50 = vmul.f32 0.5, %v2401_v36  ;;  %v2441_v37 = vperm.slane %v2428_v42, 0  ;;  %v2438_v58 = vsel %vm7425_vm7, %v6094_v30, %v2434_v6  ;;  %6068 = vset.pattern.permute.xlu1 %v6318_v21  ;;  %v2391_v36 = vsub.f32 %v7297_v12, %v2383_v41  ;;  %6067 = vset.pattern.permute.xlu2 %v6318_v21 }
 0x434   : > { %v2412_v57 = vmul.f32 0.5, %v2411_v33  ;;  %v2442_v28 = vperm.slane %v2438_v58, 0  ;;  %3023 = vperm.xlu1 %6068, %v7289_v27   ;;  %v2483_v58 = vld [vmem:[%s6476_s17] sm:$0xff]  ;;  %3027 = vperm.xlu2 %6067, %v7231_v54  }
 0x435   : > { %v2403_v59 = vsub.f32 1.5, %v2402_v50  ;;  %v2449_v2 = vmul.f32 %v2441_v37, %v2393_v35  ;;  %v2445_v22 = vmul.f32 %v2441_v37, %v2389_v1 }
 0x436   : > { %v2413_v25 = vsub.f32 1.5, %v2412_v57  ;;  %v2450_v60 = vmul.f32 %v2442_v28, %v2394_v39  ;;  %v2446_v11 = vmul.f32 %v2442_v28, %v2390_v9  ;;  %v2392_v9 = vsub.f32 %v7300_v26, %v2384_v61 }
 0x437   : > { %v2404_v47 = vmul.f32 %v6096_v7, %v2403_v59  ;;  %v2465_v56 = vmul.f32 %v2457_v0, %v2449_v2  ;;  %v2461_v14 = vmul.f32 %v7429_v63, %v2445_v22 }
 0x438   : > { %v2414_v30 = vmul.f32 %v6098_v40, %v2413_v25  ;;  %v2466_v33 = vmul.f32 %v2457_v0, %v2450_v60  ;;  %v2462_v6 = vmul.f32 %v7429_v63, %v2446_v11 }
 0x439   : > { %v2408_v3 = vsel %vm2407_vm11, %v6096_v7, %v2404_v47  ;;  %v2481_v50 = vadd.f32 %v7385_v10, %v2465_v56  ;;  %v2469_v7 = vpop.permute.xlu1 %2468  ;;  %v7465_v47 = vpop.permute.xlu2 %2839 }
 0x43a   : > { %v2439_v1 = vperm.slane %v2408_v3, 0  ;;  %v2418_v35 = vsel %vm2417_vm2, %v6098_v40, %v2414_v30  ;;  %v2482_v42 = vadd.f32 %v7385_v10, %v2466_v33  ;;  %v2477_v37 = vadd.f32 %v2469_v7, %v2461_v14 }
 0x43b   : > { %v2440_v39 = vperm.slane %v2418_v35, 0  ;;  %2559 = vmatpush.msra.mxu2 %v2481_v50  ;;  %v2478_v28 = vadd.f32 %v2469_v7, %v2462_v6  ;;  %v6319_v3 = vmov 13   ;;  %v6320_v14 = vmov 14  }
 0x43c   : > { %v2447_v41 = vmul.f32 %v2439_v1, %v2391_v36  ;;  %v2443_v40 = vmul.f32 %v2439_v1, %v2387_v45  ;;  %2582 = vmatpush.msra.mxu3 %v2482_v42  ;;  %6069 = vset.pattern.permute.xlu2 %v6319_v3 }
 0x43d   : > { %v2448_v57 = vmul.f32 %v2440_v39, %v2392_v9  ;;  %v2444_v59 = vmul.f32 %v2440_v39, %v2388_v34  ;;  %2560 = vmatpush.msra.mxu2 %v2477_v37  ;;  %6070 = vset.pattern.permute.xlu0 %v6319_v3 }
 0x43e   : > { %v2463_v61 = vmul.f32 %v2457_v0, %v2447_v41  ;;  %v2459_v20 = vmul.f32 %v7429_v63, %v2443_v40  ;;  %2583 = vmatpush.msra.mxu3 %v2478_v28  ;;  %5761 = vmatmul.msk.f32.vlgmr.msra.gmra.mxu2 %vm2199_vm1, %v2483_v58 }
 0x43f   : > { %v2464_v31 = vmul.f32 %v2457_v0, %v2448_v57  ;;  %v2460_v25 = vmul.f32 %v7429_v63, %v2444_v59  ;;  %5763 = vmatmul.msk.f32.vlgmr.msra.gmra.mxu3 %vm2199_vm1, %v2483_v58  ;;  %v2484_v63 = vld [vmem:[%s6476_s17 + $0x8] sm:$0xff]  ;;  %3051 = vperm.xlu2 %6069, %v7231_v54   ;;  %s6322_s17 = smov 126  }
 0x440   : > { %v2479_v45 = vadd.f32 %v7385_v10, %v2463_v61  ;;  %v2475_v22 = vadd.f32 %v2469_v7, %v2459_v20  ;;  %3047 = vperm.xlu0 %6070, %v7289_v27   ;;  %6071 = vset.pattern.permute.xlu1 %v6320_v14 }
 0x441   : > { %v2480_v2 = vadd.f32 %v7385_v10, %v2464_v31  ;;  %v2476_v30 = vadd.f32 %v2469_v7, %v2460_v25  ;;  %v7478_v10 = vpop.permute.xlu2 %2883  ;;  %v7492_v11 = vpop.permute.xlu1 %2706  ;;  %3075 = vperm.xlu1 %6071, %v7231_v54   ;;  %v9815_v25 = vld [vmem:[#allocation13_spill] sm:$0xff] }
 0x442   : > { %2513 = vmatpush.msra.mxu0 %v2479_v45  ;;  %9801 = vst [vmem:[#allocation26_spill] sm:$0xff] %v7478_v10  ;;  %v7523_v54 = vpop.permute.xlu0 %2718 }
 0x443   : > { %2536 = vmatpush.msra.mxu1 %v2480_v2  ;;  %9805 = vst [vmem:[#allocation30_spill] sm:$0xff] %v7492_v11  ;;  %v9816_v2 = vld [vmem:[#allocation15_spill] sm:$0xff] }
 0x444   : > { %2514 = vmatpush.msra.mxu0 %v2475_v22 }
 0x445   : > { %2537 = vmatpush.msra.mxu1 %v2476_v30  ;;  %5757 = vmatmul.msk.f32.vlgmr.msra.gmra.mxu0 %vm2199_vm1, %v2483_v58  ;;  %v9817_v30 = vld [vmem:[#allocation14_spill] sm:$0xff] }
 0x446   : > { %5759 = vmatmul.msk.f32.vlgmr.msra.gmra.mxu1 %vm2199_vm1, %v2483_v58  ;;  %5762 = vmatmul.msk.f32.gmra.mxu2 %vm2199_vm1, %v2484_v63 }
 0x447   : > { %5764 = vmatmul.msk.f32.gmra.mxu3 %vm2199_vm1, %v2484_v63  ;;  %6073 = vset.pattern.permute.xlu2 %v9794_v49 }
 0x448   : > { %3396 = vperm.xlu2 %6073, %v7157_v53   ;;  %6072 = vset.pattern.permute.xlu0 %v6320_v14 }
 0x449   : > { %v7484_v17 = vpop.permute.xlu2 %2770  ;;  %v7498_v55 = vpop.permute.xlu1 %2859  ;;  %3071 = vperm.xlu0 %6072, %v7289_v27   ;;  %6075 = vset.pattern.permute.xlu1 %v9775_v44 }
 0x44a   : > { %9802 = vst [vmem:[#allocation27_spill] sm:$0xff] %v7484_v17  ;;  %v7527_v9 = vpop.permute.xlu0 %2879 }
 0x44b   : > { %9806 = vst [vmem:[#allocation31_spill] sm:$0xff] %v7498_v55 }
 0x44d   : > { %5758 = vmatmul.msk.f32.gmra.mxu0 %vm2199_vm1, %v2484_v63 }
 0x44e   : > { %5760 = vmatmul.msk.f32.gmra.mxu1 %vm2199_vm1, %v2484_v63 }
 0x450   : > { %6076 = vset.pattern.permute.xlu2 %v9775_v44 }
 0x451   : > { %v7488_v0 = vpop.permute.xlu2 %3107  ;;  %v7504_v56 = vpop.permute.xlu1 %2746  ;;  %6074 = vset.pattern.permute.xlu0 %v9794_v49 }
 0x452   : > { %9803 = vst [vmem:[#allocation28_spill] sm:$0xff] %v7488_v0  ;;  %v7533_v49 = vpop.permute.xlu0 %2903 }
 0x459   : > { %v7490_v60 = vpop.permute.xlu2 %2794  ;;  %v7511_v35 = vpop.permute.xlu1 %2855 }
 0x45a   : > { %9804 = vst [vmem:[#allocation29_spill] sm:$0xff] %v7490_v60  ;;  %v7539_v41 = vpop.permute.xlu0 %3251 }
 0x45b   : > { %9812 = vst [vmem:[#allocation37_spill] sm:$0xff] %v7539_v41 }
 0x461   : > { %v7494_v36 = vpop.permute.xlu2 %3103  ;;  %v7517_v33 = vpop.permute.xlu1 %2742 }
 0x462   : > { %v7547_v28 = vpop.permute.xlu0 %3143 }
 0x469   : > { %v7500_v21 = vpop.permute.xlu2 %3147  ;;  %v7521_v34 = vpop.permute.xlu1 %2907 }
 0x46a   : > { %9807 = vst [vmem:[#allocation32_spill] sm:$0xff] %v7500_v21 }
 0x46b   : > { %9809 = vst [vmem:[#allocation34_spill] sm:$0xff] %v7521_v34 }
 0x471   : > { %v7509_v1 = vpop.permute.xlu2 %2927  ;;  %v7529_v39 = vpop.permute.xlu1 %3123 }
 0x472   : > { %9810 = vst [vmem:[#allocation35_spill] sm:$0xff] %v7529_v39 }
 0x479   : > { %v7515_v53 = vpop.permute.xlu2 %3247  ;;  %v7535_v44 = vpop.permute.xlu1 %2766 }
 0x481   : > { %v7519_v6 = vpop.permute.xlu2 %3291  ;;  %v7541_v42 = vpop.permute.xlu1 %2931 }
 0x482   : > { %9808 = vst [vmem:[#allocation33_spill] sm:$0xff] %v7519_v6 }
 0x483   : > { %9813 = vst [vmem:[#allocation38_spill] sm:$0xff] %v7541_v42 }
 0x489   : > { %v7525_v27 = vpop.permute.xlu2 %3287  ;;  %v7549_v20 = vpop.permute.xlu1 %3119 }
 0x48a   : > { %9814 = vst [vmem:[#allocation39_spill] sm:$0xff] %v7549_v20 }
 0x491   : > { %v7531_v50 = vpop.permute.xlu2 %3191  ;;  %v7602_v26 = vpop.permute.xlu1 %3267 }
 0x492   : > { %9823 = vst [vmem:[#allocation45_spill] sm:$0xff] %v7602_v26 }
 0x499   : > { %v7537_v7 = vpop.permute.xlu2 %3335 }
 0x49a   : > { %9811 = vst [vmem:[#allocation36_spill] sm:$0xff] %v7537_v7 }
 0x4a1   : > { %v7543_v57 = vpop.permute.xlu2 %3003 }
 0x4a9   : > { %v7589_v15 = vpop.permute.xlu2 %3027 }
 0x4b1   : > { %v7689_v19 = vpop.permute.xlu2 %3051 }
 0x4b2   : > { %9835 = vst [vmem:[#allocation56_spill] sm:$0xff] %v7689_v19 }
 0x4c2   : > { %v2516_v40 = vpop.f32.mrf.mxu0  ;;  %v2585_v59 = vpop.f32.mrf.mxu3 }
 0x4c3   : > { %v2517_v37 = vadd.f32 %v2516_v40, %v7393_v23  ;;  %v2539_v58 = vpop.f32.mrf.mxu1  ;;  %v2586_v31 = vadd.f32 %v2585_v59, %v7393_v23 }
 0x4c4   : > { %v2540_v61 = vadd.f32 %v2539_v58, %v7393_v23 }
 0x4c5   : > { %v7553_v45 = vmul.f32 %v2517_v37, %v9815_v25  ;;  %v7559_v63 = vmul.f32 %v2586_v31, %v9817_v30 }
 0x4c6   : > { %v7556_v22 = vmul.f32 %v2540_v61, %v9816_v2 }
 0x4c7   : > { %v7563_v3 = vmul.f32 %v7547_v28, %v7553_v45  ;;  %2601 = vrot.lane.b32.xlu2 %v7553_v45, %s6321_s1  ;;  %v7569_v14 = vmul.f32 %v7525_v27, %v7553_v45  ;;  %v7579_v37 = vmul.f32 %v7547_v28, %v7559_v63  ;;  %v7586_v31 = vmul.f32 %v7525_v27, %v7559_v63 }
 0x4c8   : > { %v7573_v40 = vmul.f32 %v7547_v28, %v7556_v22  ;;  %2654 = vrot.lane.b32.xlu0 %v7556_v22, %s6295_s8  ;;  %2605 = vrot.lane.b32.xlu1 %v7556_v22, %s6321_s1  ;;  %v7593_v8 = vmul.f32 %v7525_v27, %v7556_v22 }
 0x4c9   : > { %9818 = vst [vmem:[#allocation40_spill] sm:$0xff] %v7563_v3 }
 0x4ca   : > { %9819 = vst [vmem:[#allocation41_spill] sm:$0xff] %v7569_v14  ;;  %v2519_v58 = vpop.f32.mrf.mxu0  ;;  %v2588_v43 = vpop.f32.mrf.mxu3 }
 0x4cb   : > { %9820 = vst [vmem:[#allocation42_spill] sm:$0xff] %v7579_v37  ;;  %v2520_v59 = vadd.f32 %v2519_v58, %v7397_v46  ;;  %v2542_v61 = vpop.f32.mrf.mxu1  ;;  %v2589_v4 = vadd.f32 %v2588_v43, %v7397_v46 }
 0x4cc   : > { %9821 = vst [vmem:[#allocation43_spill] sm:$0xff] %v7586_v31  ;;  %v2543_v32 = vadd.f32 %v2542_v61, %v7397_v46 }
 0x4cd   : > { %v7597_v18 = vmul.f32 %v2520_v59, %v9815_v25  ;;  %v7605_v12 = vmul.f32 %v2589_v4, %v9817_v30  ;;  %v7629_v4 = vpop.permute.xlu1 %2790 }
 0x4ce   : > { %v7600_v58 = vmul.f32 %v2543_v32, %v9816_v2  ;;  %v2562_v2 = vpop.f32.mrf.mxu2 }
 0x4cf   : > { %v7609_v61 = vmul.f32 %v7589_v15, %v7597_v18  ;;  %2630 = vrot.lane.b32.xlu2 %v7556_v22, %s6293_s6  ;;  %v7621_v32 = vmul.f32 %v7589_v15, %v7605_v12  ;;  %v2563_v30 = vadd.f32 %v2562_v2, %v7393_v23 }
 0x4d0   : > { %9822 = vst [vmem:[#allocation44_spill] sm:$0xff] %v7600_v58  ;;  %v7615_v43 = vmul.f32 %v7589_v15, %v7600_v58  ;;  %2628 = vrot.lane.b32.xlu0 %v7597_v18, %s6293_s6  ;;  %2626 = vrot.lane.b32.xlu1 %v7553_v45, %s6293_s6 }
 0x4d1   : > { %9824 = vst [vmem:[#allocation46_spill] sm:$0xff] %v7609_v61  ;;  %v7651_v51 = vmul.f32 %v2563_v30, %v9829_v62  ;;  %v7679_v30 = vpop.permute.xlu0 %3167 }
 0x4d2   : > { %9825 = vst [vmem:[#allocation47_spill] sm:$0xff] %v7615_v43 }
 0x4d3   : > { %9826 = vst [vmem:[#allocation48_spill] sm:$0xff] %v7621_v32 }
 0x4d4   : > { %9832 = vst [vmem:[#allocation53_spill] sm:$0xff] %v7679_v30 }
 0x4d5   : > { %v7639_v25 = vpop.permute.xlu1 %3171 }
 0x4d6   : > { %9827 = vst [vmem:[#allocation49_spill] sm:$0xff] %v7639_v25  ;;  %v2565_v2 = vpop.f32.mrf.mxu2 }
 0x4d7   : > { %2650 = vrot.lane.b32.xlu2 %v7553_v45, %s6295_s8  ;;  %v2566_v16 = vadd.f32 %v2565_v2, %v7397_v46 }
 0x4d8   : > { %2652 = vrot.lane.b32.xlu0 %v7597_v18, %s6295_s8  ;;  %2678 = vrot.lane.b32.xlu1 %v7556_v22, %s6322_s17 }
 0x4d9   : > { %v7687_v29 = vmul.f32 %v2566_v16, %v9829_v62  ;;  %v7697_v46 = vpop.permute.xlu0 %3311  ;;  %v7703_v16 = vpop.permute.xlu2 %3396 }
 0x4da   : > { %9836 = vst [vmem:[#allocation57_spill] sm:$0xff] %v7697_v46 }
 0x4db   : > { %9834 = vst [vmem:[#allocation55_spill] sm:$0xff] %v7687_v29 }
 0x4dc   : > { %9838 = vst [vmem:[#allocation59_spill] sm:$0xff] %v7703_v16 }
 0x4dd   : > { %v7648_v59 = vpop.permute.xlu1 %3263 }
 0x4de   : > { %9828 = vst [vmem:[#allocation50_spill] sm:$0xff] %v7648_v59 }
 0x4df   : > { %2674 = vrot.lane.b32.xlu2 %v7553_v45, %s6322_s17 }
 0x4e0   : > { %2676 = vrot.lane.b32.xlu0 %v7597_v18, %s6322_s17  ;;  %2603 = vrot.lane.b32.xlu1 %v7597_v18, %s6321_s1 }
 0x4e1   : > { %v7705_v62 = vpop.permute.xlu0 %2983 }
 0x4e5   : > { %v7659_v24 = vpop.permute.xlu1 %3195 }
 0x4e6   : > { %9830 = vst [vmem:[#allocation51_spill] sm:$0xff] %v7659_v24 }
 0x4e7   : > { %2607 = vrot.lane.b32.xlu2 %v7600_v58, %s6321_s1 }
 0x4e8   : > { %2613 = vrot.lane.b32.xlu0 %v7559_v63, %s6321_s1  ;;  %2632 = vrot.lane.b32.xlu1 %v7600_v58, %s6293_s6 }
 0x4e9   : > { %v7713_v32 = vpop.permute.xlu0 %3047 }
 0x4ea   : > { %9840 = vst [vmem:[#allocation61_spill] sm:$0xff] %v7713_v32 }
 0x4ed   : > { %v7671_v23 = vpop.permute.xlu1 %3315 }
 0x4ee   : > { %9831 = vst [vmem:[#allocation52_spill] sm:$0xff] %v7671_v23 }
 0x4ef   : > { %2609 = vrot.lane.b32.xlu2 %v7651_v51, %s6321_s1 }
 0x4f0   : > { %2634 = vrot.lane.b32.xlu0 %v7651_v51, %s6293_s6  ;;  %2656 = vrot.lane.b32.xlu1 %v7600_v58, %s6295_s8 }
 0x4f1   : > { %v7717_v37 = vpop.permute.xlu0 %3071 }
 0x4f5   : > { %v7684_v13 = vpop.permute.xlu1 %3339 }
 0x4f6   : > { %9833 = vst [vmem:[#allocation54_spill] sm:$0xff] %v7684_v13 }
 0x4f7   : > { %2662 = vrot.lane.b32.xlu2 %v7559_v63, %s6295_s8 }
 0x4f8   : > { %2686 = vrot.lane.b32.xlu0 %v7559_v63, %s6322_s17  ;;  %2680 = vrot.lane.b32.xlu1 %v7600_v58, %s6322_s17 }
 0x4fd   : > { %v7699_v2 = vpop.permute.xlu1 %2987 }
 0x4fe   : > { %9837 = vst [vmem:[#allocation58_spill] sm:$0xff] %v7699_v2 }
 0x4ff   : > { %2682 = vrot.lane.b32.xlu2 %v7651_v51, %s6322_s17 }
 0x500   : > { %2640 = vrot.lane.b32.xlu0 %v7605_v12, %s6293_s6  ;;  %2638 = vrot.lane.b32.xlu1 %v7559_v63, %s6293_s6 }
 0x505   : > { %v7707_v43 = vpop.permute.xlu1 %2999 }
 0x507   : > { %2615 = vrot.lane.b32.xlu2 %v7605_v12, %s6321_s1 }
 0x508   : > { %2664 = vrot.lane.b32.xlu0 %v7605_v12, %s6295_s8  ;;  %2658 = vrot.lane.b32.xlu1 %v7651_v51, %s6295_s8 }
 0x50d   : > { %v3024_v31 = vpop.permute.xlu1 %3023 }
 0x50f   : > { %2636 = vrot.lane.b32.xlu2 %v7687_v29, %s6293_s6 }
 0x510   : > { %2688 = vrot.lane.b32.xlu0 %v7605_v12, %s6322_s17  ;;  %2611 = vrot.lane.b32.xlu1 %v7687_v29, %s6321_s1 }
 0x515   : > { %v7719_v3 = vpop.permute.xlu1 %3075 }
 0x516   : > { %9841 = vst [vmem:[#allocation62_spill] sm:$0xff] %v7719_v3 }
 0x517   : > { %2660 = vrot.lane.b32.xlu2 %v7687_v29, %s6295_s8 }
 0x51f   : > { %2684 = vrot.lane.b32.xlu2 %v7687_v29, %s6322_s17 }
 0x521   : > { %v7711_v61 = vpop.permute.xlu2 %2601 }
 0x522   : > { %9839 = vst [vmem:[#allocation60_spill] sm:$0xff] %v7711_v61 }
 0x529   : > { %v7715_v14 = vpop.permute.xlu2 %2630 }
 0x531   : > { %v7721_v13 = vpop.permute.xlu2 %2650 }
 0x539   : > { %v7723_v16 = vpop.permute.xlu2 %2674 }
 0x53a   : > { %v7725_v24 = vpop.permute.xlu0 %2654  ;;  %v7727_v42 = vpop.permute.xlu1 %2605 }
 0x53b   : > { %v2622_v26 = vsel %vm2617_vm3, %v7711_v61, %v7727_v42 }
 0x53c   : > { %v2991_v25 = vmul.f32 %v7705_v62, %v2622_v26  ;;  %v3111_v19 = vmul.f32 %v7494_v36, %v2622_v26  ;;  %v3255_v38 = vmul.f32 %v7515_v53, %v2622_v26 }
 0x541   : > { %v7730_v60 = vpop.permute.xlu2 %2607 }
 0x542   : > { %9842 = vst [vmem:[#allocation63_spill] sm:$0xff] %v7730_v60  ;;  %v7736_v39 = vpop.permute.xlu0 %2628  ;;  %v7738_v3 = vpop.permute.xlu1 %2626 }
 0x543   : > { %9843 = vst [vmem:[#allocation64_spill] sm:$0xff] %v7738_v3  ;;  %v2646_v23 = vsel %vm1879_vm13, %v7738_v3, %v7715_v14 }
 0x544   : > { %v3007_v34 = vmul.f32 %v7707_v43, %v2646_v23  ;;  %v3127_v17 = vmul.f32 %v7549_v20, %v2646_v23  ;;  %v3271_v41 = vmul.f32 %v7648_v59, %v2646_v23  ;;  %v7782_v20 = vmul.f32 %v3024_v31, %v7556_v22 }
 0x546   : > { %v7749_v0 = vadd.f32 %v3007_v34, %v2991_v25  ;;  %v3135_v55 = vadd.f32 %v3127_v17, %v3111_v19  ;;  %v3279_v61 = vadd.f32 %v3271_v41, %v3255_v38  ;;  %v7779_v41 = vmul.f32 %v3024_v31, %v7553_v45 }
 0x548   : > { %v7763_v59 = vadd.f32 %v7593_v8, %v3279_v61  ;;  %v7776_v38 = vadd.f32 %v7573_v40, %v3135_v55  ;;  %9849 = vst [vmem:[#allocation70_spill] sm:$0xff] %v7779_v41  ;;  %v7785_v8 = vmul.f32 %v3024_v31, %v7651_v51  ;;  %v7788_v61 = vmul.f32 %v3024_v31, %v7559_v63 }
 0x549   : > { %v7753_v11 = vpop.permute.xlu2 %2609  ;;  %v2887_v55 = vmul.f32 %v7527_v9, %v7556_v22  ;;  %v2750_v40 = vmul.f32 %v7517_v33, %v7556_v22  ;;  %v7819_v22 = vmul.f32 %v7517_v33, %v7559_v63 }
 0x54a   : > { %v7755_v3 = vpop.permute.xlu0 %2652  ;;  %v2679_v48 = vpop.permute.xlu1 %2678  ;;  %9845 = vst [vmem:[#allocation66_spill] sm:$0xff] %v7763_v59 }
 0x54b   : > { %9844 = vst [vmem:[#allocation65_spill] sm:$0xff] %v7755_v3  ;;  %v7760_v7 = vsel %vm2690_vm4, %v7723_v16, %v2679_v48 }
 0x54c   : > { %v7767_v19 = vmul.f32 %v7717_v37, %v7760_v7  ;;  %9848 = vst [vmem:[#allocation69_spill] sm:$0xff] %v7776_v38 }
 0x54d   : > { %9850 = vst [vmem:[#allocation71_spill] sm:$0xff] %v7785_v8 }
 0x54e   : > { %9846 = vst [vmem:[#allocation67_spill] sm:$0xff] %v7767_v19  ;;  %v7792_v19 = vmul.f32 %v7547_v28, %v7651_v51 }
 0x54f   : > { %9851 = vst [vmem:[#allocation72_spill] sm:$0xff] %v7788_v61  ;;  %v7815_v61 = vmul.f32 %v7527_v9, %v7651_v51 }
 0x550   : > { %9852 = vst [vmem:[#allocation73_spill] sm:$0xff] %v7792_v19  ;;  %v7837_v19 = vmul.f32 %v7525_v27, %v7651_v51 }
 0x551   : > { %v7769_v17 = vpop.permute.xlu2 %2662  ;;  %9854 = vst [vmem:[#allocation75_spill] sm:$0xff] %v7815_v61 }
 0x552   : > { %v7771_v34 = vpop.permute.xlu0 %2676  ;;  %v7773_v25 = vpop.permute.xlu1 %2603  ;;  %9855 = vst [vmem:[#allocation76_spill] sm:$0xff] %v7819_v22  ;;  %v2863_v22 = vmul.f32 %v7511_v35, %v2646_v23 }
 0x553   : > { %9847 = vst [vmem:[#allocation68_spill] sm:$0xff] %v7771_v34  ;;  %v7804_v41 = vsel %vm2617_vm3, %v7773_v25, %v7730_v60  ;;  %v7833_v60 = vmul.f32 %v7527_v9, %v7559_v63  ;;  %v7852_v63 = vmul.f32 %v7517_v33, %v7553_v45 }
 0x554   : > { %9853 = vst [vmem:[#allocation74_spill] sm:$0xff] %v7804_v41 }
 0x555   : > { %9858 = vst [vmem:[#allocation79_spill] sm:$0xff] %v7833_v60  ;;  %v2726_v60 = vmul.f32 %v7523_v54, %v2646_v23  ;;  %v2710_v23 = vmul.f32 %v7442_v5, %v2622_v26 }
 0x556   : > { %9859 = vst [vmem:[#allocation80_spill] sm:$0xff] %v7837_v19  ;;  %v7861_v19 = vmul.f32 %v7500_v21, %v7597_v18 }
 0x557   : > { %9862 = vst [vmem:[#allocation83_spill] sm:$0xff] %v7852_v63 }
 0x558   : > { %9863 = vst [vmem:[#allocation84_spill] sm:$0xff] %v7861_v19  ;;  %v7881_v19 = vmul.f32 %v7500_v21, %v7687_v29 }
 0x559   : > { %v7794_v59 = vpop.permute.xlu2 %2682 }
 0x55a   : > { %v7809_v31 = vsel %vm2690_vm4, %v2679_v48, %v7794_v59  ;;  %v7811_v28 = vpop.permute.xlu0 %2613  ;;  %v7821_v8 = vpop.permute.xlu1 %2632  ;;  %v7829_v48 = vmul.f32 %v7517_v33, %v7651_v51  ;;  %v2995_v51 = vmul.f32 %v7699_v2, %v7804_v41  ;;  %v7870_v33 = vmul.f32 %v7478_v10, %v7600_v58  ;;  %9866 = vst [vmem:[#allocation87_spill] sm:$0xff] %v7881_v19 }
 0x55b   : > { %v7825_v38 = vmul.f32 %v7717_v37, %v7809_v31  ;;  %v7844_v61 = vsel %vm1879_vm13, %v7736_v39, %v7821_v8  ;;  %v2672_v19 = vsel %vm1904_vm14, %v7769_v17, %v7721_v13 }
 0x55c   : > { %9857 = vst [vmem:[#allocation78_spill] sm:$0xff] %v7829_v48  ;;  %v3011_v27 = vmul.f32 %v7543_v57, %v7844_v61 }
 0x55d   : > { %9856 = vst [vmem:[#allocation77_spill] sm:$0xff] %v7825_v38  ;;  %v7848_v38 = vmul.f32 %v7527_v9, %v7553_v45  ;;  %v7865_v9 = vmul.f32 %v7589_v15, %v7687_v29  ;;  %v7874_v45 = vmul.f32 %v7504_v56, %v7600_v58  ;;  %v7885_v15 = vmul.f32 %v7504_v56, %v7605_v12 }
 0x55e   : > { %9860 = vst [vmem:[#allocation81_spill] sm:$0xff] %v7844_v61  ;;  %v7877_v63 = vadd.f32 %v3011_v27, %v2995_v51  ;;  %v7893_v58 = vmul.f32 %v7519_v6, %v7687_v29  ;;  %v2734_v51 = vadd.f32 %v2726_v60, %v2710_v23  ;;  %v7901_v27 = vmul.f32 %v7478_v10, %v7605_v12 }
 0x55f   : > { %9861 = vst [vmem:[#allocation82_spill] sm:$0xff] %v7848_v38  ;;  %v2847_v38 = vmul.f32 %v7465_v47, %v2622_v26  ;;  %v7897_v26 = vmul.f32 %v7504_v56, %v7687_v29  ;;  %v7919_v60 = vmul.f32 %v7519_v6, %v7597_v18  ;;  %v7923_v23 = vmul.f32 %v7478_v10, %v7597_v18 }
 0x560   : > { %9864 = vst [vmem:[#allocation85_spill] sm:$0xff] %v7865_v9  ;;  %v2670_v9 = vsel %vm1904_vm14, %v7721_v13, %v7725_v24  ;;  %v7987_v13 = vmul.f32 %v7509_v1, %v7760_v7 }
 0x561   : > { %9865 = vst [vmem:[#allocation86_spill] sm:$0xff] %v7877_v63  ;;  %v2871_v48 = vadd.f32 %v2863_v22, %v2847_v38  ;;  %v7905_v63 = vmul.f32 %v7500_v21, %v7605_v12  ;;  %v7909_v38 = vmul.f32 %v7519_v6, %v7605_v12  ;;  %v2620_v22 = vsel %vm2617_vm3, %v7727_v42, %v7753_v11 }
 0x562   : > { %9867 = vst [vmem:[#allocation88_spill] sm:$0xff] %v7885_v15  ;;  %v7915_v29 = vpop.permute.xlu0 %2634  ;;  %v7927_v21 = vmul.f32 %v7504_v56, %v7597_v18  ;;  %v7930_v12 = vmul.f32 %v7535_v44, %v2670_v9  ;;  %v7936_v42 = vmul.f32 %v7713_v32, %v2670_v9  ;;  %v7939_v6 = vmul.f32 %v7679_v30, %v2670_v9 }
 0x563   : > { %9868 = vst [vmem:[#allocation89_spill] sm:$0xff] %v7893_v58  ;;  %v7933_v58 = vmul.f32 %v7533_v49, %v2670_v9  ;;  %v7944_v10 = vmul.f32 %v7697_v46, %v2670_v9  ;;  %v7956_v56 = vsel %vm1879_vm13, %v7715_v14, %v7915_v29  ;;  %v7964_v9 = vmul.f32 %v7465_v47, %v2620_v22 }
 0x564   : > { %9869 = vst [vmem:[#allocation90_spill] sm:$0xff] %v7897_v26  ;;  %v7941_v26 = vpop.permute.xlu1 %2656  ;;  %v7974_v14 = vmul.f32 %v7494_v36, %v2620_v22 }
 0x565   : > { %9870 = vst [vmem:[#allocation91_spill] sm:$0xff] %v7901_v27  ;;  %v7950_v18 = vsel %vm1904_vm14, %v7755_v3, %v7941_v26  ;;  %v9888_v27 = vld [vmem:[#allocation60_spill] sm:$0xff] }
 0x566   : > { %9871 = vst [vmem:[#allocation92_spill] sm:$0xff] %v7905_v63  ;;  %v9887_v63 = vld [vmem:[#allocation25_spill] sm:$0xff]  ;;  %v9895_v3 = vld [vmem:[#allocation24_spill] sm:$0xff] }
 0x567   : > { %9872 = vst [vmem:[#allocation93_spill] sm:$0xff] %v7909_v38 }
 0x568   : > { %9873 = vst [vmem:[#allocation94_spill] sm:$0xff] %v7919_v60  ;;  %v8000_v60 = vmul.f32 %v7535_v44, %v2672_v19 }
 0x569   : > { %9874 = vst [vmem:[#allocation95_spill] sm:$0xff] %v7923_v23  ;;  %v7983_v23 = vmul.f32 %v7629_v4, %v7760_v7 }
 0x56a   : > { %9875 = vst [vmem:[#allocation96_spill] sm:$0xff] %v7927_v21  ;;  %v7970_v21 = vadd.f32 %v2750_v40, %v2734_v51  ;;  %v7991_v40 = vmul.f32 %v7531_v50, %v7760_v7  ;;  %v9884_v51 = vld [vmem:[#allocation36_spill] sm:$0xff] }
 0x56b   : > { %9876 = vst [vmem:[#allocation97_spill] sm:$0xff] %v7930_v12  ;;  %v7961_v12 = vmul.f32 %v7442_v5, %v2620_v22  ;;  %v7995_v38 = vmul.f32 %v9884_v51, %v7760_v7  ;;  %v8014_v7 = vmul.f32 %v7713_v32, %v2672_v19 }
 0x56c   : > { %9877 = vst [vmem:[#allocation98_spill] sm:$0xff] %v7933_v58  ;;  %v2992_v58 = vmul.f32 %v7705_v62, %v2620_v22 }
 0x56d   : > { %9878 = vst [vmem:[#allocation99_spill] sm:$0xff] %v7936_v42  ;;  %v7958_v42 = vadd.f32 %v2887_v55, %v2871_v48  ;;  %v7977_v55 = vmul.f32 %v7515_v53, %v2620_v22  ;;  %v3008_v48 = vmul.f32 %v7707_v43, %v7956_v56  ;;  %v7997_v22 = vpop.permute.xlu2 %2615 }
 0x56e   : > { %9879 = vst [vmem:[#allocation100_spill] sm:$0xff] %v7939_v6  ;;  %v9894_v6 = vld [vmem:[#allocation30_spill] sm:$0xff] }
 0x56f   : > { %9880 = vst [vmem:[#allocation101_spill] sm:$0xff] %v7944_v10  ;;  %v8008_v15 = vadd.f32 %v3008_v48, %v2992_v58  ;;  %v8011_v10 = vmul.f32 %v7533_v49, %v2672_v19  ;;  %v9896_v58 = vld [vmem:[#allocation31_spill] sm:$0xff] }
 0x570   : > { %9881 = vst [vmem:[#allocation102_spill] sm:$0xff] %v7983_v23  ;;  %v2730_v23 = vmul.f32 %v9887_v63, %v7844_v61  ;;  %v2867_v48 = vmul.f32 %v9896_v58, %v7844_v61 }
 0x571   : > { %9882 = vst [vmem:[#allocation103_spill] sm:$0xff] %v7987_v13  ;;  %v2624_v13 = vsel %vm2617_vm3, %v7811_v28, %v9888_v27  ;;  %v2851_v27 = vmul.f32 %v9895_v3, %v7804_v41 }
 0x572   : > { %9883 = vst [vmem:[#allocation104_spill] sm:$0xff] %v7991_v40  ;;  %v8020_v40 = vmul.f32 %v7697_v46, %v2672_v19  ;;  %v2709_v61 = vmul.f32 %v7442_v5, %v2624_v13  ;;  %v3254_v32 = vmul.f32 %v7515_v53, %v2624_v13 }
 0x573   : > { %9885 = vst [vmem:[#allocation36_spill] sm:$0xff] %v7995_v38  ;;  %v8017_v38 = vmul.f32 %v7679_v30, %v2672_v19  ;;  %v8038_v19 = vmul.f32 %v7509_v1, %v7809_v31 }
 0x574   : > { %9886 = vst [vmem:[#allocation105_spill] sm:$0xff] %v8000_v60  ;;  %v2714_v60 = vmul.f32 %v9894_v6, %v7804_v41  ;;  %v8042_v41 = vmul.f32 %v7531_v50, %v7809_v31 }
 0x575   : > { %9889 = vst [vmem:[#allocation25_spill] sm:$0xff] %v8008_v15  ;;  %v2687_v15 = vpop.permute.xlu0 %2686 }
 0x576   : > { %9890 = vst [vmem:[#allocation60_spill] sm:$0xff] %v8011_v10  ;;  %v2738_v10 = vadd.f32 %v2730_v23, %v2714_v60  ;;  %v2846_v60 = vmul.f32 %v7465_v47, %v2624_v13 }
 0x577   : > { %9891 = vst [vmem:[#allocation106_spill] sm:$0xff] %v8014_v7  ;;  %v2618_v7 = vsel %vm2617_vm3, %v7753_v11, %v7811_v28  ;;  %v8056_v28 = vsel %vm2690_vm4, %v7794_v59, %v2687_v15  ;;  %v2990_v59 = vmul.f32 %v7705_v62, %v2624_v13 }
 0x578   : > { %9892 = vst [vmem:[#allocation107_spill] sm:$0xff] %v8017_v38  ;;  %v8034_v38 = vmul.f32 %v7629_v4, %v7809_v31  ;;  %v8064_v46 = vmul.f32 %v7442_v5, %v2618_v7  ;;  %v8068_v23 = vmul.f32 %v7465_v47, %v2618_v7  ;;  %v2993_v30 = vmul.f32 %v7705_v62, %v2618_v7 }
 0x579   : > { %9893 = vst [vmem:[#allocation108_spill] sm:$0xff] %v8020_v40  ;;  %v8045_v40 = vpop.permute.xlu1 %2680  ;;  %v8078_v5 = vmul.f32 %v7494_v36, %v2618_v7  ;;  %v8083_v47 = vmul.f32 %v7717_v37, %v8056_v28 }
 0x57a   : > { %9897 = vst [vmem:[#allocation109_spill] sm:$0xff] %v8034_v38  ;;  %v8051_v11 = vsel %vm2690_vm4, %v7771_v34, %v8045_v40  ;;  %v2625_v34 = vsel %vm2617_vm3, %v7997_v22, %v7773_v25  ;;  %v8090_v25 = vmul.f32 %v7515_v53, %v2618_v7  ;;  %v8109_v53 = vadd.f32 %v7782_v20, %v7749_v0  ;;  %v9916_v0 = vld [vmem:[#allocation56_spill] sm:$0xff] }
 0x57b   : > { %9898 = vst [vmem:[#allocation110_spill] sm:$0xff] %v8038_v19  ;;  %v2713_v62 = vmul.f32 %v9894_v6, %v2625_v34  ;;  %v9914_v6 = vld [vmem:[#allocation34_spill] sm:$0xff]  ;;  %v8127_v20 = vmul.f32 %v9916_v0, %v7950_v18 }
 0x57c   : > { %9899 = vst [vmem:[#allocation111_spill] sm:$0xff] %v8042_v41  ;;  %v8061_v41 = vsel %vm2690_vm4, %v2687_v15, %v7723_v16  ;;  %v3110_v16 = vmul.f32 %v7494_v36, %v2624_v13  ;;  %v2875_v15 = vadd.f32 %v2867_v48, %v2851_v27  ;;  %v8094_v27 = vadd.f32 %v7874_v45, %v2738_v10  ;;  %v9909_v45 = vld [vmem:[#allocation28_spill] sm:$0xff] }
 0x57d   : > { %9900 = vst [vmem:[#allocation112_spill] sm:$0xff] %v8045_v40  ;;  %v8087_v38 = vmul.f32 %v7717_v37, %v8061_v41  ;;  %v8098_v36 = vmul.f32 %v9884_v51, %v7809_v31  ;;  %v2850_v13 = vmul.f32 %v9895_v3, %v2625_v34  ;;  %v2727_v48 = vmul.f32 %v7523_v54, %v7956_v56  ;;  %v9910_v31 = vld [vmem:[#allocation37_spill] sm:$0xff] }
 0x57e   : > { %9901 = vst [vmem:[#allocation113_spill] sm:$0xff] %v8068_v23  ;;  %v2864_v37 = vmul.f32 %v7511_v35, %v7956_v56  ;;  %v2994_v10 = vmul.f32 %v7699_v2, %v2625_v34  ;;  %v3114_v7 = vmul.f32 %v9909_v45, %v2625_v34  ;;  %v8123_v19 = vmul.f32 %v9914_v6, %v7950_v18 }
 0x57f   : > { %9902 = vst [vmem:[#allocation114_spill] sm:$0xff] %v8078_v5  ;;  %v2735_v6 = vadd.f32 %v2727_v48, %v7961_v12 }
 0x580   : > { %9903 = vst [vmem:[#allocation115_spill] sm:$0xff] %v8083_v47  ;;  %v8105_v47 = vpop.permute.xlu2 %2636 }
 0x581   : > { %9904 = vst [vmem:[#allocation116_spill] sm:$0xff] %v8087_v38  ;;  %v3258_v38 = vmul.f32 %v9910_v31, %v2625_v34  ;;  %v2639_v40 = vpop.permute.xlu1 %2638  ;;  %v2641_v34 = vpop.permute.xlu0 %2640  ;;  %v9922_v31 = vld [vmem:[#allocation64_spill] sm:$0xff] }
 0x582   : > { %9905 = vst [vmem:[#allocation117_spill] sm:$0xff] %v8090_v25 }
 0x583   : > { %9906 = vst [vmem:[#allocation118_spill] sm:$0xff] %v8094_v27  ;;  %v9912_v27 = vld [vmem:[#allocation27_spill] sm:$0xff] }
 0x584   : > { %9907 = vst [vmem:[#allocation119_spill] sm:$0xff] %v8098_v36  ;;  %v8115_v36 = vadd.f32 %v7870_v33, %v2875_v15  ;;  %v8119_v3 = vmul.f32 %v9912_v27, %v7950_v18  ;;  %v9919_v33 = vld [vmem:[#allocation49_spill] sm:$0xff] }
 0x585   : > { %9908 = vst [vmem:[#allocation120_spill] sm:$0xff] %v8109_v53  ;;  %v9918_v53 = vld [vmem:[#allocation39_spill] sm:$0xff]  ;;  %v8133_v15 = vmul.f32 %v9919_v33, %v7950_v18  ;;  %v2872_v33 = vadd.f32 %v2864_v37, %v7964_v9 }
 0x586   : > { %9911 = vst [vmem:[#allocation121_spill] sm:$0xff] %v8115_v36  ;;  %v3128_v45 = vmul.f32 %v9918_v53, %v7956_v56  ;;  %v9921_v36 = vld [vmem:[#allocation50_spill] sm:$0xff] }
 0x587   : > { %9913 = vst [vmem:[#allocation122_spill] sm:$0xff] %v8119_v3  ;;  %v3272_v3 = vmul.f32 %v9921_v36, %v7956_v56 }
 0x588   : > { %9915 = vst [vmem:[#allocation123_spill] sm:$0xff] %v8123_v19  ;;  %v2642_v19 = vsel %vm1879_vm13, %v7915_v29, %v2639_v40  ;;  %v2649_v29 = vsel %vm1879_vm13, %v2641_v34, %v7736_v39  ;;  %v3136_v9 = vadd.f32 %v3128_v45, %v7974_v14 }
 0x589   : > { %9917 = vst [vmem:[#allocation56_spill] sm:$0xff] %v8127_v20  ;;  %v2648_v20 = vsel %vm1879_vm13, %v2639_v40, %v9922_v31  ;;  %v3009_v56 = vmul.f32 %v7707_v43, %v2642_v19  ;;  %v9923_v40 = vld [vmem:[#allocation52_spill] sm:$0xff]  ;;  %v3280_v14 = vadd.f32 %v3272_v3, %v7977_v55  ;;  %v2659_v55 = vpop.permute.xlu1 %2658 }
 0x58a   : > { %9920 = vst [vmem:[#allocation39_spill] sm:$0xff] %v8133_v15  ;;  %v2725_v25 = vmul.f32 %v7523_v54, %v2648_v20  ;;  %v2862_v5 = vmul.f32 %v7511_v35, %v2648_v20  ;;  %v3006_v15 = vmul.f32 %v7707_v43, %v2648_v20  ;;  %v3126_v23 = vmul.f32 %v9918_v53, %v2648_v20 }
 0x58b   : > { %v8155_v31 = vmul.f32 %v9923_v40, %v7950_v18  ;;  %v8166_v43 = vsel %vm1879_vm13, %v7821_v8, %v8105_v47  ;;  %v8170_v2 = vadd.f32 %v3009_v56, %v2993_v30  ;;  %v3270_v18 = vmul.f32 %v9921_v36, %v2648_v20  ;;  %v9931_v8 = vld [vmem:[#allocation75_spill] sm:$0xff]  ;;  %v8192_v20 = vpop.permute.xlu2 %2660 }
 0x58c   : > { %v8157_v12 = vadd.f32 %v2725_v25, %v2709_v61  ;;  %v8159_v48 = vadd.f32 %v2862_v5, %v2846_v60  ;;  %9927 = vst [vmem:[#allocation125_spill] sm:$0xff] %v8166_v43  ;;  %v8168_v37 = vadd.f32 %v3006_v15, %v2990_v59  ;;  %v8172_v39 = vadd.f32 %v3126_v23, %v3110_v16  ;;  %v9930_v25 = vld [vmem:[#allocation35_spill] sm:$0xff]  ;;  %v9932_v59 = vld [vmem:[#allocation78_spill] sm:$0xff] }
 0x58d   : > { %9924 = vst [vmem:[#allocation50_spill] sm:$0xff] %v8155_v31  ;;  %v2729_v61 = vmul.f32 %v9887_v63, %v2649_v29  ;;  %v2866_v60 = vmul.f32 %v9896_v58, %v2649_v29  ;;  %v3010_v5 = vmul.f32 %v7543_v57, %v2649_v29  ;;  %v3130_v45 = vmul.f32 %v9930_v25, %v2649_v29  ;;  %v9954_v31 = vld [vmem:[#allocation114_spill] sm:$0xff] }
 0x58e   : > { %9925 = vst [vmem:[#allocation64_spill] sm:$0xff] %v8157_v12  ;;  %v8181_v12 = vadd.f32 %v9931_v8, %v2872_v33  ;;  %v8184_v30 = vadd.f32 %v9932_v59, %v2735_v6  ;;  %v8188_v23 = vmul.f32 %v9887_v63, %v8166_v43  ;;  %v8190_v16 = vadd.f32 %v3270_v18, %v3254_v32  ;;  %v9936_v8 = vld [vmem:[#allocation45_spill] sm:$0xff]  ;;  %v9939_v18 = vld [vmem:[#allocation38_spill] sm:$0xff] }
 0x58f   : > { %9926 = vst [vmem:[#allocation124_spill] sm:$0xff] %v8159_v48  ;;  %v8194_v15 = vadd.f32 %v2729_v61, %v2713_v62  ;;  %v8196_v3 = vadd.f32 %v2866_v60, %v2850_v13  ;;  %v3012_v33 = vmul.f32 %v7543_v57, %v8166_v43  ;;  %v8200_v56 = vadd.f32 %v3010_v5, %v2994_v10 }
 0x590   : > { %9928 = vst [vmem:[#allocation126_spill] sm:$0xff] %v8168_v37  ;;  %v8202_v6 = vadd.f32 %v3130_v45, %v3114_v7  ;;  %v3274_v59 = vmul.f32 %v9936_v8, %v2649_v29  ;;  %v9937_v37 = vld [vmem:[#allocation29_spill] sm:$0xff]  ;;  %v8211_v62 = vmul.f32 %v9939_v18, %v8051_v11  ;;  %v8215_v13 = vmul.f32 %v9930_v25, %v8166_v43  ;;  %v9942_v7 = vld [vmem:[#allocation62_spill] sm:$0xff]  ;;  %v9944_v29 = vld [vmem:[#allocation51_spill] sm:$0xff] }
 0x591   : > { %9929 = vst [vmem:[#allocation127_spill] sm:$0xff] %v8170_v2  ;;  %v8207_v32 = vmul.f32 %v9937_v37, %v8051_v11  ;;  %v8219_v10 = vmul.f32 %v9936_v8, %v8166_v43  ;;  %v8223_v61 = vmul.f32 %v9942_v7, %v8051_v11  ;;  %v8227_v60 = vmul.f32 %v9944_v29, %v8051_v11 }
 0x592   : > { %9933 = vst [vmem:[#allocation75_spill] sm:$0xff] %v8194_v15  ;;  %v8229_v5 = vadd.f32 %v3274_v59, %v3258_v38  ;;  %v8234_v45 = vsel %vm1904_vm14, %v7725_v24, %v2659_v55  ;;  %v8242_v43 = vmul.f32 %v7629_v4, %v8056_v28  ;;  %v8250_v38 = vmul.f32 %v7509_v1, %v8061_v41  ;;  %v2665_v15 = vpop.permute.xlu0 %2664 }
 0x593   : > { %9934 = vst [vmem:[#allocation78_spill] sm:$0xff] %v8196_v3  ;;  %v8254_v24 = vmul.f32 %v7531_v50, %v8061_v41  ;;  %v2936_v59 = vmul.f32 %v7509_v1, %v8056_v28  ;;  %v2728_v1 = vmul.f32 %v7523_v54, %v2642_v19  ;;  %v2865_v29 = vmul.f32 %v7511_v35, %v2642_v19  ;;  %v2612_v54 = vpop.permute.xlu1 %2611 }
 0x594   : > { %9935 = vst [vmem:[#allocation128_spill] sm:$0xff] %v8200_v56  ;;  %v9945_v56 = vld [vmem:[#allocation54_spill] sm:$0xff]  ;;  %v8296_v3 = vmul.f32 %v9884_v51, %v8056_v28  ;;  %v8309_v35 = vsel %vm2617_vm3, %v2612_v54, %v7997_v22 }
 0x595   : > { %9938 = vst [vmem:[#allocation129_spill] sm:$0xff] %v8207_v32  ;;  %v8238_v2 = vmul.f32 %v9945_v56, %v8051_v11  ;;  %v8258_v11 = vmul.f32 %v9884_v51, %v8061_v41  ;;  %v9948_v56 = vld [vmem:[#allocation73_spill] sm:$0xff] }
 0x596   : > { %9940 = vst [vmem:[#allocation38_spill] sm:$0xff] %v8211_v62  ;;  %v8263_v32 = vadd.f32 %v9948_v56, %v3136_v9  ;;  %v2774_v62 = vmul.f32 %v7535_v44, %v8234_v45  ;;  %v2643_v9 = vsel %vm1879_vm13, %v8105_v47, %v2641_v34  ;;  %v9949_v56 = vld [vmem:[#allocation80_spill] sm:$0xff] }
 0x597   : > { %9941 = vst [vmem:[#allocation130_spill] sm:$0xff] %v8219_v10  ;;  %v2911_v10 = vmul.f32 %v7533_v49, %v8234_v45  ;;  %v2732_v51 = vmul.f32 %v9887_v63, %v2643_v9  ;;  %v3013_v22 = vmul.f32 %v7543_v57, %v2643_v9 }
 0x598   : > { %9943 = vst [vmem:[#allocation62_spill] sm:$0xff] %v8223_v61  ;;  %v8246_v61 = vmul.f32 %v7629_v4, %v8061_v41  ;;  %v8269_v4 = vsel %vm1904_vm14, %v7941_v26, %v8192_v20  ;;  %v8277_v41 = vmul.f32 %v7531_v50, %v8056_v28  ;;  %v8286_v26 = vsel %vm1904_vm14, %v2659_v55, %v7769_v17  ;;  %v2685_v28 = vpop.permute.xlu2 %2684 }
 0x599   : > { %9946 = vst [vmem:[#allocation131_spill] sm:$0xff] %v8238_v2  ;;  %v3129_v2 = vmul.f32 %v9918_v53, %v2642_v19  ;;  %v3273_v50 = vmul.f32 %v9921_v36, %v2642_v19  ;;  %v8300_v47 = vmul.f32 %v9912_v27, %v8269_v4  ;;  %v8304_v17 = vmul.f32 %v9916_v0, %v8269_v4  ;;  %v9951_v19 = vld [vmem:[#allocation63_spill] sm:$0xff] }
 0x59a   : > { %9947 = vst [vmem:[#allocation132_spill] sm:$0xff] %v8258_v11  ;;  %v8289_v11 = vadd.f32 %v9949_v56, %v3280_v14  ;;  %v8314_v36 = vsel %vm2617_vm3, %v9951_v19, %v2612_v54  ;;  %v2919_v53 = vadd.f32 %v2911_v10, %v7958_v42  ;;  %v2782_v34 = vadd.f32 %v2774_v62, %v7970_v21  ;;  %v9952_v56 = vld [vmem:[#allocation58_spill] sm:$0xff]  ;;  %v9953_v19 = vld [vmem:[#allocation113_spill] sm:$0xff] }
 0x59b   : > { %9950 = vst [vmem:[#allocation73_spill] sm:$0xff] %v8304_v17  ;;  %v2912_v14 = vmul.f32 %v7533_v49, %v8286_v26  ;;  %v2736_v55 = vadd.f32 %v2728_v1, %v8064_v46  ;;  %v2996_v17 = vmul.f32 %v9952_v56, %v8314_v36  ;;  %v2997_v54 = vmul.f32 %v9952_v56, %v8309_v35  ;;  %v9955_v42 = vld [vmem:[#allocation117_spill] sm:$0xff]  ;;  %v9956_v46 = vld [vmem:[#allocation112_spill] sm:$0xff] }
 0x59c   : > { %v2873_v63 = vadd.f32 %v2865_v29, %v9953_v19  ;;  %v3137_v48 = vadd.f32 %v3129_v2, %v9954_v31  ;;  %v8330_v10 = vadd.f32 %v3273_v50, %v9955_v42  ;;  %v2869_v21 = vmul.f32 %v9896_v58, %v2643_v9  ;;  %v9959_v2 = vld [vmem:[#allocation110_spill] sm:$0xff]  ;;  %v9960_v50 = vld [vmem:[#allocation109_spill] sm:$0xff] }
 0x59d   : > { %v3133_v49 = vmul.f32 %v9930_v25, %v2643_v9  ;;  %v8337_v57 = vsel %vm2690_vm4, %v9956_v46, %v2685_v28  ;;  %v8339_v62 = vadd.f32 %v3012_v33, %v2996_v17  ;;  %v8341_v1 = vadd.f32 %v3013_v22, %v2997_v54  ;;  %v9961_v25 = vld [vmem:[#allocation61_spill] sm:$0xff]  ;;  %v9967_v54 = vld [vmem:[#allocation76_spill] sm:$0xff] }
 0x59e   : > { %v2775_v29 = vmul.f32 %v7535_v44, %v8286_v26  ;;  %v2943_v31 = vadd.f32 %v9959_v2, %v2919_v53  ;;  %v2806_v56 = vadd.f32 %v9960_v50, %v2782_v34  ;;  %v2920_v19 = vadd.f32 %v2912_v14, %v8181_v12  ;;  %v9964_v17 = vld [vmem:[#allocation65_spill] sm:$0xff]  ;;  %v9966_v34 = vld [vmem:[#allocation30_spill] sm:$0xff]  ;;  %v9969_v50 = vld [vmem:[#allocation40_spill] sm:$0xff] }
 0x59f   : > { %9957 = vst [vmem:[#allocation80_spill] sm:$0xff] %v8339_v62  ;;  %v3277_v42 = vmul.f32 %v9936_v8, %v2643_v9  ;;  %v8351_v58 = vmul.f32 %v9961_v25, %v8234_v45  ;;  %v8355_v33 = vmul.f32 %v9961_v25, %v8286_v26  ;;  %v2673_v44 = vsel %vm1904_vm14, %v2665_v15, %v9964_v17  ;;  %v9965_v53 = vld [vmem:[#allocation53_spill] sm:$0xff]  ;;  %v9983_v62 = vld [vmem:[#allocation68_spill] sm:$0xff] }
 0x5a0   : > { %9958 = vst [vmem:[#allocation63_spill] sm:$0xff] %v8341_v1  ;;  %v8362_v22 = vmul.f32 %v9965_v53, %v8234_v45  ;;  %v8367_v12 = vsel %vm1904_vm14, %v8192_v20, %v2665_v15  ;;  %2954 = vrot.lane.b32.xlu2 %v2943_v31, %s6302_s14  ;;  %2817 = vrot.lane.b32.xlu1 %v2806_v56, %s6323_s30 }
 0x5a1   : > { %9962 = vst [vmem:[#allocation58_spill] sm:$0xff] %v8351_v58  ;;  %v2944_v25 = vadd.f32 %v2936_v59, %v2920_v19  ;;  %v8373_v9 = vmul.f32 %v9937_v37, %v8337_v57  ;;  %v2716_v14 = vmul.f32 %v9966_v34, %v8309_v35  ;;  %v2760_v46 = vadd.f32 %v9967_v54, %v2736_v55  ;;  %v2689_v59 = vpop.permute.xlu0 %2688  ;;  %v9970_v19 = vld [vmem:[#allocation34_spill] sm:$0xff]  ;;  %v9973_v54 = vld [vmem:[#allocation105_spill] sm:$0xff] }
 0x5a2   : > { %9963 = vst [vmem:[#allocation113_spill] sm:$0xff] %v8355_v33  ;;  %v3176_v2 = vmul.f32 %v9965_v53, %v8286_v26  ;;  %v8382_v20 = vmul.f32 %v9942_v7, %v8337_v57  ;;  %v2780_v15 = vmul.f32 %v9912_v27, %v2673_v44  ;;  %v2783_v31 = vadd.f32 %v2775_v29, %v8184_v30  ;;  %v9974_v37 = vld [vmem:[#allocation49_spill] sm:$0xff] }
 0x5a3   : > { %2958 = vrot.lane.b32.xlu0 %v2944_v25, %s6302_s14  ;;  %v3158_v56 = vadd.f32 %v9969_v50, %v8172_v39  ;;  %v2917_v17 = vmul.f32 %v9970_v19, %v2673_v44  ;;  %v8392_v55 = vmul.f32 %v9916_v0, %v8367_v12  ;;  %v8395_v53 = vmul.f32 %v9916_v0, %v2673_v44  ;;  %v9975_v25 = vld [vmem:[#allocation24_spill] sm:$0xff] }
 0x5a4   : > { %9968 = vst [vmem:[#allocation114_spill] sm:$0xff] %v8382_v20  ;;  %v2784_v8 = vadd.f32 %v9973_v54, %v2760_v46  ;;  %v8399_v27 = vmul.f32 %v9974_v37, %v2673_v44  ;;  %v2853_v30 = vmul.f32 %v9975_v25, %v8309_v35  ;;  %v3184_v29 = vadd.f32 %v3176_v2, %v8263_v32  ;;  %v9976_v39 = vld [vmem:[#allocation100_spill] sm:$0xff] }
 0x5a5   : > { %9971 = vst [vmem:[#allocation117_spill] sm:$0xff] %v8392_v55  ;;  %v3182_v50 = vadd.f32 %v9976_v39, %v3158_v56  ;;  %v8406_v20 = vmul.f32 %v9923_v40, %v2673_v44  ;;  %v2715_v58 = vmul.f32 %v9966_v34, %v8314_v36  ;;  %v2740_v0 = vadd.f32 %v2732_v51, %v2716_v14  ;;  %v9977_v55 = vld [vmem:[#allocation79_spill] sm:$0xff]  ;;  %v9978_v32 = vld [vmem:[#allocation104_spill] sm:$0xff]  ;;  %v9980_v39 = vld [vmem:[#allocation57_spill] sm:$0xff] }
 0x5a6   : > { %9972 = vst [vmem:[#allocation112_spill] sm:$0xff] %v8395_v53  ;;  %v8412_v46 = vsel %vm2690_vm4, %v2685_v28, %v2689_v59  ;;  %v2808_v54 = vadd.f32 %v8246_v61, %v2784_v8  ;;  %v2807_v53 = vadd.f32 %v8242_v43, %v2783_v31  ;;  %v2897_v33 = vadd.f32 %v9977_v55, %v2873_v63  ;;  %v9979_v56 = vld [vmem:[#allocation28_spill] sm:$0xff]  ;;  %v9981_v34 = vld [vmem:[#allocation42_spill] sm:$0xff]  ;;  %v9982_v14 = vld [vmem:[#allocation41_spill] sm:$0xff] }
 0x5a7   : > { %v3206_v2 = vadd.f32 %v9978_v32, %v3182_v50  ;;  %v3117_v44 = vmul.f32 %v9979_v56, %v8309_v35  ;;  %v3320_v40 = vmul.f32 %v9980_v39, %v8286_v26  ;;  %v3161_v51 = vadd.f32 %v9981_v34, %v3137_v48  ;;  %v9985_v63 = vld [vmem:[#allocation101_spill] sm:$0xff]  ;;  %v9987_v55 = vld [vmem:[#allocation88_spill] sm:$0xff] }
 0x5a8   : > { %v3302_v28 = vadd.f32 %v9982_v14, %v8190_v16  ;;  %v2877_v1 = vadd.f32 %v2869_v21, %v2853_v30  ;;  %v8428_v43 = vsel %vm2690_vm4, %v2689_v59, %v9983_v62  ;;  %2825 = vrot.lane.b32.xlu1 %v2808_v54, %s6323_s30  ;;  %v3208_v8 = vadd.f32 %v8277_v41, %v3184_v29  ;;  %v9984_v16 = vld [vmem:[#allocation37_spill] sm:$0xff]  ;;  %v9986_v41 = vld [vmem:[#allocation60_spill] sm:$0xff]  ;;  %v9988_v29 = vld [vmem:[#allocation107_spill] sm:$0xff] }
 0x5a9   : > { %2821 = vrot.lane.b32.xlu2 %v2807_v53, %s6323_s30  ;;  %v8435_v61 = vmul.f32 %v9975_v25, %v8314_v36  ;;  %v3116_v48 = vmul.f32 %v9979_v56, %v8314_v36  ;;  %v3261_v26 = vmul.f32 %v9984_v16, %v8309_v35  ;;  %v8443_v62 = vadd.f32 %v8188_v23, %v2715_v58  ;;  %v9989_v35 = vld [vmem:[#allocation36_spill] sm:$0xff] }
 0x5aa   : > { %v3326_v21 = vadd.f32 %v9985_v63, %v3302_v28  ;;  %v2921_v59 = vadd.f32 %v9986_v41, %v2897_v33  ;;  %v2915_v31 = vmul.f32 %v9970_v19, %v8269_v4  ;;  %v2764_v53 = vadd.f32 %v9987_v55, %v2740_v0  ;;  %v9990_v33 = vld [vmem:[#allocation91_spill] sm:$0xff]  ;;  %v9992_v0 = vld [vmem:[#allocation84_spill] sm:$0xff] }
 0x5ab   : > { %3222 = vrot.lane.b32.xlu0 %v3208_v8, %s6303_s29  ;;  %v3141_v25 = vadd.f32 %v3133_v49, %v3117_v44  ;;  %v3328_v30 = vadd.f32 %v3320_v40, %v8289_v11  ;;  %v3185_v50 = vadd.f32 %v9988_v29, %v3161_v51  ;;  %v3260_v58 = vmul.f32 %v9984_v16, %v8314_v36  ;;  %v9991_v40 = vld [vmem:[#allocation43_spill] sm:$0xff]  ;;  %v9993_v51 = vld [vmem:[#allocation121_spill] sm:$0xff] }
 0x5ac   : > { %v3350_v54 = vadd.f32 %v9989_v35, %v3326_v21  ;;  %v2939_v23 = vmul.f32 %v9939_v18, %v8337_v57  ;;  %v8457_v32 = vadd.f32 %v2780_v15, %v2764_v53  ;;  %v2901_v34 = vadd.f32 %v9990_v33, %v2877_v1  ;;  %v9995_v63 = vld [vmem:[#allocation39_spill] sm:$0xff]  ;;  %v10000_v53 = vld [vmem:[#allocation124_spill] sm:$0xff]  ;;  %v10005_v33 = vld [vmem:[#allocation78_spill] sm:$0xff] }
 0x5ad   : > { %v3285_v14 = vadd.f32 %v3277_v42, %v3261_v26  ;;  %v8462_v49 = vmul.f32 %v9942_v7, %v8412_v46  ;;  %v3305_v11 = vadd.f32 %v9991_v40, %v8330_v10  ;;  %v3162_v44 = vadd.f32 %v9992_v0, %v8202_v6  ;;  %v9994_v26 = vld [vmem:[#allocation118_spill] sm:$0xff]  ;;  %v10003_v35 = vld [vmem:[#allocation64_spill] sm:$0xff]  ;;  %v10009_v0 = vld [vmem:[#allocation75_spill] sm:$0xff] }
 0x5ae   : > { %v8470_v36 = vmul.f32 %v9942_v7, %v8428_v43  ;;  %v2945_v15 = vadd.f32 %v8250_v38, %v2921_v59  ;;  %v2923_v28 = vadd.f32 %v2915_v31, %v9993_v51  ;;  %v8474_v1 = vadd.f32 %v2917_v17, %v2901_v34  ;;  %v9996_v17 = vld [vmem:[#allocation108_spill] sm:$0xff]  ;;  %v10006_v34 = vld [vmem:[#allocation95_spill] sm:$0xff] }
 0x5af   : > { %v3352_v42 = vadd.f32 %v8296_v3, %v3328_v30  ;;  %v3209_v8 = vadd.f32 %v8254_v24, %v3185_v50  ;;  %v2786_v10 = vadd.f32 %v8300_v47, %v9994_v26  ;;  %v3186_v21 = vadd.f32 %v9995_v63, %v3162_v44  ;;  %v9997_v24 = vld [vmem:[#allocation92_spill] sm:$0xff]  ;;  %v9998_v47 = vld [vmem:[#allocation94_spill] sm:$0xff]  ;;  %v10013_v26 = vld [vmem:[#allocation97_spill] sm:$0xff] }
 0x5b0   : > { %2962 = vrot.lane.b32.xlu1 %v2945_v15, %s6302_s14  ;;  %v2947_v6 = vadd.f32 %v2939_v23, %v2923_v28  ;;  %v3140_v7 = vadd.f32 %v8215_v13, %v3116_v48  ;;  %v3180_v38 = vmul.f32 %v9974_v37, %v8367_v12  ;;  %v3329_v41 = vadd.f32 %v9996_v17, %v3305_v11  ;;  %v9999_v48 = vld [vmem:[#allocation93_spill] sm:$0xff]  ;;  %v10001_v30 = vld [vmem:[#allocation82_spill] sm:$0xff]  ;;  %v10010_v44 = vld [vmem:[#allocation96_spill] sm:$0xff] }
 0x5b1   : > { %3214 = vrot.lane.b32.xlu2 %v3206_v2, %s6303_s29  ;;  %v8488_v3 = vadd.f32 %v8227_v60, %v3186_v21  ;;  %v3165_v59 = vadd.f32 %v9997_v24, %v3141_v25  ;;  %v3306_v31 = vadd.f32 %v9998_v47, %v8229_v5  ;;  %v2810_v2 = vadd.f32 %v8373_v9, %v2786_v10  ;;  %v10002_v25 = vld [vmem:[#allocation50_spill] sm:$0xff]  ;;  %v10004_v5 = vld [vmem:[#allocation83_spill] sm:$0xff] }
 0x5b2   : > { %v3319_v13 = vmul.f32 %v9980_v39, %v8234_v45  ;;  %v3309_v55 = vadd.f32 %v9999_v48, %v3285_v14  ;;  %v2894_v29 = vadd.f32 %v10001_v30, %v10000_v53  ;;  %v2757_v23 = vadd.f32 %v10004_v5, %v10003_v35  ;;  %v10007_v9 = vld [vmem:[#allocation66_spill] sm:$0xff]  ;;  %v10012_v28 = vld [vmem:[#allocation131_spill] sm:$0xff]  ;;  %v10023_v5 = vld [vmem:[#allocation129_spill] sm:$0xff] }
 0x5b3   : > { %3366 = vrot.lane.b32.xlu0 %v3352_v42, %s6324_s20  ;;  %v8501_v60 = vadd.f32 %v8399_v27, %v3165_v59  ;;  %v3330_v50 = vadd.f32 %v10002_v25, %v3306_v31  ;;  %v2898_v40 = vadd.f32 %v10006_v34, %v10005_v33  ;;  %v10008_v39 = vld [vmem:[#allocation98_spill] sm:$0xff]  ;;  %v2761_v15 = vadd.f32 %v10010_v44, %v10009_v0  ;;  %v10011_v27 = vld [vmem:[#allocation87_spill] sm:$0xff]  ;;  %v10024_v33 = vld [vmem:[#allocation25_spill] sm:$0xff] }
 0x5b4   : > { %v3327_v11 = vadd.f32 %v3319_v13, %v10007_v9  ;;  %v8510_v45 = vadd.f32 %v8406_v20, %v3309_v55  ;;  %v2918_v14 = vadd.f32 %v10008_v39, %v2894_v29  ;;  %v3164_v51 = vadd.f32 %v10011_v27, %v3140_v7  ;;  %v10014_v63 = vld [vmem:[#allocation123_spill] sm:$0xff]  ;;  %v10018_v13 = vld [vmem:[#allocation122_spill] sm:$0xff]  ;;  %v10027_v9 = vld [vmem:[#allocation72_spill] sm:$0xff] }
 0x5b5   : > { %v8517_v42 = vadd.f32 %v10012_v28, %v3330_v50  ;;  %v2781_v10 = vadd.f32 %v10013_v26, %v2757_v23  ;;  %v2922_v21 = vadd.f32 %v10014_v63, %v2898_v40  ;;  %v10015_v17 = vld [vmem:[#allocation51_spill] sm:$0xff]  ;;  %v2785_v48 = vadd.f32 %v10018_v13, %v2761_v15  ;;  %v10019_v55 = vld [vmem:[#allocation130_spill] sm:$0xff]  ;;  %v10022_v50 = vld [vmem:[#allocation69_spill] sm:$0xff] }
 0x5b6   : > { %v3204_v24 = vmul.f32 %v10015_v17, %v8412_v46  ;;  %v10016_v59 = vld [vmem:[#allocation119_spill] sm:$0xff]  ;;  %v3284_v7 = vadd.f32 %v10019_v55, %v3260_v58  ;;  %v10020_v53 = vld [vmem:[#allocation102_spill] sm:$0xff]  ;;  %v3183_v35 = vadd.f32 %v8362_v22, %v10022_v50  ;;  %v3188_v39 = vadd.f32 %v3180_v38, %v3164_v51  ;;  %v10029_v44 = vld [vmem:[#allocation80_spill] sm:$0xff] }
 0x5b7   : > { %v8524_v20 = vadd.f32 %v10016_v59, %v3327_v11  ;;  %v10017_v47 = vld [vmem:[#allocation103_spill] sm:$0xff]  ;;  %v8532_v30 = vadd.f32 %v10020_v53, %v2781_v10  ;;  %v10021_v29 = vld [vmem:[#allocation38_spill] sm:$0xff]  ;;  %v8542_v23 = vadd.f32 %v10023_v5, %v2785_v48  ;;  %v10030_v15 = vld [vmem:[#allocation85_spill] sm:$0xff] }
 0x5b8   : > { %v8527_v31 = vadd.f32 %v10017_v47, %v2918_v14  ;;  %v8535_v25 = vadd.f32 %v10021_v29, %v2922_v21  ;;  %3226 = vrot.lane.b32.xlu1 %v3209_v8, %s6303_s29  ;;  %v10025_v34 = vld [vmem:[#allocation71_spill] sm:$0xff]  ;;  %v3044_v22 = vadd.f32 %v10030_v15, %v10029_v44  ;;  %v10032_v8 = vld [vmem:[#allocation48_spill] sm:$0xff]  ;;  %v10034_v10 = vld [vmem:[#allocation106_spill] sm:$0xff] }
 0x5b9   : > { %3358 = vrot.lane.b32.xlu2 %v3350_v54, %s6324_s20  ;;  %v3040_v40 = vadd.f32 %v10025_v34, %v10024_v33  ;;  %v10026_v58 = vld [vmem:[#allocation127_spill] sm:$0xff]  ;;  %v10033_v54 = vld [vmem:[#allocation113_spill] sm:$0xff]  ;;  %v10035_v21 = vld [vmem:[#allocation128_spill] sm:$0xff] }
 0x5ba   : > { %v3041_v11 = vadd.f32 %v10027_v9, %v10026_v58  ;;  %v10028_v14 = vld [vmem:[#allocation111_spill] sm:$0xff]  ;;  %v10036_v59 = vld [vmem:[#allocation46_spill] sm:$0xff]  ;;  %v10039_v48 = vld [vmem:[#allocation117_spill] sm:$0xff] }
 0x5bb   : > { %v8549_v0 = vadd.f32 %v10028_v14, %v3183_v35  ;;  %v10031_v27 = vld [vmem:[#allocation63_spill] sm:$0xff]  ;;  %2956 = vrot.lane.b32.xlu0 %v2947_v6, %s6302_s14  ;;  %v3064_v26 = vadd.f32 %v10033_v54, %v3040_v40  ;;  %v3042_v47 = vadd.f32 %v10036_v59, %v10035_v21  ;;  %v10037_v13 = vld [vmem:[#allocation86_spill] sm:$0xff]  ;;  %v3068_v55 = vadd.f32 %v10039_v48, %v3044_v22  ;;  %v10040_v53 = vld [vmem:[#allocation112_spill] sm:$0xff] }
 0x5bc   : > { %v3045_v28 = vadd.f32 %v10032_v8, %v10031_v27  ;;  %v3065_v63 = vadd.f32 %v10034_v10, %v3041_v11  ;;  %v10038_v38 = vld [vmem:[#allocation47_spill] sm:$0xff]  ;;  %v10041_v50 = vld [vmem:[#allocation126_spill] sm:$0xff]  ;;  %v10043_v33 = vld [vmem:[#allocation120_spill] sm:$0xff] }
 0x5bd   : > { %v3043_v51 = vadd.f32 %v10038_v38, %v10037_v13  ;;  %v10042_v35 = vld [vmem:[#allocation70_spill] sm:$0xff]  ;;  %v10045_v58 = vld [vmem:[#allocation116_spill] sm:$0xff]  ;;  %v10046_v9 = vld [vmem:[#allocation115_spill] sm:$0xff]  ;;  %v8577_v22 = vadd.f32 %v8462_v49, %v3068_v55 }
 0x5be   : > { %v3069_v29 = vadd.f32 %v10040_v53, %v3045_v28  ;;  %v3038_v5 = vadd.f32 %v10042_v35, %v10041_v50  ;;  %v10044_v34 = vld [vmem:[#allocation58_spill] sm:$0xff]  ;;  %v8569_v40 = vadd.f32 %v10045_v58, %v3065_v63  ;;  %v8572_v11 = vadd.f32 %v10046_v9, %v3064_v26  ;;  %v10047_v14 = vld [vmem:[#allocation56_spill] sm:$0xff]  ;;  %v10048_v15 = vld [vmem:[#allocation73_spill] sm:$0xff] }
 0x5bf   : > { %v3063_v6 = vadd.f32 %v10044_v34, %v10043_v33  ;;  %v3066_v44 = vadd.f32 %v10047_v14, %v3042_v47  ;;  %v3067_v27 = vadd.f32 %v10048_v15, %v3043_v51  ;;  %v10049_v28 = vld [vmem:[#allocation99_spill] sm:$0xff]  ;;  %v10050_v10 = vld [vmem:[#allocation77_spill] sm:$0xff]  ;;  %v10051_v63 = vld [vmem:[#allocation132_spill] sm:$0xff] }
 0x5c0   : > { %v8580_v8 = vadd.f32 %v8470_v36, %v3069_v29  ;;  %v3062_v54 = vadd.f32 %v10049_v28, %v3038_v5  ;;  %v3353_v59 = vadd.f32 %v10051_v63, %v3329_v41  ;;  %v10052_v26 = vld [vmem:[#allocation90_spill] sm:$0xff]  ;;  %v10055_v49 = vld [vmem:[#allocation125_spill] sm:$0xff]  ;;  %v10056_v55 = vld [vmem:[#allocation31_spill] sm:$0xff] }
 0x5c1   : > { %v8584_v21 = vadd.f32 %v10050_v10, %v3063_v6  ;;  %v2763_v13 = vadd.f32 %v10052_v26, %v8443_v62  ;;  %v10053_v38 = vld [vmem:[#allocation62_spill] sm:$0xff]  ;;  %v2868_v36 = vmul.f32 %v10056_v55, %v10055_v49  ;;  %v10057_v53 = vld [vmem:[#allocation67_spill] sm:$0xff]  ;;  %2819 = vrot.lane.b32.xlu2 %v2810_v2, %s6323_s30  ;;  %v3212_v62 = vadd.f32 %v3204_v24, %v3188_v39  ;;  %v10059_v41 = vld [vmem:[#allocation89_spill] sm:$0xff] }
 0x5c2   : > { %v8590_v47 = vadd.f32 %v10053_v38, %v3066_v44  ;;  %v10054_v51 = vld [vmem:[#allocation114_spill] sm:$0xff]  ;;  %v8598_v29 = vadd.f32 %v10057_v53, %v3062_v54  ;;  %v10058_v50 = vld [vmem:[#allocation27_spill] sm:$0xff]  ;;  %3370 = vrot.lane.b32.xlu1 %v3353_v59, %s6324_s20  ;;  %v3308_v5 = vadd.f32 %v10059_v41, %v3284_v7  ;;  %v10060_v34 = vld [vmem:[#allocation52_spill] sm:$0xff]  ;;  %v2916_v10 = vmul.f32 %v9970_v19, %v8367_v12 }
 0x5c3   : > { %v8593_v48 = vadd.f32 %v10054_v51, %v3067_v27  ;;  %v2779_v35 = vmul.f32 %v10058_v50, %v8367_v12  ;;  %v2876_v33 = vadd.f32 %v2868_v36, %v8435_v61  ;;  %3224 = vrot.lane.b32.xlu0 %v3212_v62, %s6303_s29  ;;  %v3324_v6 = vmul.f32 %v10060_v34, %v8367_v12  ;;  %v10061_v9 = vld [vmem:[#allocation29_spill] sm:$0xff]  ;;  %v10062_v27 = vld [vmem:[#allocation55_spill] sm:$0xff]  ;;  %v10063_v2 = vld [vmem:[#allocation26_spill] sm:$0xff] }
 0x5c4   : > { %v2803_v14 = vmul.f32 %v10061_v9, %v8412_v46  ;;  %v2804_v44 = vmul.f32 %v10061_v9, %v8428_v43  ;;  %v2892_v24 = vmul.f32 %v10063_v2, %v10062_v27  ;;  %v10064_v61 = vld [vmem:[#allocation54_spill] sm:$0xff]  ;;  %v10065_v26 = vld [vmem:[#allocation81_spill] sm:$0xff]  ;;  %v2940_v38 = vmul.f32 %v9939_v18, %v8412_v46  ;;  %v10068_v50 = vld [vmem:[#allocation44_spill] sm:$0xff] }
 0x5c5   : > { %v2787_v58 = vadd.f32 %v2779_v35, %v2763_v13  ;;  %v3332_v15 = vadd.f32 %v3324_v6, %v3308_v5  ;;  %v3348_v39 = vmul.f32 %v10064_v61, %v8412_v46  ;;  %v10066_v13 = vld [vmem:[#allocation35_spill] sm:$0xff]  ;;  %v2941_v51 = vmul.f32 %v9939_v18, %v8428_v43  ;;  %v10067_v49 = vld [vmem:[#allocation74_spill] sm:$0xff]  ;;  %v10069_v46 = vld [vmem:[#allocation32_spill] sm:$0xff] }
 0x5c6   : > { %v2812_v7 = vadd.f32 %v2804_v44, %v8457_v32  ;;  %v2900_v54 = vadd.f32 %v2892_v24, %v2876_v33  ;;  %v3131_v32 = vmul.f32 %v10066_v13, %v10065_v26  ;;  %v3115_v12 = vmul.f32 %v9979_v56, %v10067_v49  ;;  %v8635_v53 = vld [vmem:[%s6501_s23] sm:$0xff] }
 0x5c7   : > { %v2811_v28 = vadd.f32 %v2803_v14, %v2787_v58  ;;  %v3356_v63 = vadd.f32 %v3348_v39, %v3332_v15  ;;  %v2949_v19 = vadd.f32 %v2941_v51, %v8474_v1  ;;  %v3155_v35 = vmul.f32 %v10069_v46, %v10068_v50 }
 0x5c8   : > { %v2924_v59 = vadd.f32 %v2916_v10, %v2900_v54  ;;  %v3139_v36 = vadd.f32 %v3131_v32, %v3115_v12  ;;  %v3179_v18 = vmul.f32 %v9974_v37, %v8269_v4  ;;  %v3205_v56 = vmul.f32 %v10015_v17, %v8428_v43 }
 0x5c9   : > { %2827 = vrot.lane.b32.xlu2 %v2812_v7, %s6323_s30  ;;  %v3203_v62 = vmul.f32 %v10015_v17, %v8337_v57  ;;  %v10070_v37 = vmov 9   ;;  %v3349_v6 = vmul.f32 %v10064_v61, %v8428_v43  ;;  %v8667_v43 = vld [vmem:[%s6501_s23 + $0x8] sm:$0xff]  ;;  %v3323_v17 = vmul.f32 %v10060_v34, %v8269_v4  ;;  %s6331_s23 = smov (!%p5821_p10), 48  }
 0x5ca   : > { %2823 = vrot.lane.b32.xlu1 %v2811_v28, %s6323_s30  ;;  %v2948_v55 = vadd.f32 %v2940_v38, %v2924_v59  ;;  %v3163_v1 = vadd.f32 %v3155_v35, %v3139_v36  ;;  %v3213_v5 = vadd.f32 %v3205_v56, %v8501_v60  ;;  %v10073_v14 = vmov 7  }
 0x5cb   : > { %3368 = vrot.lane.b32.xlu0 %v3356_v63, %s6324_s20  ;;  %v3357_v58 = vadd.f32 %v3349_v6, %v8510_v45  ;;  %v3259_v45 = vmul.f32 %v9984_v16, %v10067_v49 }
 0x5cc   : > { %v3187_v41 = vadd.f32 %v3179_v18, %v3163_v1 }
 0x5ce   : > { %v3211_v33 = vadd.f32 %v3203_v62, %v3187_v41 }
 0x5d1   : > { %2964 = vrot.lane.b32.xlu2 %v2949_v19, %s6302_s14 }
 0x5d2   : > { %2960 = vrot.lane.b32.xlu1 %v2948_v55, %s6302_s14 }
 0x5d3   : > { %3392 = vperm.xlu0 %6074, %v8635_v53  }
 0x5d9   : > { %3216 = vrot.lane.b32.xlu2 %v8488_v3, %s6303_s29  ;;  %v10071_v3 = vld [vmem:[#allocation45_spill] sm:$0xff] }
 0x5da   : > { %3228 = vrot.lane.b32.xlu1 %v3213_v5, %s6303_s29  ;;  %v3275_v60 = vmul.f32 %v10071_v3, %v10065_v26 }
 0x5db   : > { %3220 = vrot.lane.b32.xlu0 %v3211_v33, %s6303_s29 }
 0x5dc   : > { %6077 = vset.pattern.permute.xlu0 %v10070_v37 }
 0x5e1   : > { %3360 = vrot.lane.b32.xlu2 %v8517_v42, %s6324_s20  ;;  %v3283_v42 = vadd.f32 %v3275_v60, %v3259_v45 }
 0x5e2   : > { %3372 = vrot.lane.b32.xlu1 %v3357_v58, %s6324_s20 }
 0x5e3   : > { %3362 = vrot.lane.b32.xlu0 %v8524_v20, %s6324_s20  ;;  %v10072_v20 = vld [vmem:[#allocation33_spill] sm:$0xff] }
 0x5e9   : > { %2950 = vrot.lane.b32.xlu2 %v8527_v31, %s6302_s14  ;;  %v3299_v31 = vmul.f32 %v10072_v20, %v10068_v50 }
 0x5ea   : > { %2813 = vrot.lane.b32.xlu1 %v8532_v30, %s6323_s30  ;;  %v3347_v30 = vmul.f32 %v10064_v61, %v8337_v57 }
 0x5eb   : > { %3520 = vperm.xlu0 %6077, %v8667_v43   ;;  %v3307_v9 = vadd.f32 %v3299_v31, %v3283_v42 }
 0x5ed   : > { %v3331_v16 = vadd.f32 %v3323_v17, %v3307_v9 }
 0x5ef   : > { %v3355_v44 = vadd.f32 %v3347_v30, %v3331_v16 }
 0x5f1   : > { %2952 = vrot.lane.b32.xlu2 %v8535_v25, %s6302_s14  ;;  %v10074_v25 = vmov 0  }
 0x5f2   : > { %2815 = vrot.lane.b32.xlu1 %v8542_v23, %s6323_s30  ;;  %v10075_v23 = vmov 6  }
 0x5f3   : > { %6082 = vset.pattern.permute.xlu0 %v10073_v14 }
 0x5f4   : > { %3804 = vperm.xlu0 %6082, %v8635_v53  }
 0x5f9   : > { %3364 = vrot.lane.b32.xlu2 %v3355_v44, %s6324_s20 }
 0x5fa   : > { %3218 = vrot.lane.b32.xlu1 %v8549_v0, %s6303_s29  ;;  %v8687_v4 = vpop.permute.xlu2 %2954 }
 0x5fc   : > { %6085 = vset.pattern.permute.xlu0 %v10074_v25 }
 0x601   : > { %3410 = vperm.xlu2 %6076, %v8635_v53  }
 0x602   : > { %3414 = vperm.xlu1 %6075, %v8667_v43  }
 0x603   : > { %v2822_v57 = vpop.permute.xlu2 %2821 }
 0x609   : > { %6079 = vset.pattern.permute.xlu2 %v10075_v23 }
 0x60a   : > { %6078 = vset.pattern.permute.xlu1 %v10070_v37  ;;  %3792 = vperm.xlu2 %6079, %v8667_v43  }
 0x60b   : > { %3516 = vperm.xlu1 %6078, %v8635_v53   ;;  %v8696_v34 = vpop.permute.xlu2 %3214 }
 0x612   : > { %6081 = vset.pattern.permute.xlu2 %v10073_v14  ;;  %v8700_v0 = vpop.permute.xlu1 %2817 }
 0x613   : > { %6080 = vset.pattern.permute.xlu1 %v10075_v23  ;;  %3808 = vperm.xlu2 %6081, %v8667_v43   ;;  %v8704_v15 = vpop.permute.xlu2 %3358  ;;  %v2832_v19 = vsel %vm2829_vm5, %v8700_v0, %v2822_v57 }
 0x614   : > { %3788 = vperm.xlu1 %6080, %v8635_v53  }
 0x615   : > { %v2959_v27 = vpop.permute.xlu0 %2958 }
 0x616   : > { %v2968_v36 = vsel %vm1995_vm15, %v8687_v4, %v2959_v27 }
 0x617   : > { %v2976_v41 = vadd.f32 %v2968_v36, %v2832_v19 }
 0x619   : > { %v3096_v45 = vadd.f32 %v8572_v11, %v2976_v41 }
 0x61a   : > { %v8706_v2 = vpop.permute.xlu1 %2825 }
 0x61b   : > { %6084 = vset.pattern.permute.xlu2 %v10074_v25  ;;  %v8710_v24 = vpop.permute.xlu2 %2819  ;;  %v2830_v62 = vsel %vm2829_vm5, %v2822_v57, %v8706_v2 }
 0x61c   : > { %6083 = vset.pattern.permute.xlu1 %v10074_v25 }
 0x61d   : > { %v8714_v61 = vpop.permute.xlu0 %3222 }
 0x622   : > { %v8712_v7 = vpop.permute.xlu1 %2962 }
 0x623   : > { %v8716_v39 = vpop.permute.xlu2 %2827  ;;  %v2966_v50 = vsel %vm1995_vm15, %v2959_v27, %v8712_v7  ;;  %v10076_v27 = vld [vmem:[#allocation59_spill] sm:$0xff] }
 0x624   : > { %v2977_v5 = vadd.f32 %v2966_v50, %v2830_v62 }
 0x625   : > { %v8718_v54 = vpop.permute.xlu0 %3366 }
 0x626   : > { %v3097_v42 = vadd.f32 %v8569_v40, %v2977_v5 }
 0x62a   : > { %v3227_v28 = vpop.permute.xlu1 %3226 }
 0x62b   : > { %v8720_v63 = vpop.permute.xlu2 %2964  ;;  %v3230_v3 = vsel %vm2156_vm0, %v8714_v61, %v3227_v28  ;;  %v3236_v60 = vsel %vm2156_vm0, %v3227_v28, %v8696_v34 }
 0x62c   : > { %v3240_v11 = vadd.f32 %v3230_v3, %v3096_v45  ;;  %v3241_v14 = vadd.f32 %v3236_v60, %v3097_v42 }
 0x62d   : > { %v8722_v59 = vpop.permute.xlu0 %2956 }
 0x633   : > { %v8724_v13 = vpop.permute.xlu2 %3216 }
 0x634   : > { %v3371_v10 = vpop.permute.xlu1 %3370 }
 0x635   : > { %v8726_v32 = vpop.permute.xlu0 %3224 }
 0x63b   : > { %v8729_v51 = vpop.permute.xlu2 %3360 }
 0x63c   : > { %v2824_v26 = vpop.permute.xlu1 %2823 }
 0x63d   : > { %v2831_v46 = vsel %vm2829_vm5, %v2824_v26, %v8716_v39  ;;  %v2833_v35 = vsel %vm2829_vm5, %v8710_v24, %v2824_v26  ;;  %v8752_v18 = vpop.permute.xlu0 %3368 }
 0x643   : > { %v2951_v17 = vpop.permute.xlu2 %2950 }
 0x644   : > { %v2961_v38 = vpop.permute.xlu1 %2960  ;;  %v2972_v19 = vsel %vm1995_vm15, %v8712_v7, %v2951_v17 }
 0x645   : > { %v2967_v49 = vsel %vm1995_vm15, %v2961_v38, %v8720_v63  ;;  %v2969_v12 = vsel %vm1995_vm15, %v8722_v59, %v2961_v38  ;;  %v3393_v25 = vpop.permute.xlu0 %3392 }
 0x646   : > { %v2980_v56 = vadd.f32 %v2969_v12, %v2833_v35  ;;  %v2981_v1 = vadd.f32 %v2967_v49, %v2831_v46  ;;  %v3407_v49 = vld [vmem:[%s6481_s19] sm:$0xff] }
 0x648   : > { %v3101_v6 = vadd.f32 %v8580_v8, %v2981_v1  ;;  %v3100_v58 = vadd.f32 %v8577_v22, %v2980_v56  ;;  %v3375_v22 = vsel %vm3374_vm6, %v8718_v54, %v3371_v10  ;;  %v3381_v8 = vsel %vm3374_vm6, %v3371_v10, %v8704_v15  ;;  %v3408_v56 = vld [vmem:[%s6481_s19 + $0x8] sm:$0xff]  ;;  %s6327_s19 = smov (!%p5821_p10), 127  }
 0x649   : > { %v3385_v57 = vadd.f32 %v3375_v22, %v3240_v11  ;;  %v3386_v23 = vadd.f32 %v3381_v8, %v3241_v14 }
 0x64b   : > { %v3401_v26 = vadd.f32 %v3393_v25, %v3385_v57  ;;  %v3402_v38 = vadd.f32 %v3393_v25, %v3386_v23  ;;  %v2953_v36 = vpop.permute.xlu2 %2952 }
 0x64c   : > { %v3229_v55 = vpop.permute.xlu1 %3228  ;;  %v2971_v1 = vsel %vm1995_vm15, %v2953_v36, %v8722_v59  ;;  %v2973_v7 = vsel %vm1995_vm15, %v8720_v63, %v2953_v36  ;;  %v2970_v63 = vsel %vm1995_vm15, %v2951_v17, %v8687_v4  ;;  %v10081_v36 = vld [vmem:[#allocation23_spill] sm:$0xff] }
 0x64d   : > { %v3231_v33 = vsel %vm2156_vm0, %v8726_v32, %v3229_v55  ;;  %v3237_v37 = vsel %vm2156_vm0, %v3229_v55, %v8724_v13  ;;  %v3221_v35 = vpop.permute.xlu0 %3220 }
 0x64e   : > { %v3244_v20 = vadd.f32 %v3231_v33, %v3100_v58  ;;  %v3245_v31 = vadd.f32 %v3237_v37, %v3101_v6  ;;  %v3235_v6 = vsel %vm2156_vm0, %v8724_v13, %v3221_v35 }
 0x653   : > { %v3365_v33 = vpop.permute.xlu2 %3364 }
 0x654   : > { %v3373_v30 = vpop.permute.xlu1 %3372  ;;  %v3378_v4 = vsel %vm3374_vm6, %v3365_v33, %v8752_v18 }
 0x655   : > { %v3376_v9 = vsel %vm3374_vm6, %v8752_v18, %v3373_v30  ;;  %v3382_v40 = vsel %vm3374_vm6, %v3373_v30, %v8729_v51  ;;  %v3363_v60 = vpop.permute.xlu0 %3362 }
 0x656   : > { %v3389_v16 = vadd.f32 %v3376_v9, %v3244_v20  ;;  %v3390_v44 = vadd.f32 %v3382_v40, %v3245_v31  ;;  %v3377_v30 = vsel %vm3374_vm6, %v3363_v60, %v8718_v54 }
 0x658   : > { %v3405_v28 = vadd.f32 %v10076_v27, %v3389_v16  ;;  %v3406_v10 = vadd.f32 %v10076_v27, %v3390_v44 }
 0x65a   : > { %3483 = vmatpush.msrb.mxu2 %v3405_v28  ;;  %3506 = vmatpush.msrb.mxu3 %v3406_v10 }
 0x65c   : > { %v2814_v12 = vpop.permute.xlu1 %2813  ;;  %3484 = vmatpush.msrb.mxu2 %v3401_v26  ;;  %3507 = vmatpush.msrb.mxu3 %v3402_v38 }
 0x65d   : > { %v2836_v55 = vsel %vm2829_vm5, %v8706_v2, %v2814_v12  ;;  %5769 = vmatmul.msk.f32.vlgmr.msrb.gmra.mxu2 %vm2199_vm1, %v3407_v49  ;;  %5771 = vmatmul.msk.f32.vlgmr.msrb.gmra.mxu3 %vm2199_vm1, %v3407_v49  ;;  %v2834_v2 = vsel %vm2829_vm5, %v2814_v12, %v8700_v0  ;;  %v3521_v44 = vpop.permute.xlu0 %3520 }
 0x65e   : > { %v2974_v50 = vadd.f32 %v2972_v19, %v2836_v55  ;;  %v2975_v0 = vadd.f32 %v2970_v63, %v2834_v2  ;;  %v10079_v19 = vld [vmem:[#allocation22_spill] sm:$0xff]  ;;  %v10085_v2 = vmov 0.0625  }
 0x660   : > { %v3094_v46 = vadd.f32 %v8598_v29, %v2974_v50  ;;  %v3095_v42 = vadd.f32 %v8584_v21, %v2975_v0  ;;  %v3379_v21 = vsel %vm3374_vm6, %v8704_v15, %v3363_v60  ;;  %v3411_v15 = vpop.permute.xlu2 %3410 }
 0x664   : > { %v2816_v62 = vpop.permute.xlu1 %2815 }
 0x665   : > { %v2835_v41 = vsel %vm2829_vm5, %v2816_v62, %v8710_v24  ;;  %v2837_v29 = vsel %vm2829_vm5, %v8716_v39, %v2816_v62  ;;  %5770 = vmatmul.msk.f32.gmra.mxu2 %vm2199_vm1, %v3408_v56  ;;  %5772 = vmatmul.msk.f32.gmra.mxu3 %vm2199_vm1, %v3408_v56  ;;  %v3233_v39 = vsel %vm2156_vm0, %v3221_v35, %v8726_v32 }
 0x666   : > { %v2978_v59 = vadd.f32 %v2973_v7, %v2837_v29  ;;  %v2979_v5 = vadd.f32 %v2971_v1, %v2835_v41 }
 0x668   : > { %v3098_v37 = vadd.f32 %v8590_v47, %v2978_v59  ;;  %v3099_v24 = vadd.f32 %v8593_v48, %v2979_v5  ;;  %v3380_v47 = vsel %vm3374_vm6, %v8729_v51, %v3365_v33 }
 0x66a   : > { %v3242_v58 = vadd.f32 %v3235_v6, %v3098_v37  ;;  %v3243_v3 = vadd.f32 %v3233_v39, %v3099_v24 }
 0x66c   : > { %v3387_v48 = vadd.f32 %v3380_v47, %v3242_v58  ;;  %v3388_v45 = vadd.f32 %v3378_v4, %v3243_v3  ;;  %v3219_v32 = vpop.permute.xlu1 %3218  ;;  %v10086_v3 = vld [vmem:[#allocation12_spill] sm:$0xff] }
 0x66d   : > { %v3232_v13 = vsel %vm2156_vm0, %v3219_v32, %v8714_v61  ;;  %v3234_v17 = vsel %vm2156_vm0, %v8696_v34, %v3219_v32  ;;  %v10088_v47 = vld [vmem:[#allocation16_spill] sm:$0xff] }
 0x66e   : > { %v3238_v20 = vadd.f32 %v3234_v17, %v3094_v46  ;;  %v3239_v18 = vadd.f32 %v3232_v13, %v3095_v42  ;;  %v3403_v31 = vadd.f32 %v10076_v27, %v3387_v48  ;;  %v3404_v51 = vadd.f32 %v10076_v27, %v3388_v45  ;;  %v10083_v46 = vld [vmem:[#allocation19_spill] sm:$0xff]  ;;  %v10090_v48 = vld [vmem:[#allocation18_spill] sm:$0xff]  ;;  %v10092_v42 = vld [vmem:[#allocation17_spill] sm:$0xff] }
 0x670   : > { %v3383_v22 = vadd.f32 %v3379_v21, %v3238_v20  ;;  %v3384_v61 = vadd.f32 %v3377_v30, %v3239_v18  ;;  %3437 = vmatpush.msrb.mxu0 %v3403_v31  ;;  %3460 = vmatpush.msrb.mxu1 %v3404_v51 }
 0x672   : > { %v3399_v8 = vadd.f32 %v3393_v25, %v3383_v22  ;;  %v3400_v34 = vadd.f32 %v3393_v25, %v3384_v61 }
 0x674   : > { %3438 = vmatpush.msrb.mxu0 %v3399_v8  ;;  %3461 = vmatpush.msrb.mxu1 %v3400_v34  ;;  %v3415_v54 = vpop.permute.xlu1 %3414 }
 0x675   : > { %5765 = vmatmul.msk.f32.vlgmr.msrb.gmra.mxu0 %vm2199_vm1, %v3407_v49  ;;  %5767 = vmatmul.msk.f32.vlgmr.msrb.gmra.mxu1 %vm2199_vm1, %v3407_v49  ;;  %v10077_v49 = vld [vmem:[#allocation21_spill] sm:$0xff] }
 0x67d   : > { %5766 = vmatmul.msk.f32.gmra.mxu0 %vm2199_vm1, %v3408_v56  ;;  %5768 = vmatmul.msk.f32.gmra.mxu1 %vm2199_vm1, %v3408_v56  ;;  %v3517_v16 = vpop.permute.xlu1 %3516 }
 0x6e0   : > { %v3486_v9 = vpop.f32.mrf.mxu2  ;;  %v3509_v40 = vpop.f32.mrf.mxu3 }
 0x6e1   : > { %v3487_v11 = vadd.f32 %v3486_v9, %v3411_v15  ;;  %v3510_v14 = vadd.f32 %v3509_v40, %v3411_v15 }
 0x6e3   : > { %v3525_v28 = vmul.f32 %v3517_v16, %v3487_v11  ;;  %v3526_v10 = vmul.f32 %v3517_v16, %v3510_v14 }
 0x6e5   : > { %v8859_v50 = vadd.f32 %v3525_v28, %v10081_v36  ;;  %v8864_v35 = vadd.f32 %v3526_v10, %v10083_v46 }
 0x6e7   : > { %10082 = vst [vmem:[#allocation61_spill] sm:$0xff] %v8859_v50  ;;  %v3621_v41 = vmul.f32 %v8859_v50, %v8859_v50  ;;  %v3622_v29 = vmul.f32 %v8864_v35, %v8864_v35 }
 0x6e8   : > { %v3489_v57 = vpop.f32.mrf.mxu2  ;;  %v3512_v25 = vpop.f32.mrf.mxu3  ;;  %10084 = vst [vmem:[#allocation65_spill] sm:$0xff] %v8864_v35 }
 0x6e9   : > { %v3490_v23 = vadd.f32 %v3489_v57, %v3415_v54  ;;  %v3513_v27 = vadd.f32 %v3512_v25, %v3415_v54 }
 0x6eb   : > { %v3529_v26 = vmul.f32 %v3521_v44, %v3490_v23  ;;  %v3530_v38 = vmul.f32 %v3521_v44, %v3513_v27 }
 0x6ed   : > { %v8853_v12 = vadd.f32 %v3529_v26, %v10077_v49  ;;  %v8856_v55 = vadd.f32 %v3530_v38, %v10079_v19 }
 0x6ef   : > { %10078 = vst [vmem:[#allocation110_spill] sm:$0xff] %v8853_v12  ;;  %3593 = vmatpush.msra.mxu2 %v8853_v12  ;;  %3613 = vmatpush.msra.mxu3 %v8856_v55  ;;  %v3625_v56 = vmul.f32 %v8853_v12, %v8853_v12  ;;  %v3626_v1 = vmul.f32 %v8856_v55, %v8856_v55 }
 0x6f0   : > { %10080 = vst [vmem:[#allocation109_spill] sm:$0xff] %v8856_v55 }
 0x6f1   : > { %3594 = vmatpush.msra.mxu2 %v8859_v50  ;;  %3614 = vmatpush.msra.mxu3 %v8864_v35 }
 0x6f2   : > { %v3440_v7 = vpop.f32.mrf.mxu0  ;;  %v3463_v62 = vpop.f32.mrf.mxu1  ;;  %5775 = vmatmul.msk.f32.vlgmr.msra.gmra.mxu2 %vm2199_vm1, %v10085_v2  ;;  %5776 = vmatmul.msk.f32.vlgmr.msra.gmra.mxu3 %vm2199_vm1, %v10085_v2 }
 0x6f3   : > { %3681 = vmatpush.msrb.mxu2 %v3625_v56  ;;  %3701 = vmatpush.msrb.mxu3 %v3626_v1  ;;  %v3441_v59 = vadd.f32 %v3440_v7, %v3411_v15  ;;  %v3464_v5 = vadd.f32 %v3463_v62, %v3411_v15  ;;  %v3832_v56 = vld [vmem:[%s6491_s15 + $0x28] sm:$0xff] }
 0x6f5   : > { %3682 = vmatpush.msrb.mxu2 %v3621_v41  ;;  %3702 = vmatpush.msrb.mxu3 %v3622_v29  ;;  %v3523_v24 = vmul.f32 %v3517_v16, %v3441_v59  ;;  %v3524_v39 = vmul.f32 %v3517_v16, %v3464_v5  ;;  %v3834_v16 = vld [vmem:[%s6491_s15 + $0x38] sm:$0xff]  ;;  %v8930_v41 = vpop.permute.xlu2 %3792 }
 0x6f6   : > { %3872 = vperm.xlu1 %6083, %v3834_v16  }
 0x6f7   : > { %v8891_v45 = vadd.f32 %v3523_v24, %v10090_v48  ;;  %v8894_v32 = vadd.f32 %v3524_v39, %v10092_v42  ;;  %v3829_v39 = vld [vmem:[%s6491_s15 + $0x10] sm:$0xff] }
 0x6f9   : > { %10091 = vst [vmem:[#allocation76_spill] sm:$0xff] %v8891_v45  ;;  %v3619_v20 = vmul.f32 %v8891_v45, %v8891_v45  ;;  %v3620_v18 = vmul.f32 %v8894_v32, %v8894_v32 }
 0x6fa   : > { %v3443_v63 = vpop.f32.mrf.mxu0  ;;  %v3466_v33 = vpop.f32.mrf.mxu1  ;;  %5779 = vmatmul.msk.f32.vlgmr.msrb.gmra.mxu2 %vm2199_vm1, %v10085_v2  ;;  %5780 = vmatmul.msk.f32.vlgmr.msrb.gmra.mxu3 %vm2199_vm1, %v10085_v2  ;;  %10093 = vst [vmem:[#allocation40_spill] sm:$0xff] %v8894_v32 }
 0x6fb   : > { %v3444_v0 = vadd.f32 %v3443_v63, %v3415_v54  ;;  %v3467_v37 = vadd.f32 %v3466_v33, %v3415_v54 }
 0x6fd   : > { %v3527_v6 = vmul.f32 %v3521_v44, %v3444_v0  ;;  %v3528_v58 = vmul.f32 %v3521_v44, %v3467_v37 }
 0x6fe   : > { %3862 = vperm.xlu1 %6083, %v3832_v56  }
 0x6ff   : > { %v8885_v4 = vadd.f32 %v3527_v6, %v10086_v3  ;;  %v8888_v60 = vadd.f32 %v3528_v58, %v10088_v47 }
 0x701   : > { %10087 = vst [vmem:[#allocation53_spill] sm:$0xff] %v8885_v4  ;;  %3553 = vmatpush.msra.mxu0 %v8885_v4  ;;  %3573 = vmatpush.msra.mxu1 %v8888_v60  ;;  %v3623_v13 = vmul.f32 %v8885_v4, %v8885_v4  ;;  %v3624_v17 = vmul.f32 %v8888_v60, %v8888_v60 }
 0x702   : > { %10089 = vst [vmem:[#allocation30_spill] sm:$0xff] %v8888_v60 }
 0x703   : > { %3554 = vmatpush.msra.mxu0 %v8891_v45  ;;  %3574 = vmatpush.msra.mxu1 %v8894_v32 }
 0x704   : > { %5773 = vmatmul.msk.f32.vlgmr.msra.gmra.mxu0 %vm2199_vm1, %v10085_v2  ;;  %5774 = vmatmul.msk.f32.vlgmr.msra.gmra.mxu1 %vm2199_vm1, %v10085_v2 }
 0x705   : > { %3641 = vmatpush.msrb.mxu0 %v3623_v13  ;;  %3661 = vmatpush.msrb.mxu1 %v3624_v17 }
 0x706   : > { %3847 = vperm.xlu1 %6083, %v3829_v39  }
 0x707   : > { %3642 = vmatpush.msrb.mxu0 %v3619_v20  ;;  %3662 = vmatpush.msrb.mxu1 %v3620_v18 }
 0x70c   : > { %5777 = vmatmul.msk.f32.vlgmr.msrb.gmra.mxu0 %vm2199_vm1, %v10085_v2  ;;  %5778 = vmatmul.msk.f32.vlgmr.msrb.gmra.mxu1 %vm2199_vm1, %v10085_v2 }
 0x775   : > { %v3596_v31 = vpop.f32.mrf.mxu2  ;;  %v3616_v51 = vpop.f32.mrf.mxu3 }
 0x776   : > { %v3709_v30 = vmul.f32 %v3596_v31, %v3596_v31  ;;  %v3710_v21 = vmul.f32 %v3616_v51, %v3616_v51  ;;  %v3721_v5 = vperm.slane %v3596_v31, 0  ;;  %v3722_v33 = vperm.slane %v3616_v51, 0  ;;  %v3789_v31 = vpop.permute.xlu1 %3788 }
 0x778   : > { %v3725_v58 = vsub.f32 %v8859_v50, %v3721_v5  ;;  %v3729_v3 = vsub.f32 %v8853_v12, %v3721_v5  ;;  %v3726_v13 = vsub.f32 %v8864_v35, %v3722_v33  ;;  %v3730_v17 = vsub.f32 %v8856_v55, %v3722_v33 }
 0x77d   : > { %v3684_v22 = vpop.f32.mrf.mxu2  ;;  %v3704_v61 = vpop.f32.mrf.mxu3 }
 0x77e   : > { %v3713_v8 = vsub.f32 %v3684_v22, %v3709_v30  ;;  %v3714_v34 = vsub.f32 %v3704_v61, %v3710_v21 }
 0x780   : > { %v3717_v54 = vmax.f32 %v3713_v8, 0.0  ;;  %v3718_v9 = vmax.f32 %v3714_v34, 0.0  ;;  %v3809_v34 = vpop.permute.xlu2 %3808 }
 0x781   : > { %v8916_v40 = vpop.f32.mrf.mxu0  ;;  %v8918_v15 = vpop.f32.mrf.mxu1 }
 0x782   : > { %v3733_v11 = vadd.f32 1e-06, %v3717_v54  ;;  %v3734_v14 = vadd.f32 1e-06, %v3718_v9  ;;  %v3707_v44 = vmul.f32 %v8916_v40, %v8916_v40  ;;  %v3708_v57 = vmul.f32 %v8918_v15, %v8918_v15 }
 0x784   : > { %6099 = vrsqrt.f32 %v3733_v11  ;;  %vm3761_vm9 = vweird.f32 %v3733_v11  ;;  %vm3771_vm11 = vweird.f32 %v3734_v14 }
 0x785   : > { %6101 = vrsqrt.f32 %v3734_v14 }
 0x789   : > { %v3644_v25 = vpop.f32.mrf.mxu0  ;;  %v3664_v23 = vpop.f32.mrf.mxu1 }
 0x78a   : > { %v6100_v27 = vpop.eup %6099  ;;  %v3711_v28 = vsub.f32 %v3644_v25, %v3707_v44  ;;  %v3712_v10 = vsub.f32 %v3664_v23, %v3708_v57  ;;  %v3805_v57 = vpop.permute.xlu0 %3804 }
 0x78b   : > { %v6102_v26 = vpop.eup %6101  ;;  %v3756_v38 = vmul.f32 %v6100_v27, %v3733_v11  ;;  %vm3762_vm7 = vweird.f32 %v6100_v27 }
 0x78c   : > { %v3766_v49 = vmul.f32 %v6102_v26, %v3734_v14  ;;  %v3715_v19 = vmax.f32 %v3711_v28, 0.0  ;;  %v3716_v36 = vmax.f32 %v3712_v10, 0.0  ;;  %vm3772_vm8 = vweird.f32 %v6102_v26  ;;  %vm3763_vm10 = vmor %vm3761_vm9, %vm3762_vm7  ;;  %v3827_v10 = vld [vmem:[%s6491_s15] sm:$0xff] }
 0x78d   : > { %v3757_v46 = vmul.f32 %v6100_v27, %v3756_v38  ;;  %vm3773_vm12 = vmor %vm3771_vm11, %vm3772_vm8  ;;  %3837 = vperm.xlu1 %6083, %v3827_v10   ;;  %vm4361_vm8 = vcmask 523264  }
 0x78e   : > { %v3767_v1 = vmul.f32 %v6102_v26, %v3766_v49  ;;  %v8926_v7 = vadd.f32 1e-06, %v3715_v19  ;;  %v8928_v62 = vadd.f32 1e-06, %v3716_v36  ;;  %v3819_v19 = vld [vmem:[%s6486_s24] sm:$0xff]  ;;  %v3720_v36 = vperm.slane %v8918_v15, 0 }
 0x78f   : > { %v3758_v2 = vmul.f32 0.5, %v3757_v46 }
 0x790   : > { %v3768_v29 = vmul.f32 0.5, %v3767_v1  ;;  %6103 = vrsqrt.f32 %v8926_v7  ;;  %vm3741_vm4 = vweird.f32 %v8926_v7  ;;  %vm3751_vm6 = vweird.f32 %v8928_v62 }
 0x791   : > { %v3759_v59 = vsub.f32 1.5, %v3758_v2  ;;  %6105 = vrsqrt.f32 %v8928_v62  ;;  %v3728_v5 = vsub.f32 %v8888_v60, %v3720_v36 }
 0x792   : > { %v3769_v63 = vsub.f32 1.5, %v3768_v29 }
 0x793   : > { %v3760_v0 = vmul.f32 %v6100_v27, %v3759_v59  ;;  %v3833_v59 = vld [vmem:[%s6491_s15 + $0x30] sm:$0xff] }
 0x794   : > { %v3770_v37 = vmul.f32 %v6102_v26, %v3769_v63  ;;  %3867 = vperm.xlu2 %6084, %v3833_v59  }
 0x795   : > { %v3764_v24 = vsel %vm3763_vm10, %v6100_v27, %v3760_v0 }
 0x796   : > { %v6104_v6 = vpop.eup %6103  ;;  %v3777_v47 = vperm.slane %v3764_v24, 0  ;;  %v3774_v48 = vsel %vm3773_vm12, %v6102_v26, %v3770_v37  ;;  %v3719_v26 = vperm.slane %v8916_v40, 0 }
 0x797   : > { %v6106_v42 = vpop.eup %6105  ;;  %v3778_v20 = vperm.slane %v3774_v48, 0  ;;  %v3736_v18 = vmul.f32 %v6104_v6, %v8926_v7  ;;  %vm3742_vm2 = vweird.f32 %v6104_v6 }
 0x798   : > { %v3746_v51 = vmul.f32 %v6106_v42, %v8928_v62  ;;  %v3785_v30 = vmul.f32 %v3777_v47, %v3729_v3  ;;  %v3781_v21 = vmul.f32 %v3777_v47, %v3725_v58  ;;  %vm3752_vm3 = vweird.f32 %v6106_v42  ;;  %vm3743_vm5 = vmor %vm3741_vm4, %vm3742_vm2  ;;  %v3820_v58 = vld [vmem:[%s6486_s24 + $0x8] sm:$0xff] }
 0x799   : > { %v3737_v22 = vmul.f32 %v6104_v6, %v3736_v18  ;;  %v3786_v61 = vmul.f32 %v3778_v20, %v3730_v17  ;;  %v3782_v8 = vmul.f32 %v3778_v20, %v3726_v13  ;;  %vm3753_vm7 = vmor %vm3751_vm6, %vm3752_vm3  ;;  %v3723_v15 = vsub.f32 %v8891_v45, %v3719_v26  ;;  %v3831_v20 = vld [vmem:[%s6491_s15 + $0x20] sm:$0xff]  ;;  %v3830_v18 = vld [vmem:[%s6491_s15 + $0x18] sm:$0xff] }
 0x79a   : > { %v3747_v54 = vmul.f32 %v6106_v42, %v3746_v51  ;;  %v3801_v9 = vmul.f32 %v8930_v41, %v3785_v30  ;;  %v3797_v11 = vmul.f32 %v3789_v31, %v3781_v21  ;;  %v3727_v7 = vsub.f32 %v8885_v4, %v3719_v26  ;;  %3852 = vperm.xlu0 %6085, %v3830_v18   ;;  %v3822_v21 = vld [vmem:[%s6486_s24 + $0x18] sm:$0xff] }
 0x79b   : > { %v3738_v14 = vmul.f32 0.5, %v3737_v22  ;;  %v3802_v16 = vmul.f32 %v8930_v41, %v3786_v61  ;;  %v3798_v44 = vmul.f32 %v3789_v31, %v3782_v8  ;;  %v3724_v62 = vsub.f32 %v8894_v32, %v3720_v36  ;;  %v3823_v22 = vld [vmem:[%s6486_s24 + $0x20] sm:$0xff]  ;;  %v3825_v61 = vld [vmem:[%s6486_s24 + $0x30] sm:$0xff]  ;;  %v9008_v8 = vpop.permute.xlu1 %3872 }
 0x79c   : > { %v3748_v25 = vmul.f32 0.5, %v3747_v54  ;;  %v3817_v23 = vadd.f32 %v3809_v34, %v3801_v9  ;;  %v3813_v49 = vadd.f32 %v3805_v57, %v3797_v11  ;;  %3857 = vperm.xlu2 %6084, %v3831_v20   ;;  %v10095_v30 = vmov 8  }
 0x79d   : > { %v3739_v27 = vsub.f32 1.5, %v3738_v14  ;;  %v3818_v28 = vadd.f32 %v3809_v34, %v3802_v16  ;;  %v3814_v56 = vadd.f32 %v3805_v57, %v3798_v44 }
 0x79e   : > { %v3749_v38 = vsub.f32 1.5, %v3748_v25  ;;  %3995 = vmatpush.msra.mxu2 %v3817_v23 }
 0x79f   : > { %v3740_v46 = vmul.f32 %v6104_v6, %v3739_v27  ;;  %4036 = vmatpush.msra.mxu3 %v3818_v28 }
 0x7a0   : > { %v3750_v1 = vmul.f32 %v6106_v42, %v3749_v38  ;;  %3996 = vmatpush.msra.mxu2 %v3813_v49 }
 0x7a1   : > { %v3744_v40 = vsel %vm3743_vm5, %v6104_v6, %v3740_v46  ;;  %4037 = vmatpush.msra.mxu3 %v3814_v56  ;;  %5797 = vmatmul.msk.f32.vlgmr.msra.gmra.mxu2 %vm2199_vm1, %v3819_v19 }
 0x7a2   : > { %v3775_v2 = vperm.slane %v3744_v40, 0  ;;  %v3754_v29 = vsel %vm3753_vm7, %v6106_v42, %v3750_v1  ;;  %5805 = vmatmul.msk.f32.vlgmr.msra.gmra.mxu3 %vm2199_vm1, %v3819_v19  ;;  %v10094_v42 = vmov 10   ;;  %6087 = vset.pattern.permute.xlu0 %v10095_v30 }
 0x7a3   : > { %v3776_v63 = vperm.slane %v3754_v29, 0  ;;  %6088 = vset.pattern.permute.xlu1 %v10094_v42  ;;  %4358 = vperm.xlu0 %6087, %v8667_v43   ;;  %v9010_v9 = vpop.permute.xlu1 %3862 }
 0x7a4   : > { %v3783_v33 = vmul.f32 %v3775_v2, %v3727_v7  ;;  %v3779_v0 = vmul.f32 %v3775_v2, %v3723_v15  ;;  %4461 = vperm.xlu1 %6088, %v8635_v53  }
 0x7a5   : > { %v3784_v37 = vmul.f32 %v3776_v63, %v3728_v5  ;;  %v3780_v24 = vmul.f32 %v3776_v63, %v3724_v62 }
 0x7a6   : > { %v3799_v39 = vmul.f32 %v8930_v41, %v3783_v33  ;;  %v3795_v6 = vmul.f32 %v3789_v31, %v3779_v0 }
 0x7a7   : > { %v3800_v3 = vmul.f32 %v8930_v41, %v3784_v37  ;;  %v3796_v47 = vmul.f32 %v3789_v31, %v3780_v24  ;;  %v3821_v41 = vld [vmem:[%s6486_s24 + $0x10] sm:$0xff]  ;;  %v3828_v31 = vld [vmem:[%s6491_s15 + $0x8] sm:$0xff]  ;;  %s6329_s15 = smov (!%p5821_p10), 64  }
 0x7a8   : > { %v3815_v48 = vadd.f32 %v3809_v34, %v3799_v39  ;;  %v3811_v17 = vadd.f32 %v3805_v57, %v3795_v6  ;;  %3842 = vperm.xlu2 %6084, %v3828_v31  }
 0x7a9   : > { %v3816_v13 = vadd.f32 %v3809_v34, %v3800_v3  ;;  %5798 = vmatmul.msk.f32.gmra.mxu2 %vm2199_vm1, %v3820_v58  ;;  %v3812_v51 = vadd.f32 %v3805_v57, %v3796_v47 }
 0x7aa   : > { %5806 = vmatmul.msk.f32.gmra.mxu3 %vm2199_vm1, %v3820_v58  ;;  %3913 = vmatpush.msra.mxu0 %v3815_v48 }
 0x7ab   : > { %3954 = vmatpush.msra.mxu1 %v3816_v13  ;;  %6090 = vset.pattern.permute.xlu0 %v10094_v42  ;;  %v3848_v25 = vpop.permute.xlu1 %3847 }
 0x7ac   : > { %3914 = vmatpush.msra.mxu0 %v3811_v17 }
 0x7ad   : > { %3955 = vmatpush.msra.mxu1 %v3812_v51  ;;  %5781 = vmatmul.msk.f32.vlgmr.msra.gmra.mxu0 %vm2199_vm1, %v3819_v19 }
 0x7ae   : > { %5789 = vmatmul.msk.f32.vlgmr.msra.gmra.mxu1 %vm2199_vm1, %v3819_v19 }
 0x7b0   : > { %6086 = vset.pattern.permute.xlu2 %v10095_v30 }
 0x7b1   : > { %5799 = vmatmul.msk.f32.gmra.mxu2 %vm2199_vm1, %v3821_v41  ;;  %4354 = vperm.xlu2 %6086, %v8635_v53   ;;  %v3824_v53 = vld [vmem:[%s6486_s24 + $0x28] sm:$0xff] }
 0x7b2   : > { %5807 = vmatmul.msk.f32.gmra.mxu3 %vm2199_vm1, %v3821_v41 }
 0x7b5   : > { %5782 = vmatmul.msk.f32.gmra.mxu0 %vm2199_vm1, %v3820_v58 }
 0x7b6   : > { %5790 = vmatmul.msk.f32.gmra.mxu1 %vm2199_vm1, %v3820_v58 }
 0x7b9   : > { %5800 = vmatmul.msk.f32.gmra.mxu2 %vm2199_vm1, %v3822_v21  ;;  %6089 = vset.pattern.permute.xlu2 %v10094_v42 }
 0x7ba   : > { %5808 = vmatmul.msk.f32.gmra.mxu3 %vm2199_vm1, %v3822_v21  ;;  %4465 = vperm.xlu2 %6089, %v8667_v43   ;;  %v3826_v43 = vld [vmem:[%s6486_s24 + $0x38] sm:$0xff]  ;;  %s6328_s24 = smov (!%p5821_p10), 96  }
 0x7bd   : > { %5783 = vmatmul.msk.f32.gmra.mxu0 %vm2199_vm1, %v3821_v41 }
 0x7be   : > { %5791 = vmatmul.msk.f32.gmra.mxu1 %vm2199_vm1, %v3821_v41 }
 0x7c1   : > { %5801 = vmatmul.msk.f32.gmra.mxu2 %vm2199_vm1, %v3823_v22 }
 0x7c2   : > { %5809 = vmatmul.msk.f32.gmra.mxu3 %vm2199_vm1, %v3823_v22 }
 0x7c5   : > { %5784 = vmatmul.msk.f32.gmra.mxu0 %vm2199_vm1, %v3822_v21 }
 0x7c6   : > { %5792 = vmatmul.msk.f32.gmra.mxu1 %vm2199_vm1, %v3822_v21 }
 0x7c9   : > { %5802 = vmatmul.msk.f32.gmra.mxu2 %vm2199_vm1, %v3824_v53 }
 0x7ca   : > { %5810 = vmatmul.msk.f32.gmra.mxu3 %vm2199_vm1, %v3824_v53 }
 0x7cd   : > { %5785 = vmatmul.msk.f32.gmra.mxu0 %vm2199_vm1, %v3823_v22 }
 0x7ce   : > { %5793 = vmatmul.msk.f32.gmra.mxu1 %vm2199_vm1, %v3823_v22 }
 0x7d1   : > { %5803 = vmatmul.msk.f32.gmra.mxu2 %vm2199_vm1, %v3825_v61 }
 0x7d2   : > { %5811 = vmatmul.msk.f32.gmra.mxu3 %vm2199_vm1, %v3825_v61 }
 0x7d5   : > { %5786 = vmatmul.msk.f32.gmra.mxu0 %vm2199_vm1, %v3824_v53 }
 0x7d6   : > { %5794 = vmatmul.msk.f32.gmra.mxu1 %vm2199_vm1, %v3824_v53 }
 0x7d9   : > { %5804 = vmatmul.msk.f32.gmra.mxu2 %vm2199_vm1, %v3826_v43 }
 0x7da   : > { %5812 = vmatmul.msk.f32.gmra.mxu3 %vm2199_vm1, %v3826_v43 }
 0x7dd   : > { %5787 = vmatmul.msk.f32.gmra.mxu0 %vm2199_vm1, %v3825_v61 }
 0x7de   : > { %5795 = vmatmul.msk.f32.gmra.mxu1 %vm2199_vm1, %v3825_v61 }
 0x7e5   : > { %5788 = vmatmul.msk.f32.gmra.mxu0 %vm2199_vm1, %v3826_v43 }
 0x7e6   : > { %5796 = vmatmul.msk.f32.gmra.mxu1 %vm2199_vm1, %v3826_v43 }
 0x7ee   : > { %v9012_v57 = vpop.permute.xlu2 %3867 }
 0x7f6   : > { %v3858_v26 = vpop.permute.xlu2 %3857 }
 0x7ff   : > { %v3838_v38 = vpop.permute.xlu1 %3837 }
 0x802   : > { %v3843_v7 = vpop.permute.xlu2 %3842 }
 0x80c   : > { %v3853_v41 = vpop.permute.xlu0 %3852 }
 0x824   : > { %v3998_v34 = vpop.f32.mrf.mxu2 }
 0x825   : > { %v4039_v54 = vpop.f32.mrf.mxu3  ;;  %v3999_v46 = vadd.f32 %v3998_v34, %v3838_v38 }
 0x826   : > { %v4040_v1 = vadd.f32 %v4039_v54, %v3838_v38 }
 0x827   : > { %v4097_v40 = vmul.f32 0.044715, %v3999_v46 }
 0x828   : > { %v4098_v15 = vmul.f32 0.044715, %v4040_v1 }
 0x829   : > { %v4129_v33 = vmul.f32 %v4097_v40, %v3999_v46 }
 0x82a   : > { %v3916_v11 = vpop.f32.mrf.mxu0  ;;  %v4130_v24 = vmul.f32 %v4098_v15, %v4040_v1 }
 0x82b   : > { %v3957_v14 = vpop.f32.mrf.mxu1  ;;  %v9018_v0 = vadd.f32 %v3916_v11, %v3838_v38  ;;  %v4161_v3 = vmul.f32 %v4129_v33, %v3999_v46  ;;  %v9074_v33 = vmul.f32 0.5, %v3999_v46 }
 0x82c   : > { %v4001_v16 = vpop.f32.mrf.mxu2  ;;  %v9020_v37 = vadd.f32 %v3957_v14, %v3838_v38  ;;  %v4162_v30 = vmul.f32 %v4130_v24, %v4040_v1 }
 0x82d   : > { %v4042_v44 = vpop.f32.mrf.mxu3  ;;  %v9014_v62 = vadd.f32 %v4001_v16, %v3843_v7  ;;  %10096 = vst [vmem:[#allocation34_spill] sm:$0xff] %v9018_v0  ;;  %v4193_v20 = vadd.f32 %v4161_v3, %v3999_v46  ;;  %v9037_v18 = vmul.f32 0.044715, %v9018_v0 }
 0x82e   : > { %v9016_v5 = vadd.f32 %v4042_v44, %v3843_v7  ;;  %10097 = vst [vmem:[#allocation105_spill] sm:$0xff] %v9020_v37  ;;  %v9040_v51 = vmul.f32 0.044715, %v9020_v37  ;;  %v4194_v38 = vadd.f32 %v4162_v30, %v4040_v1 }
 0x82f   : > { %v4101_v42 = vmul.f32 0.044715, %v9014_v62  ;;  %10102 = vst [vmem:[#allocation104_spill] sm:$0xff] %v9037_v18  ;;  %v4225_v11 = vmul.f32 0.7978846, %v4193_v20 }
 0x830   : > { %v4102_v13 = vmul.f32 0.044715, %v9016_v5  ;;  %10103 = vst [vmem:[#allocation28_spill] sm:$0xff] %v9040_v51  ;;  %v4226_v46 = vmul.f32 0.7978846, %v4194_v38 }
 0x831   : > { %6107 = vtanh.f32 %v4225_v11  ;;  %v9104_v11 = vmul.f32 0.5, %v9016_v5 }
 0x832   : > { %v3919_v23 = vpop.f32.mrf.mxu0  ;;  %6109 = vtanh.f32 %v4226_v46 }
 0x833   : > { %v3960_v27 = vpop.f32.mrf.mxu1  ;;  %v9022_v39 = vadd.f32 %v3919_v23, %v3843_v7  ;;  %v4134_v23 = vmul.f32 %v4102_v13, %v9016_v5  ;;  %10110 = vst [vmem:[#allocation60_spill] sm:$0xff] %v9104_v11 }
 0x834   : > { %v4004_v28 = vpop.f32.mrf.mxu2  ;;  %v9024_v6 = vadd.f32 %v3960_v27, %v3843_v7 }
 0x835   : > { %v4045_v10 = vpop.f32.mrf.mxu3  ;;  %10098 = vst [vmem:[#allocation49_spill] sm:$0xff] %v9022_v39  ;;  %v9026_v58 = vadd.f32 %v4004_v28, %v3848_v25  ;;  %v9043_v21 = vmul.f32 0.044715, %v9022_v39 }
 0x836   : > { %10099 = vst [vmem:[#allocation24_spill] sm:$0xff] %v9024_v6  ;;  %v9028_v47 = vadd.f32 %v4045_v10, %v3848_v25  ;;  %v9046_v22 = vmul.f32 0.044715, %v9024_v6 }
 0x837   : > { %10104 = vst [vmem:[#allocation57_spill] sm:$0xff] %v9043_v21  ;;  %v4105_v53 = vmul.f32 0.044715, %v9026_v58 }
 0x838   : > { %10105 = vst [vmem:[#allocation42_spill] sm:$0xff] %v9046_v22  ;;  %v4106_v43 = vmul.f32 0.044715, %v9028_v47 }
 0x839   : > { %v4137_v60 = vmul.f32 %v4105_v53, %v9026_v58 }
 0x83a   : > { %v3922_v49 = vpop.f32.mrf.mxu0  ;;  %v4138_v32 = vmul.f32 %v4106_v43, %v9028_v47 }
 0x83b   : > { %v3963_v19 = vpop.f32.mrf.mxu1  ;;  %v9030_v48 = vadd.f32 %v3922_v49, %v3848_v25 }
 0x83c   : > { %v4007_v36 = vpop.f32.mrf.mxu2  ;;  %v9034_v17 = vadd.f32 %v3963_v19, %v3848_v25  ;;  %v4133_v25 = vmul.f32 %v4101_v42, %v9014_v62 }
 0x83d   : > { %v4048_v56 = vpop.f32.mrf.mxu3  ;;  %10100 = vst [vmem:[#allocation100_spill] sm:$0xff] %v9030_v48  ;;  %v9051_v34 = vmul.f32 0.044715, %v9030_v48  ;;  %v9056_v16 = vadd.f32 %v4007_v36, %v3853_v41  ;;  %v4166_v36 = vmul.f32 %v4134_v23, %v9016_v5 }
 0x83e   : > { %10101 = vst [vmem:[#allocation79_spill] sm:$0xff] %v9034_v17  ;;  %v9054_v14 = vmul.f32 0.044715, %v9034_v17  ;;  %v4165_v40 = vmul.f32 %v4133_v25, %v9014_v62  ;;  %v9071_v15 = vadd.f32 %v4048_v56, %v3853_v41 }
 0x83f   : > { %10106 = vst [vmem:[#allocation41_spill] sm:$0xff] %v9051_v34  ;;  %v4198_v42 = vadd.f32 %v4166_v36, %v9016_v5  ;;  %v6108_v36 = vpop.eup %6107  ;;  %v4109_v34 = vmul.f32 0.044715, %v9056_v16 }
 0x840   : > { %10107 = vst [vmem:[#allocation68_spill] sm:$0xff] %v9054_v14  ;;  %v9125_v55 = vadd.f32 1.0, %v6108_v36  ;;  %v9135_v43 = vpop.eup %6109 }
 0x841   : > { %10111 = vst [vmem:[#allocation88_spill] sm:$0xff] %v9135_v43 }
 0x842   : > { %v3925_v2 = vpop.f32.mrf.mxu0 }
 0x843   : > { %v3966_v29 = vpop.f32.mrf.mxu1  ;;  %v9060_v27 = vadd.f32 %v3925_v2, %v3853_v41 }
 0x844   : > { %v4010_v59 = vpop.f32.mrf.mxu2  ;;  %v9062_v28 = vadd.f32 %v3966_v29, %v3853_v41 }
 0x845   : > { %v4051_v63 = vpop.f32.mrf.mxu3  ;;  %v9064_v10 = vadd.f32 %v4010_v59, %v3858_v26  ;;  %v4197_v59 = vadd.f32 %v4165_v40, %v9014_v62  ;;  %v9084_v24 = vmul.f32 0.044715, %v9060_v27 }
 0x846   : > { %v9066_v49 = vadd.f32 %v4051_v63, %v3858_v26  ;;  %v9081_v63 = vmul.f32 0.5, %v4040_v1  ;;  %v9087_v3 = vmul.f32 0.044715, %v9062_v28 }
 0x847   : > { %v4113_v13 = vmul.f32 0.044715, %v9064_v10  ;;  %v4229_v40 = vmul.f32 0.7978846, %v4197_v59 }
 0x848   : > { %10108 = vst [vmem:[#allocation37_spill] sm:$0xff] %v9081_v63  ;;  %v9092_v20 = vmul.f32 0.044715, %v9066_v49 }
 0x849   : > { %6111 = vtanh.f32 %v4229_v40 }
 0x84a   : > { %v3928_v31 = vpop.f32.mrf.mxu0 }
 0x84b   : > { %v3969_v61 = vpop.f32.mrf.mxu1  ;;  %v9076_v2 = vadd.f32 %v3928_v31, %v3858_v26 }
 0x84c   : > { %v4013_v54 = vpop.f32.mrf.mxu2  ;;  %v9078_v29 = vadd.f32 %v3969_v61, %v3858_v26 }
 0x84d   : > { %v4054_v44 = vpop.f32.mrf.mxu3  ;;  %v4014_v19 = vadd.f32 %v4013_v54, %v9010_v9  ;;  %v9101_v54 = vmul.f32 0.5, %v9014_v62  ;;  %v4230_v62 = vmul.f32 0.7978846, %v4198_v42 }
 0x84e   : > { %v4055_v7 = vadd.f32 %v4054_v44, %v9010_v9  ;;  %v9107_v44 = vmul.f32 0.044715, %v9076_v2  ;;  %v9110_v25 = vmul.f32 0.044715, %v9078_v29 }
 0x84f   : > { %v4117_v26 = vmul.f32 0.044715, %v4014_v19  ;;  %10109 = vst [vmem:[#allocation101_spill] sm:$0xff] %v9101_v54  ;;  %v9129_v35 = vmul.f32 0.5, %v4014_v19  ;;  %v9149_v6 = vpop.eup %6111 }
 0x850   : > { %v4118_v31 = vmul.f32 0.044715, %v4055_v7 }
 0x851   : > { %v4149_v52 = vmul.f32 %v4117_v26, %v4014_v19 }
 0x852   : > { %v3931_v56 = vpop.f32.mrf.mxu0  ;;  %v4150_v59 = vmul.f32 %v4118_v31, %v4055_v7  ;;  %v9133_v31 = vmul.f32 0.5, %v4055_v7 }
 0x853   : > { %v9095_v41 = vadd.f32 %v3931_v56, %v9010_v9  ;;  %v3972_v1 = vpop.f32.mrf.mxu1  ;;  %v9115_v56 = vmul.f32 0.5, %v9026_v58  ;;  %v4181_v45 = vmul.f32 %v4149_v52, %v4014_v19 }
 0x854   : > { %v9098_v30 = vadd.f32 %v3972_v1, %v9010_v9  ;;  %v4016_v61 = vpop.f32.mrf.mxu2  ;;  %v4182_v26 = vmul.f32 %v4150_v59, %v4055_v7 }
 0x855   : > { %v4017_v23 = vadd.f32 %v4016_v61, %v9012_v57  ;;  %v4057_v38 = vpop.f32.mrf.mxu3  ;;  %v9118_v5 = vmul.f32 0.044715, %v9095_v41  ;;  %v4213_v37 = vadd.f32 %v4181_v45, %v4014_v19  ;;  %v4145_v45 = vmul.f32 %v4113_v13, %v9064_v10 }
 0x856   : > { %v4058_v9 = vadd.f32 %v4057_v38, %v9012_v57  ;;  %v9122_v4 = vmul.f32 0.044715, %v9098_v30 }
 0x857   : > { %v4121_v1 = vmul.f32 0.044715, %v4017_v23  ;;  %v9127_v46 = vmul.f32 0.5, %v4017_v23  ;;  %v4245_v0 = vmul.f32 0.7978846, %v4213_v37  ;;  %v9155_v37 = vmul.f32 0.5, %v9064_v10 }
 0x858   : > { %v4122_v61 = vmul.f32 0.044715, %v4058_v9  ;;  %v9131_v51 = vmul.f32 0.5, %v4058_v9 }
 0x859   : > { %v4153_v38 = vmul.f32 %v4121_v1, %v4017_v23  ;;  %v4214_v1 = vadd.f32 %v4182_v26, %v4055_v7  ;;  %6113 = vtanh.f32 %v4245_v0 }
 0x85a   : > { %v3934_v42 = vpop.f32.mrf.mxu0  ;;  %v4154_v12 = vmul.f32 %v4122_v61, %v4058_v9  ;;  %v9141_v61 = vmul.f32 %v4137_v60, %v9026_v58  ;;  %v9152_v60 = vmul.f32 %v4138_v32, %v9028_v47  ;;  %6115 = vtanh.f32 %v4230_v62 }
 0x85b   : > { %v3975_v53 = vpop.f32.mrf.mxu1  ;;  %v4185_v50 = vmul.f32 %v4153_v38, %v4017_v23  ;;  %v9138_v52 = vadd.f32 %v3934_v42, %v9012_v57  ;;  %v4246_v22 = vmul.f32 0.7978846, %v4214_v1  ;;  %v4146_v32 = vmul.f32 %v9092_v20, %v9066_v49 }
 0x85c   : > { %v4019_v40 = vpop.f32.mrf.mxu2  ;;  %v4186_v36 = vmul.f32 %v4154_v12, %v4058_v9  ;;  %v9146_v19 = vadd.f32 %v3975_v53, %v9012_v57  ;;  %v9170_v20 = vmul.f32 0.5, %v9066_v49 }
 0x85d   : > { %v4020_v59 = vadd.f32 %v4019_v40, %v9008_v8  ;;  %v4060_v18 = vpop.f32.mrf.mxu3  ;;  %v4217_v38 = vadd.f32 %v4185_v50, %v4017_v23  ;;  %v4119_v57 = vmul.f32 0.044715, %v9138_v52  ;;  %6117 = vtanh.f32 %v4246_v22 }
 0x85e   : > { %v4061_v63 = vadd.f32 %v4060_v18, %v9008_v8  ;;  %v4218_v42 = vadd.f32 %v4186_v36, %v4058_v9  ;;  %v4177_v18 = vmul.f32 %v4145_v45, %v9064_v10  ;;  %v4120_v23 = vmul.f32 0.044715, %v9146_v19 }
 0x85f   : > { %v4125_v12 = vmul.f32 0.044715, %v4020_v59  ;;  %v4249_v7 = vmul.f32 0.7978846, %v4217_v38  ;;  %v9163_v1 = vmul.f32 0.5, %v4020_v59  ;;  %v4178_v39 = vmul.f32 %v4146_v32, %v9066_v49 }
 0x860   : > { %v4126_v26 = vmul.f32 0.044715, %v4061_v63  ;;  %v4250_v50 = vmul.f32 0.7978846, %v4218_v42  ;;  %v4209_v62 = vadd.f32 %v4177_v18, %v9064_v10  ;;  %v9167_v45 = vmul.f32 0.5, %v4061_v63  ;;  %v6114_v42 = vpop.eup %6113 }
 0x861   : > { %v4157_v13 = vmul.f32 %v4125_v12, %v4020_v59  ;;  %6119 = vtanh.f32 %v4249_v7  ;;  %v9176_v10 = vmul.f32 0.5, %v9138_v52  ;;  %v9180_v11 = vmul.f32 0.5, %v9146_v19 }
 0x862   : > { %v4158_v9 = vmul.f32 %v4126_v26, %v4061_v63  ;;  %v3937_v53 = vpop.f32.mrf.mxu0  ;;  %6121 = vtanh.f32 %v4250_v50  ;;  %v4241_v26 = vmul.f32 0.7978846, %v4209_v62  ;;  %v4151_v50 = vmul.f32 %v4119_v57, %v9138_v52 }
 0x863   : > { %v4189_v0 = vmul.f32 %v4157_v13, %v4020_v59  ;;  %v3938_v40 = vadd.f32 %v3937_v53, %v9008_v8  ;;  %v3978_v36 = vpop.f32.mrf.mxu1  ;;  %v9172_v13 = vpop.eup %6115  ;;  %v4309_v62 = vadd.f32 1.0, %v6114_v42  ;;  %v4152_v42 = vmul.f32 %v4120_v23, %v9146_v19 }
 0x864   : > { %v4190_v38 = vmul.f32 %v4158_v9, %v4061_v63  ;;  %v3979_v22 = vadd.f32 %v3978_v36, %v9008_v8  ;;  %v6118_v8 = vpop.eup %6117  ;;  %6123 = vtanh.f32 %v4241_v26 }
 0x865   : > { %v4123_v12 = vmul.f32 0.044715, %v3938_v40  ;;  %v4221_v7 = vadd.f32 %v4189_v0, %v4020_v59 }
 0x866   : > { %v4124_v53 = vmul.f32 0.044715, %v3979_v22  ;;  %v4222_v21 = vadd.f32 %v4190_v38, %v4061_v63  ;;  %v9182_v63 = vmul.f32 0.5, %v3938_v40  ;;  %v9184_v32 = vmul.f32 0.5, %v3979_v22 }
 0x867   : > { %v4155_v18 = vmul.f32 %v4123_v12, %v3938_v40  ;;  %v4253_v9 = vmul.f32 0.7978846, %v4221_v7  ;;  %v6120_v59 = vpop.eup %6119  ;;  %v4310_v12 = vadd.f32 1.0, %v6118_v8  ;;  %v4210_v7 = vadd.f32 %v4178_v39, %v9066_v49 }
 0x868   : > { %v4156_v0 = vmul.f32 %v4124_v53, %v3979_v22  ;;  %v4254_v36 = vmul.f32 0.7978846, %v4222_v21  ;;  %v6122_v38 = vpop.eup %6121  ;;  %v4313_v57 = vadd.f32 1.0, %v6120_v59  ;;  %v4183_v21 = vmul.f32 %v4151_v50, %v9138_v52 }
 0x869   : > { %v4187_v14 = vmul.f32 %v4155_v18, %v3938_v40  ;;  %6125 = vtanh.f32 %v4253_v9  ;;  %v4341_v53 = vmul.f32 %v4309_v62, %v9129_v35  ;;  %v4242_v9 = vmul.f32 0.7978846, %v4210_v7 }
 0x86a   : > { %v4188_v17 = vmul.f32 %v4156_v0, %v3979_v22  ;;  %6127 = vtanh.f32 %v4254_v36  ;;  %v6124_v48 = vpop.eup %6123  ;;  %v4314_v43 = vadd.f32 1.0, %v6122_v38  ;;  %v4215_v0 = vadd.f32 %v4183_v21, %v9138_v52 }
 0x86b   : > { %v4219_v26 = vadd.f32 %v4187_v14, %v3938_v40  ;;  %v4184_v8 = vmul.f32 %v4152_v42, %v9146_v19  ;;  %v4342_v39 = vmul.f32 %v4310_v12, %v9133_v31  ;;  %6129 = vtanh.f32 %v4242_v9 }
 0x86c   : > { %v4220_v18 = vadd.f32 %v4188_v17, %v3979_v22  ;;  %v4141_v49 = vmul.f32 %v4109_v34, %v9056_v16  ;;  %v4247_v35 = vmul.f32 0.7978846, %v4215_v0  ;;  %v4110_v40 = vmul.f32 0.044715, %v9071_v15 }
 0x86d   : > { %v4251_v54 = vmul.f32 0.7978846, %v4219_v26  ;;  %v4216_v17 = vadd.f32 %v4184_v8, %v9146_v19  ;;  %v4305_v59 = vadd.f32 1.0, %v6124_v48  ;;  %v4147_v19 = vmul.f32 %v9118_v5, %v9095_v41 }
 0x86e   : > { %v4252_v14 = vmul.f32 0.7978846, %v4220_v18  ;;  %v4173_v52 = vmul.f32 %v4141_v49, %v9056_v16  ;;  %v4142_v62 = vmul.f32 %v4110_v40, %v9071_v15  ;;  %v4346_v48 = vmul.f32 %v4314_v43, %v9131_v51 }
 0x86f   : > { %v6126_v23 = vpop.eup %6125  ;;  %6131 = vtanh.f32 %v4251_v54  ;;  %v4248_v31 = vmul.f32 0.7978846, %v4216_v17  ;;  %v4345_v54 = vmul.f32 %v4313_v57, %v9127_v46  ;;  %v4179_v42 = vmul.f32 %v4147_v19, %v9095_v41 }
 0x870   : > { %v6128_v22 = vpop.eup %6127  ;;  %v4317_v50 = vadd.f32 1.0, %v6126_v23  ;;  %6133 = vtanh.f32 %v4252_v14  ;;  %v4205_v38 = vadd.f32 %v4173_v52, %v9056_v16  ;;  %v4174_v7 = vmul.f32 %v4142_v62, %v9071_v15 }
 0x871   : > { %v4318_v36 = vadd.f32 1.0, %v6128_v22  ;;  %6135 = vtanh.f32 %v4247_v35  ;;  %v6130_v26 = vpop.eup %6129  ;;  %v4148_v46 = vmul.f32 %v9122_v4, %v9098_v30  ;;  %v4337_v5 = vmul.f32 %v4305_v59, %v9155_v37 }
 0x872   : > { %v4349_v34 = vmul.f32 %v4317_v50, %v9163_v1  ;;  %6137 = vtanh.f32 %v4248_v31  ;;  %v4237_v21 = vmul.f32 0.7978846, %v4205_v38  ;;  %v4201_v1 = vadd.f32 %v9141_v61, %v9026_v58 }
 0x873   : > { %v4350_v12 = vmul.f32 %v4318_v36, %v9167_v45  ;;  %v4306_v45 = vadd.f32 1.0, %v6130_v26  ;;  %v4206_v51 = vadd.f32 %v4174_v7, %v9071_v15  ;;  %v4202_v43 = vadd.f32 %v9152_v60, %v9028_v47 }
 0x874   : > { %4422 = vmatpush.msrb.mxu2 %v4349_v34  ;;  %6139 = vtanh.f32 %v4237_v21  ;;  %v4211_v0 = vadd.f32 %v4179_v42, %v9095_v41  ;;  %v4180_v4 = vmul.f32 %v4148_v46, %v9098_v30  ;;  %v4233_v14 = vmul.f32 0.7978846, %v4201_v1 }
 0x875   : > { %v6132_v57 = vpop.eup %6131  ;;  %4445 = vmatpush.msrb.mxu3 %v4350_v12  ;;  %v4338_v61 = vmul.f32 %v4306_v45, %v9170_v20  ;;  %v4238_v37 = vmul.f32 0.7978846, %v4206_v51  ;;  %v4234_v22 = vmul.f32 0.7978846, %v4202_v43  ;;  %v4143_v50 = vmul.f32 %v9107_v44, %v9076_v2 }
 0x876   : > { %v6134_v18 = vpop.eup %6133  ;;  %4423 = vmatpush.msrb.mxu2 %v4345_v54  ;;  %v4315_v9 = vadd.f32 1.0, %v6132_v57  ;;  %v4243_v60 = vmul.f32 0.7978846, %v4211_v0  ;;  %v4212_v35 = vadd.f32 %v4180_v4, %v9098_v30  ;;  %v4074_v59 = vmul.f32 0.5, %v9028_v47  ;;  %v10112_v0 = vld [vmem:[#allocation101_spill] sm:$0xff] }
 0x877   : > { %v6136_v8 = vpop.eup %6135  ;;  %4446 = vmatpush.msrb.mxu3 %v4346_v48  ;;  %v4316_v58 = vadd.f32 1.0, %v6134_v18  ;;  %6141 = vtanh.f32 %v4238_v37  ;;  %v4077_v36 = vmul.f32 0.5, %v9056_v16  ;;  %v4083_v34 = vmul.f32 0.5, %v9095_v41  ;;  %v10115_v37 = vld [vmem:[#allocation41_spill] sm:$0xff] }
 0x878   : > { %4424 = vmatpush.msrb.mxu2 %v4341_v53  ;;  %v4347_v49 = vmul.f32 %v4315_v9, %v9182_v63  ;;  %v4311_v23 = vadd.f32 1.0, %v6136_v8  ;;  %v6138_v17 = vpop.eup %6137  ;;  %6143 = vtanh.f32 %v4243_v60  ;;  %v4244_v63 = vmul.f32 0.7978846, %v4212_v35  ;;  %v10113_v8 = vld [vmem:[#allocation88_spill] sm:$0xff] }
 0x879   : > { %4447 = vmatpush.msrb.mxu3 %v4342_v39  ;;  %v4348_v40 = vmul.f32 %v4316_v58, %v9184_v32  ;;  %v4312_v53 = vadd.f32 1.0, %v6138_v17  ;;  %6145 = vtanh.f32 %v4233_v14  ;;  %v4175_v39 = vmul.f32 %v4143_v50, %v9076_v2  ;;  %v10118_v17 = vld [vmem:[#allocation60_spill] sm:$0xff]  ;;  %v10119_v50 = vld [vmem:[#allocation49_spill] sm:$0xff] }
 0x87a   : > { %4376 = vmatpush.msrb.mxu0 %v4347_v49  ;;  %4425 = vmatpush.msrb.mxu2 %v4337_v5  ;;  %v4343_v20 = vmul.f32 %v4311_v23, %v9176_v10  ;;  %v4144_v32 = vmul.f32 %v9110_v25, %v9078_v29  ;;  %v6140_v52 = vpop.eup %6139  ;;  %6147 = vtanh.f32 %v4244_v63  ;;  %v9233_v10 = vmul.f32 %v9125_v55, %v9074_v33  ;;  %v10116_v23 = vld [vmem:[#allocation79_spill] sm:$0xff] }
 0x87b   : > { %4399 = vmatpush.msrb.mxu1 %v4348_v40  ;;  %4448 = vmatpush.msrb.mxu3 %v4338_v61  ;;  %v4344_v44 = vmul.f32 %v4312_v53, %v9180_v11  ;;  %v4301_v31 = vadd.f32 1.0, %v6140_v52  ;;  %6149 = vtanh.f32 %v4234_v22  ;;  %v4207_v47 = vadd.f32 %v4175_v39, %v9076_v2  ;;  %v10114_v61 = vld [vmem:[#allocation100_spill] sm:$0xff]  ;;  %v10122_v52 = vld [vmem:[#allocation42_spill] sm:$0xff] }
 0x87c   : > { %4377 = vmatpush.msrb.mxu0 %v4343_v20  ;;  %v4176_v62 = vmul.f32 %v4144_v32, %v9078_v29  ;;  %v4078_v25 = vmul.f32 0.5, %v9071_v15  ;;  %v4084_v11 = vmul.f32 0.5, %v9098_v30  ;;  %v4139_v16 = vmul.f32 %v9084_v24, %v9060_v27  ;;  %v10120_v20 = vld [vmem:[#allocation57_spill] sm:$0xff]  ;;  %v10121_v32 = vld [vmem:[#allocation24_spill] sm:$0xff] }
 0x87d   : > { %4400 = vmatpush.msrb.mxu1 %v4344_v44  ;;  %v6142_v54 = vpop.eup %6141  ;;  %v4333_v38 = vmul.f32 %v4301_v31, %v4077_v36  ;;  %v4079_v55 = vmul.f32 0.5, %v9076_v2  ;;  %v4239_v33 = vmul.f32 0.7978846, %v4207_v47  ;;  %v9245_v7 = vmul.f32 0.5, %v9078_v29  ;;  %v10123_v31 = vld [vmem:[#allocation37_spill] sm:$0xff] }
 0x87e   : > { %v4208_v19 = vadd.f32 %v4176_v62, %v9078_v29  ;;  %v6144_v12 = vpop.eup %6143  ;;  %v4302_v48 = vadd.f32 1.0, %v6142_v54  ;;  %v4171_v15 = vmul.f32 %v4139_v16, %v9060_v27  ;;  %v4140_v41 = vmul.f32 %v9087_v3, %v9062_v28 }
 0x87f   : > { %v6146_v30 = vpop.eup %6145  ;;  %4426 = vmatpush.msrb.mxu2 %v4333_v38  ;;  %v4307_v24 = vadd.f32 1.0, %v6144_v12  ;;  %6151 = vtanh.f32 %v4239_v33  ;;  %v4293_v2 = vadd.f32 1.0, %v9149_v6  ;;  %v4294_v3 = vadd.f32 1.0, %v9172_v13 }
 0x880   : > { %v4240_v26 = vmul.f32 0.7978846, %v4208_v19  ;;  %v6148_v21 = vpop.eup %6147  ;;  %v4334_v42 = vmul.f32 %v4302_v48, %v4078_v25  ;;  %v4297_v46 = vadd.f32 1.0, %v6146_v30  ;;  %v4203_v1 = vadd.f32 %v4171_v15, %v9060_v27 }
 0x881   : > { %v4172_v29 = vmul.f32 %v4140_v41, %v9062_v28  ;;  %v6150_v57 = vpop.eup %6149  ;;  %v4339_v5 = vmul.f32 %v4307_v24, %v4083_v34  ;;  %v4308_v45 = vadd.f32 1.0, %v6148_v21  ;;  %v4325_v4 = vmul.f32 %v4293_v2, %v10112_v0  ;;  %v10124_v34 = vld [vmem:[#allocation34_spill] sm:$0xff]  ;;  %v10127_v2 = vld [vmem:[#allocation28_spill] sm:$0xff] }
 0x882   : > { %6153 = vtanh.f32 %v4240_v26  ;;  %4449 = vmatpush.msrb.mxu3 %v4334_v42  ;;  %v4329_v51 = vmul.f32 %v4297_v46, %v9115_v56  ;;  %v4298_v43 = vadd.f32 1.0, %v6150_v57  ;;  %v4235_v18 = vmul.f32 0.7978846, %v4203_v1  ;;  %v10117_v56 = vld [vmem:[#allocation68_spill] sm:$0xff]  ;;  %v10126_v26 = vld [vmem:[#allocation105_spill] sm:$0xff] }
 0x883   : > { %v4204_v6 = vadd.f32 %v4172_v29, %v9062_v28  ;;  %4378 = vmatpush.msrb.mxu0 %v4339_v5  ;;  %v4340_v9 = vmul.f32 %v4308_v45, %v4084_v11  ;;  %v4290_v58 = vadd.f32 1.0, %v10113_v8  ;;  %v4135_v14 = vmul.f32 %v10115_v37, %v10114_v61  ;;  %v10125_v11 = vld [vmem:[#allocation104_spill] sm:$0xff] }
 0x884   : > { %4427 = vmatpush.msrb.mxu2 %v4329_v51  ;;  %v4330_v49 = vmul.f32 %v4298_v43, %v4074_v59  ;;  %6155 = vtanh.f32 %v4235_v18  ;;  %v4136_v60 = vmul.f32 %v10117_v56, %v10116_v23  ;;  %v4326_v40 = vmul.f32 %v4294_v3, %v10118_v17  ;;  %v9267_v59 = vld [vmem:[%s6496_s2] sm:$0xff]  ;;  %v4352_v43 = vld [vmem:[%s6496_s2 + $0x8] sm:$0xff]  ;;  %s6330_s2 = smov (!%p5821_p10), 80  }
 0x885   : > { %v4236_v13 = vmul.f32 0.7978846, %v4204_v6  ;;  %v6152_v35 = vpop.eup %6151  ;;  %4401 = vmatpush.msrb.mxu1 %v4340_v9  ;;  %v4167_v22 = vmul.f32 %v4135_v14, %v10114_v61  ;;  %v4131_v53 = vmul.f32 %v10120_v20, %v10119_v50  ;;  %v4132_v44 = vmul.f32 %v10122_v52, %v10121_v32 }
 0x886   : > { %4450 = vmatpush.msrb.mxu3 %v4330_v49  ;;  %v4303_v63 = vadd.f32 1.0, %v6152_v35  ;;  %4428 = vmatpush.msrb.mxu2 %v4325_v4  ;;  %v4168_v39 = vmul.f32 %v4136_v60, %v10116_v23  ;;  %v4322_v47 = vmul.f32 %v4290_v58, %v10123_v31  ;;  %v4127_v16 = vmul.f32 %v10125_v11, %v10124_v34  ;;  %v10128_v11 = vld [vmem:[#allocation61_spill] sm:$0xff] }
 0x887   : > { %6157 = vtanh.f32 %v4236_v13  ;;  %v4199_v62 = vadd.f32 %v4167_v22, %v10114_v61  ;;  %v4163_v25 = vmul.f32 %v4131_v53, %v10119_v50  ;;  %v4164_v19 = vmul.f32 %v4132_v44, %v10121_v32 }
 0x888   : > { %v6154_v36 = vpop.eup %6153  ;;  %v4335_v54 = vmul.f32 %v4303_v63, %v4079_v55  ;;  %4451 = vmatpush.msrb.mxu3 %v4326_v40  ;;  %4429 = vmatpush.msrb.mxu2 %v9233_v10  ;;  %v4200_v33 = vadd.f32 %v4168_v39, %v10116_v23  ;;  %v4075_v12 = vmul.f32 0.5, %v9060_v27  ;;  %v4159_v41 = vmul.f32 %v4127_v16, %v10124_v34 }
 0x889   : > { %v4304_v38 = vadd.f32 1.0, %v6154_v36  ;;  %5817 = vmatmul.msk.f32.vlgmr.msrb.gmra.mxu2 %vm4361_vm8, %v9267_v59  ;;  %v4231_v48 = vmul.f32 0.7978846, %v4199_v62  ;;  %v4195_v15 = vadd.f32 %v4163_v25, %v10119_v50  ;;  %v4196_v24 = vadd.f32 %v4164_v19, %v10121_v32  ;;  %v4462_v36 = vpop.permute.xlu1 %4461 }
 0x88a   : > { %v6156_v30 = vpop.eup %6155  ;;  %4379 = vmatpush.msrb.mxu0 %v4335_v54  ;;  %4452 = vmatpush.msrb.mxu3 %v4322_v47  ;;  %v4232_v10 = vmul.f32 0.7978846, %v4200_v33  ;;  %v4128_v21 = vmul.f32 %v10127_v2, %v10126_v26  ;;  %v4191_v46 = vadd.f32 %v4159_v41, %v10124_v34  ;;  %v4071_v0 = vmul.f32 0.5, %v10114_v61  ;;  %v4359_v54 = vpop.permute.xlu0 %4358 }
 0x88b   : > { %v4336_v55 = vmul.f32 %v4304_v38, %v9245_v7  ;;  %v4299_v27 = vadd.f32 1.0, %v6156_v30  ;;  %5819 = vmatmul.msk.f32.vlgmr.msrb.gmra.mxu3 %vm4361_vm8, %v9267_v59  ;;  %6159 = vtanh.f32 %v4231_v48  ;;  %v4227_v42 = vmul.f32 0.7978846, %v4195_v15  ;;  %v10129_v38 = vld [vmem:[#allocation65_spill] sm:$0xff] }
 0x88c   : > { %v4076_v7 = vmul.f32 0.5, %v9062_v28  ;;  %6161 = vtanh.f32 %v4232_v10  ;;  %v4228_v29 = vmul.f32 0.7978846, %v4196_v24  ;;  %v4160_v57 = vmul.f32 %v4128_v21, %v10126_v26  ;;  %v10130_v24 = vld [vmem:[#allocation110_spill] sm:$0xff] }
 0x88d   : > { %v6158_v1 = vpop.eup %6157  ;;  %4402 = vmatpush.msrb.mxu1 %v4336_v55  ;;  %v4331_v5 = vmul.f32 %v4299_v27, %v4075_v12  ;;  %6163 = vtanh.f32 %v4227_v42  ;;  %v4223_v3 = vmul.f32 0.7978846, %v4191_v46  ;;  %v4072_v58 = vmul.f32 0.5, %v10116_v23  ;;  %v10131_v27 = vld [vmem:[#allocation109_spill] sm:$0xff] }
 0x88e   : > { %v4300_v45 = vadd.f32 1.0, %v6158_v1  ;;  %6165 = vtanh.f32 %v4228_v29  ;;  %v4192_v51 = vadd.f32 %v4160_v57, %v10126_v26  ;;  %v4067_v13 = vmul.f32 0.5, %v10119_v50  ;;  %v10132_v1 = vld [vmem:[#allocation76_spill] sm:$0xff] }
 0x88f   : > { %4380 = vmatpush.msrb.mxu0 %v4331_v5  ;;  %6167 = vtanh.f32 %v4223_v3  ;;  %v4068_v17 = vmul.f32 0.5, %v10121_v32  ;;  %v4063_v22 = vmul.f32 0.5, %v10124_v34  ;;  %v4064_v39 = vmul.f32 0.5, %v10126_v26  ;;  %v4355_v32 = vpop.permute.xlu2 %4354  ;;  %v10133_v57 = vld [vmem:[#allocation40_spill] sm:$0xff] }
 0x890   : > { %v4332_v18 = vmul.f32 %v4300_v45, %v4076_v7  ;;  %v4224_v6 = vmul.f32 0.7978846, %v4192_v51 }
 0x891   : > { %v6160_v9 = vpop.eup %6159  ;;  %5818 = vmatmul.msk.f32.gmra.mxu2 %vm4361_vm8, %v4352_v43 }
 0x892   : > { %4403 = vmatpush.msrb.mxu1 %v4332_v18  ;;  %v6162_v28 = vpop.eup %6161  ;;  %v4295_v4 = vadd.f32 1.0, %v6160_v9  ;;  %6169 = vtanh.f32 %v4224_v6  ;;  %v10134_v6 = vld [vmem:[#allocation53_spill] sm:$0xff] }
 0x893   : > { %v6164_v8 = vpop.eup %6163  ;;  %v4296_v37 = vadd.f32 1.0, %v6162_v28  ;;  %5820 = vmatmul.msk.f32.gmra.mxu3 %vm4361_vm8, %v4352_v43 }
 0x894   : > { %v6166_v14 = vpop.eup %6165  ;;  %v4327_v49 = vmul.f32 %v4295_v4, %v4071_v0  ;;  %v4291_v56 = vadd.f32 1.0, %v6164_v8  ;;  %v10135_v0 = vld [vmem:[#allocation30_spill] sm:$0xff] }
 0x895   : > { %v6168_v60 = vpop.eup %6167  ;;  %v4328_v35 = vmul.f32 %v4296_v37, %v4072_v58  ;;  %v4292_v40 = vadd.f32 1.0, %v6166_v14 }
 0x896   : > { %4381 = vmatpush.msrb.mxu0 %v4327_v49  ;;  %v4323_v61 = vmul.f32 %v4291_v56, %v4067_v13  ;;  %v4287_v20 = vadd.f32 1.0, %v6168_v60 }
 0x897   : > { %4404 = vmatpush.msrb.mxu1 %v4328_v35  ;;  %v4324_v23 = vmul.f32 %v4292_v40, %v4068_v17 }
 0x898   : > { %v6170_v53 = vpop.eup %6169  ;;  %4382 = vmatpush.msrb.mxu0 %v4323_v61  ;;  %v4319_v63 = vmul.f32 %v4287_v20, %v4063_v22 }
 0x899   : > { %4405 = vmatpush.msrb.mxu1 %v4324_v23  ;;  %v4288_v50 = vadd.f32 1.0, %v6170_v53 }
 0x89a   : > { %4383 = vmatpush.msrb.mxu0 %v4319_v63 }
 0x89b   : > { %v4320_v52 = vmul.f32 %v4288_v50, %v4064_v39  ;;  %5813 = vmatmul.msk.f32.vlgmr.msrb.gmra.mxu0 %vm4361_vm8, %v9267_v59 }
 0x89d   : > { %4406 = vmatpush.msrb.mxu1 %v4320_v52 }
 0x89e   : > { %5815 = vmatmul.msk.f32.vlgmr.msrb.gmra.mxu1 %vm4361_vm8, %v9267_v59  ;;  %v4466_v59 = vpop.permute.xlu2 %4465 }
 0x8a3   : > { %5814 = vmatmul.msk.f32.gmra.mxu0 %vm4361_vm8, %v4352_v43 }
 0x8a6   : > { %5816 = vmatmul.msk.f32.gmra.mxu1 %vm4361_vm8, %v4352_v43 }
 0x90c   : > { %v4431_v44 = vpop.f32.mrf.mxu2 }
 0x90d   : > { %v4432_v31 = vadd.f32 %v4431_v44, %v4355_v32 }
 0x90e   : > { %v4454_v47 = vpop.f32.mrf.mxu3 }
 0x90f   : > { %v4455_v62 = vadd.f32 %v4454_v47, %v4355_v32  ;;  %v4470_v25 = vmul.f32 %v4462_v36, %v4432_v31 }
 0x911   : > { %v4471_v34 = vmul.f32 %v4462_v36, %v4455_v62  ;;  %v4478_v16 = vadd.f32 %v4470_v25, %v10128_v11 }
 0x913   : > { %v4479_v33 = vadd.f32 %v4471_v34, %v10129_v38  ;;  %4486 = vst [vmem:[#allocation3 + $0x10] sm:$0xff] %v4478_v16 }
 0x914   : > { %v4434_v19 = vpop.f32.mrf.mxu2 }
 0x915   : > { %4487 = vst [vmem:[#allocation3 + $0x20] sm:$0xff] %v4479_v33  ;;  %v4435_v12 = vadd.f32 %v4434_v19, %v4359_v54 }
 0x916   : > { %v4457_v48 = vpop.f32.mrf.mxu3 }
 0x917   : > { %v4458_v15 = vadd.f32 %v4457_v48, %v4359_v54  ;;  %v4474_v41 = vmul.f32 %v4466_v59, %v4435_v12 }
 0x918   : > { %v4385_v30 = vpop.f32.mrf.mxu0 }
 0x919   : > { %v4386_v55 = vadd.f32 %v4385_v30, %v4355_v32  ;;  %v4475_v10 = vmul.f32 %v4466_v59, %v4458_v15  ;;  %v4482_v26 = vadd.f32 %v4474_v41, %v10130_v24 }
 0x91b   : > { %v4408_v2 = vpop.f32.mrf.mxu1  ;;  %v4468_v21 = vmul.f32 %v4462_v36, %v4386_v55  ;;  %v4483_v42 = vadd.f32 %v4475_v10, %v10131_v27  ;;  %4490 = vst [vmem:[#allocation3 + $0x30] sm:$0xff] %v4482_v26 }
 0x91c   : > { %v4409_v46 = vadd.f32 %v4408_v2, %v4355_v32 }
 0x91d   : > { %v4476_v7 = vadd.f32 %v4468_v21, %v10132_v1  ;;  %4491 = vst [vmem:[#allocation3 + $0x38] sm:$0xff] %v4483_v42 }
 0x91e   : > { %v4469_v29 = vmul.f32 %v4462_v36, %v4409_v46 }
 0x91f   : > { %4484 = vst [vmem:[#allocation3] sm:$0xff] %v4476_v7 }
 0x920   : > { %v4477_v5 = vadd.f32 %v4469_v29, %v10133_v57  ;;  %v4388_v45 = vpop.f32.mrf.mxu0 }
 0x921   : > { %v4389_v3 = vadd.f32 %v4388_v45, %v4359_v54 }
 0x922   : > { %4485 = vst [vmem:[#allocation3 + $0x18] sm:$0xff] %v4477_v5 }
 0x923   : > { %v4411_v51 = vpop.f32.mrf.mxu1  ;;  %v4472_v43 = vmul.f32 %v4466_v59, %v4389_v3 }
 0x924   : > { %v4412_v18 = vadd.f32 %v4411_v51, %v4359_v54 }
 0x925   : > { %v4480_v9 = vadd.f32 %v4472_v43, %v10134_v6 }
 0x926   : > { %v4473_v28 = vmul.f32 %v4466_v59, %v4412_v18  ;;  %4495 = sbr.rel (%p5821_p10) target bundleno = 2835 (0xb13), region = 76 }
 0x927   : > { %4488 = vst [vmem:[#allocation3 + $0x28] sm:$0xff] %v4480_v9 }
 0x928   : > { %v4481_v4 = vadd.f32 %v4473_v28, %v10135_v0 }
 0x92a   : > { %4489 = vst [vmem:[#allocation3 + $0x8] sm:$0xff] %v4481_v4 }
 0x92b   : > { %v4497_v8 = vld [vmem:[#allocation2] sm:$0xff]  ;;  %v4503_v58 = vld [vmem:[#allocation2 + $0x38] sm:$0xff]  ;;  %v4499_v56 = vld [vmem:[#allocation2 + $0x10] sm:$0xff] }
 0x92c   : > { %v9320_v37 = vld [vmem:[%s6506_s7] sm:$0x77]  ;;  %v4505_v14 = vadd.f32 %v4497_v8, %v4477_v5  ;;  %v4511_v49 = vadd.f32 %v4503_v58, %v4483_v42  ;;  %v4501_v60 = vld [vmem:[#allocation2 + $0x20] sm:$0xff]  ;;  %v4507_v17 = vadd.f32 %v4499_v56, %v4479_v33  ;;  %v4502_v40 = vld [vmem:[#allocation2 + $0x28] sm:$0xff]  ;;  %s6325_s7 = smov 1  }
 0x92d   : > { %4570 = vst [vmem:[#allocation1] ss:$2 sm:$0xff] %v9320_v37  ;;  %v4498_v13 = vld [vmem:[#allocation2 + $0x18] sm:$0xff]  ;;  %v4509_v61 = vadd.f32 %v4501_v60, %v4481_v4  ;;  %v4496_v22 = vld [vmem:[#allocation2 + $0x30] sm:$0xff]  ;;  %v4500_v20 = vld [vmem:[#allocation2 + $0x8] sm:$0xff]  ;;  %v4510_v50 = vadd.f32 %v4502_v40, %v4482_v26 }
 0x92e   : > { %v4506_v35 = vadd.f32 %v4498_v13, %v4478_v16  ;;  %v10136_v23 = vld [vmem:[#allocation15_spill] sm:$0xff]  ;;  %v10137_v63 = vld [vmem:[#allocation14_spill] sm:$0xff]  ;;  %v4504_v52 = vadd.f32 %v4496_v22, %v4476_v7  ;;  %v4508_v44 = vadd.f32 %v4500_v20, %v4480_v9  ;;  %v10139_v62 = vld [vmem:[#allocation13_spill] sm:$0xff] }
 0x92f   : > { %v9324_v53 = vmul.f32 %v4505_v14, %v10136_v23  ;;  %v9327_v39 = vmul.f32 %v4511_v49, %v10137_v63  ;;  %v9330_v32 = vmul.f32 %v4509_v61, %v10136_v23  ;;  %v10138_v31 = vld [vmem:[#allocation11_spill] sm:$0xff]  ;;  %v9349_v16 = vmul.f32 %v4507_v17, %v10137_v63 }
 0x930   : > { %v9335_v47 = vmul.f32 %v4510_v50, %v10138_v31  ;;  %v9339_v25 = vmul.f32 %v4504_v52, %v10139_v62  ;;  %v9342_v34 = vmul.f32 %v4508_v44, %v10139_v62  ;;  %v9346_v11 = vmul.f32 %v4506_v35, %v10138_v31 }
 0x931   : > { %v6178_v36 = vpack.i.bf16 %v9324_v53, %v9327_v39  ;;  %4650 = vmatpush.msra.mxu3 %v9327_v39  ;;  %4610 = vmatpush.msra.mxu1 %v9330_v32  ;;  %v6208_v41 = vpack.i.bf16 %v9324_v53, %v9330_v32 }
 0x932   : > { %4630 = vmatpush.msra.mxu2 %v9335_v47  ;;  %v6188_v38 = vpack.i.bf16 %v9339_v25, %v9342_v34  ;;  %4590 = vmatpush.msra.mxu0 %v9342_v34  ;;  %v6183_v33 = vpack.i.bf16 %v9349_v16, %v9346_v11  ;;  %v6173_v19 = vpack.i.bf16 %v9335_v47, %v9330_v32 }
 0x933   : > { %6179 = vrot.lane.b32.xlu1 %v6178_v36, %s6325_s7  ;;  %4611 = vmatpush.msra.mxu1 %v9324_v53  ;;  %v6193_v59 = vpack.i.bf16 %v9335_v47, %v9342_v34  ;;  %v6198_v48 = vpack.i.bf16 %v9339_v25, %v9327_v39 }
 0x934   : > { %v4571_v54 = vld.sshfl [vmem:[#allocation1] sm:$0xff pattern:$0x75316420]  ;;  %4631 = vmatpush.msra.mxu2 %v9346_v11  ;;  %6189 = vrot.lane.b32.xlu2 %v6188_v38, %s6325_s7 }
 0x935   : > { %4572 = vrot.lane.b32.xlu0 %v4571_v54, %s6326_s21  ;;  %4738 = vst [vmem:[#allocation1] ss:$2 sm:$0xff] %v9320_v37  ;;  %4591 = vmatpush.msra.mxu0 %v9339_v25 }
 0x936   : > { %4651 = vmatpush.msra.mxu3 %v9349_v16 }
 0x93b   : > { %6184 = vrot.lane.b32.xlu1 %v6183_v33, %s6325_s7 }
 0x93c   : > { %v4739_v12 = vld.sshfl [vmem:[#allocation1] sm:$0xff pattern:$0x75316420]  ;;  %6194 = vrot.lane.b32.xlu2 %v6193_v59, %s6327_s19 }
 0x93d   : > { %6174 = vrot.lane.b32.xlu0 %v6173_v19, %s6325_s7  ;;  %4840 = vst [vmem:[#allocation1] ss:$2 sm:$0xff] %v9320_v37 }
 0x943   : > { %6204 = vrot.lane.b32.xlu1 %v6183_v33, %s6327_s19 }
 0x944   : > { %v4841_v15 = vld.sshfl [vmem:[#allocation1] sm:$0xff pattern:$0x75316420]  ;;  %4740 = vrot.lane.b32.xlu2 %v4739_v12, %s6328_s24 }
 0x945   : > { %6199 = vrot.lane.b32.xlu0 %v6198_v48, %s6327_s19  ;;  %4926 = vst [vmem:[#allocation1] ss:$2 sm:$0xff] %v9320_v37 }
 0x94b   : > { %4842 = vrot.lane.b32.xlu1 %v4841_v15, %s6329_s15 }
 0x94c   : > { %v4927_v30 = vld.sshfl [vmem:[#allocation1] sm:$0xff pattern:$0x75316420] }
 0x94d   : > { %6209 = vrot.lane.b32.xlu0 %v6208_v41, %s6327_s19  ;;  %5012 = vst [vmem:[#allocation1] ss:$2 sm:$0xff] %v9320_v37  ;;  %4928 = vrot.lane.b32.xlu2 %v4927_v30, %s6330_s2 }
 0x954   : > { %v5013_v55 = vld.sshfl [vmem:[#allocation1] sm:$0xff pattern:$0x75316420] }
 0x955   : > { %5106 = vst [vmem:[#allocation1] ss:$2 sm:$0xff] %v9320_v37  ;;  %5014 = vrot.lane.b32.xlu0 %v5013_v55, %s6331_s23 }
 0x95c   : > { %v5107_v10 = vld.sshfl [vmem:[#allocation1] sm:$0xff pattern:$0x75316420] }
 0x95d   : > { %5192 = vst [vmem:[#allocation1] ss:$2 sm:$0xff] %v9320_v37  ;;  %5108 = vrot.lane.b32.xlu1 %v5107_v10, %s6332_s27 }
 0x964   : > { %v5193_v24 = vld.sshfl [vmem:[#allocation1] sm:$0xff pattern:$0x75316420] }
 0x965   : > { %5278 = vst [vmem:[#allocation1] ss:$2 sm:$0xff] %v9320_v37  ;;  %5194 = vrot.lane.b32.xlu2 %v5193_v24, %s6333_s18 }
 0x98e   : > { %v6190_v26 = vpop.permute.xlu2 %6189 }
 0x98f   : > { %v6191_v2 = vunpack.i.l.bf16 %v6190_v26  ;;  %v6192_v7 = vunpack.i.h.bf16 %v6190_v26 }
 0x996   : > { %v6195_v8 = vpop.permute.xlu2 %6194 }
 0x997   : > { %v6197_v49 = vunpack.i.h.bf16 %v6195_v8  ;;  %v6196_v13 = vunpack.i.l.bf16 %v6195_v8 }
 0x99e   : > { %v4741_v23 = vpop.permute.xlu2 %4740 }
 0x9a5   : > { %v6180_v21 = vpop.permute.xlu1 %6179 }
 0x9a6   : > { %v6181_v27 = vunpack.i.l.bf16 %v6180_v21  ;;  %v6182_v29 = vunpack.i.h.bf16 %v6180_v21 }
 0x9a7   : > { %v4573_v42 = vpop.permute.xlu0 %4572  ;;  %v4929_v33 = vpop.permute.xlu2 %4928 }
 0x9a8   : > { %5822 = vmatmul.msk.f32.vlgmr.msra.gmra.mxu0 %vm2199_vm1, %v4573_v42  ;;  %5823 = vmatmul.msk.f32.vlgmr.msra.gmra.mxu1 %vm2199_vm1, %v4573_v42  ;;  %v9380_v1 = vsel %vm1879_vm13, %v6181_v27, %v6191_v2  ;;  %v9392_v6 = vsel %vm1879_vm13, %v6192_v7, %v6182_v29 }
 0x9a9   : > { %5824 = vmatmul.msk.f32.vlgmr.msra.gmra.mxu2 %vm2199_vm1, %v4573_v42  ;;  %5825 = vmatmul.msk.f32.vlgmr.msra.gmra.mxu3 %vm2199_vm1, %v4573_v42 }
 0x9aa   : > { %4672 = vmatpush.msrb.mxu0 %v9380_v1 }
 0x9ad   : > { %v6185_v57 = vpop.permute.xlu1 %6184 }
 0x9ae   : > { %v6187_v5 = vunpack.i.h.bf16 %v6185_v57  ;;  %v6186_v45 = vunpack.i.l.bf16 %v6185_v57 }
 0x9af   : > { %v6175_v3 = vpop.permute.xlu0 %6174 }
 0x9b0   : > { %v6177_v51 = vunpack.i.h.bf16 %v6175_v3  ;;  %v6176_v43 = vunpack.i.l.bf16 %v6175_v3  ;;  %v9387_v18 = vsel %vm1879_vm13, %v6187_v5, %v6192_v7  ;;  %v9410_v4 = vsel %vm1879_vm13, %v6182_v29, %v6186_v45 }
 0x9b1   : > { %4673 = vmatpush.msrb.mxu0 %v9387_v18  ;;  %v9416_v58 = vsel %vm1879_vm13, %v6186_v45, %v6187_v5  ;;  %v6335_v45 = vmov 16  }
 0x9b2   : > { %5826 = vmatmul.msk.f32.vlgmr.msrb.gmra.mxu0 %vm2199_vm1, %v9320_v37  ;;  %v9398_v9 = vsel %vm1879_vm13, %v6191_v2, %v6176_v43  ;;  %v9402_v28 = vsel %vm1879_vm13, %v6176_v43, %v6177_v51  ;;  %v9406_v0 = vsel %vm1879_vm13, %v6177_v51, %v6181_v27  ;;  %6213 = vset.pattern.permute.xlu0 %v6335_v45 }
 0x9b3   : > { %4692 = vmatpush.msrb.mxu1 %v9398_v9  ;;  %4712 = vmatpush.msrb.mxu2 %v9402_v28 }
 0x9b4   : > { %4732 = vmatpush.msrb.mxu3 %v9406_v0  ;;  %5383 = vperm.xlu0 %6213, %v9320_v37  }
 0x9b5   : > { %4713 = vmatpush.msrb.mxu2 %v9410_v4  ;;  %4693 = vmatpush.msrb.mxu1 %v9392_v6  ;;  %v6205_v14 = vpop.permute.xlu1 %6204 }
 0x9b6   : > { %4733 = vmatpush.msrb.mxu3 %v9416_v58  ;;  %5827 = vmatmul.msk.f32.vlgmr.msrb.gmra.mxu1 %vm2199_vm1, %v9320_v37  ;;  %v6206_v56 = vunpack.i.l.bf16 %v6205_v14  ;;  %v6207_v35 = vunpack.i.h.bf16 %v6205_v14 }
 0x9b7   : > { %5828 = vmatmul.msk.f32.vlgmr.msrb.gmra.mxu2 %vm2199_vm1, %v9320_v37  ;;  %5829 = vmatmul.msk.f32.vlgmr.msrb.gmra.mxu3 %vm2199_vm1, %v9320_v37  ;;  %v6200_v60 = vpop.permute.xlu0 %6199 }
 0x9b8   : > { %v6202_v17 = vunpack.i.h.bf16 %v6200_v60  ;;  %v6201_v40 = vunpack.i.l.bf16 %v6200_v60  ;;  %v9438_v20 = vsel %vm1904_vm14, %v6206_v56, %v6207_v35 }
 0x9ba   : > { %v9430_v61 = vsel %vm1904_vm14, %v6197_v49, %v6201_v40  ;;  %v9434_v22 = vsel %vm1904_vm14, %v6201_v40, %v6196_v13  ;;  %v9444_v63 = vsel %vm1904_vm14, %v6207_v35, %v6202_v17 }
 0x9bb   : > { %4798 = vmatpush.msra.mxu2 %v9430_v61  ;;  %4818 = vmatpush.msra.mxu3 %v9434_v22 }
 0x9bd   : > { %4799 = vmatpush.msra.mxu2 %v9438_v20  ;;  %4819 = vmatpush.msra.mxu3 %v9444_v63  ;;  %v4843_v38 = vpop.permute.xlu1 %4842 }
 0x9bf   : > { %4900 = vmatpush.msrb.mxu2 %v9335_v47  ;;  %4920 = vmatpush.msrb.mxu3 %v9327_v39  ;;  %v6210_v50 = vpop.permute.xlu0 %6209 }
 0x9c0   : > { %5832 = vmatmul.msk.f32.vlgmr.msra.gmra.mxu2 %vm2199_vm1, %v4741_v23  ;;  %5833 = vmatmul.msk.f32.vlgmr.msra.gmra.mxu3 %vm2199_vm1, %v4741_v23  ;;  %v6212_v52 = vunpack.i.h.bf16 %v6210_v50  ;;  %v6211_v44 = vunpack.i.l.bf16 %v6210_v50 }
 0x9c1   : > { %4901 = vmatpush.msrb.mxu2 %v9346_v11  ;;  %4921 = vmatpush.msrb.mxu3 %v9349_v16 }
 0x9c2   : > { %v9458_v36 = vsel %vm1904_vm14, %v6196_v13, %v6211_v44  ;;  %v9462_v31 = vsel %vm1904_vm14, %v6211_v44, %v6197_v49  ;;  %v9470_v62 = vsel %vm1904_vm14, %v6202_v17, %v6212_v52  ;;  %v9474_v54 = vsel %vm1904_vm14, %v6212_v52, %v6206_v56 }
 0x9c3   : > { %4986 = vmatpush.msra.mxu2 %v9402_v28  ;;  %5006 = vmatpush.msra.mxu3 %v9406_v0 }
 0x9c4   : > { %4758 = vmatpush.msra.mxu0 %v9458_v36  ;;  %4778 = vmatpush.msra.mxu1 %v9462_v31 }
 0x9c5   : > { %4987 = vmatpush.msra.mxu2 %v9410_v4  ;;  %5007 = vmatpush.msra.mxu3 %v9416_v58 }
 0x9c6   : > { %4759 = vmatpush.msra.mxu0 %v9470_v62  ;;  %4779 = vmatpush.msra.mxu1 %v9474_v54 }
 0x9c7   : > { %5830 = vmatmul.msk.f32.vlgmr.msra.gmra.mxu0 %vm2199_vm1, %v4741_v23  ;;  %5831 = vmatmul.msk.f32.vlgmr.msra.gmra.mxu1 %vm2199_vm1, %v4741_v23  ;;  %v5015_v19 = vpop.permute.xlu0 %5014 }
 0x9c8   : > { %4860 = vmatpush.msrb.mxu0 %v9342_v34  ;;  %4880 = vmatpush.msrb.mxu1 %v9330_v32 }
 0x9c9   : > { %5836 = vmatmul.msk.f32.vlgmr.msrb.gmra.mxu2 %vm2199_vm1, %v4843_v38  ;;  %5837 = vmatmul.msk.f32.vlgmr.msrb.gmra.mxu3 %vm2199_vm1, %v4843_v38 }
 0x9ca   : > { %5072 = vmatpush.msrb.mxu2 %v9430_v61  ;;  %5092 = vmatpush.msrb.mxu3 %v9434_v22 }
 0x9cb   : > { %4861 = vmatpush.msrb.mxu0 %v9339_v25  ;;  %4881 = vmatpush.msrb.mxu1 %v9324_v53 }
 0x9cc   : > { %5093 = vmatpush.msrb.mxu3 %v9444_v63  ;;  %5073 = vmatpush.msrb.mxu2 %v9438_v20 }
 0x9cd   : > { %4946 = vmatpush.msra.mxu0 %v9380_v1  ;;  %4966 = vmatpush.msra.mxu1 %v9398_v9 }
 0x9cf   : > { %4947 = vmatpush.msra.mxu0 %v9387_v18  ;;  %4967 = vmatpush.msra.mxu1 %v9392_v6 }
 0x9d0   : > { %5834 = vmatmul.msk.f32.vlgmr.msrb.gmra.mxu0 %vm2199_vm1, %v4843_v38  ;;  %5835 = vmatmul.msk.f32.vlgmr.msrb.gmra.mxu1 %vm2199_vm1, %v4843_v38 }
 0x9d1   : > { %5032 = vmatpush.msrb.mxu0 %v9458_v36  ;;  %5840 = vmatmul.msk.f32.vlgmr.msra.gmra.mxu2 %vm2199_vm1, %v4929_v33 }
 0x9d2   : > { %5841 = vmatmul.msk.f32.vlgmr.msra.gmra.mxu3 %vm2199_vm1, %v4929_v33  ;;  %5052 = vmatpush.msrb.mxu1 %v9462_v31 }
 0x9d3   : > { %5033 = vmatpush.msrb.mxu0 %v9470_v62  ;;  %5166 = vmatpush.msra.mxu2 %v9335_v47 }
 0x9d4   : > { %5186 = vmatpush.msra.mxu3 %v9327_v39  ;;  %5053 = vmatpush.msrb.mxu1 %v9474_v54  ;;  %v5109_v39 = vpop.permute.xlu1 %5108 }
 0x9d5   : > { %5167 = vmatpush.msra.mxu2 %v9346_v11 }
 0x9d6   : > { %5187 = vmatpush.msra.mxu3 %v9349_v16 }
 0x9d8   : > { %5838 = vmatmul.msk.f32.vlgmr.msra.gmra.mxu0 %vm2199_vm1, %v4929_v33  ;;  %5839 = vmatmul.msk.f32.vlgmr.msra.gmra.mxu1 %vm2199_vm1, %v4929_v33 }
 0x9d9   : > { %5126 = vmatpush.msra.mxu0 %v9342_v34  ;;  %5844 = vmatmul.msk.f32.vlgmr.msrb.gmra.mxu2 %vm2199_vm1, %v5015_v19 }
 0x9da   : > { %5845 = vmatmul.msk.f32.vlgmr.msrb.gmra.mxu3 %vm2199_vm1, %v5015_v19  ;;  %5252 = vmatpush.msrb.mxu2 %v9402_v28 }
 0x9db   : > { %5272 = vmatpush.msrb.mxu3 %v9406_v0  ;;  %5146 = vmatpush.msra.mxu1 %v9330_v32  ;;  %v5279_v32 = vld.sshfl [vmem:[#allocation1 + $0x8] sm:$0xff pattern:$0x75316420] }
 0x9dc   : > { %5127 = vmatpush.msra.mxu0 %v9339_v25  ;;  %5253 = vmatpush.msrb.mxu2 %v9410_v4 }
 0x9dd   : > { %5273 = vmatpush.msrb.mxu3 %v9416_v58  ;;  %5147 = vmatpush.msra.mxu1 %v9324_v53  ;;  %v5195_v53 = vpop.permute.xlu2 %5194 }
 0x9e0   : > { %5842 = vmatmul.msk.f32.vlgmr.msrb.gmra.mxu0 %vm2199_vm1, %v5015_v19  ;;  %5843 = vmatmul.msk.f32.vlgmr.msrb.gmra.mxu1 %vm2199_vm1, %v5015_v19 }
 0x9e1   : > { %5212 = vmatpush.msrb.mxu0 %v9380_v1  ;;  %5848 = vmatmul.msk.f32.vlgmr.msra.gmra.mxu2 %vm2199_vm1, %v5109_v39 }
 0x9e2   : > { %5849 = vmatmul.msk.f32.vlgmr.msra.gmra.mxu3 %vm2199_vm1, %v5109_v39  ;;  %5232 = vmatpush.msrb.mxu1 %v9398_v9 }
 0x9e3   : > { %5336 = vmatpush.msra.mxu2 %v9430_v61  ;;  %5356 = vmatpush.msra.mxu3 %v9434_v22 }
 0x9e4   : > { %5213 = vmatpush.msrb.mxu0 %v9387_v18  ;;  %5233 = vmatpush.msrb.mxu1 %v9392_v6 }
 0x9e5   : > { %5337 = vmatpush.msra.mxu2 %v9438_v20  ;;  %5357 = vmatpush.msra.mxu3 %v9444_v63 }
 0x9e8   : > { %5846 = vmatmul.msk.f32.vlgmr.msra.gmra.mxu0 %vm2199_vm1, %v5109_v39  ;;  %5847 = vmatmul.msk.f32.vlgmr.msra.gmra.mxu1 %vm2199_vm1, %v5109_v39 }
 0x9e9   : > { %5296 = vmatpush.msra.mxu0 %v9458_v36  ;;  %5852 = vmatmul.msk.f32.vlgmr.msrb.gmra.mxu2 %vm2199_vm1, %v5195_v53 }
 0x9ea   : > { %5853 = vmatmul.msk.f32.vlgmr.msrb.gmra.mxu3 %vm2199_vm1, %v5195_v53  ;;  %5316 = vmatpush.msra.mxu1 %v9462_v31 }
 0x9eb   : > { %5297 = vmatpush.msra.mxu0 %v9470_v62 }
 0x9ec   : > { %5317 = vmatpush.msra.mxu1 %v9474_v54 }
 0x9f0   : > { %5850 = vmatmul.msk.f32.vlgmr.msrb.gmra.mxu0 %vm2199_vm1, %v5195_v53  ;;  %5851 = vmatmul.msk.f32.vlgmr.msrb.gmra.mxu1 %vm2199_vm1, %v5195_v53  ;;  %v6337_v53 = vmov 1985246804  }
 0x9f1   : > { %5856 = vmatmul.msk.f32.vlgmr.msra.gmra.mxu2 %vm2199_vm1, %v5279_v32 }
 0x9f2   : > { %5857 = vmatmul.msk.f32.vlgmr.msra.gmra.mxu3 %vm2199_vm1, %v5279_v32 }
 0x9f8   : > { %5854 = vmatmul.msk.f32.vlgmr.msra.gmra.mxu0 %vm2199_vm1, %v5279_v32  ;;  %5855 = vmatmul.msk.f32.vlgmr.msra.gmra.mxu1 %vm2199_vm1, %v5279_v32  ;;  %v5387_v32 = vunpack.c.l.s4 %v6337_v53 }
 0xa25   : > { %v4593_v34 = vpop.f32.mrf.mxu0  ;;  %v4613_v11 = vpop.f32.mrf.mxu1 }
 0xa2c   : > { %v4633_v47 = vpop.f32.mrf.mxu2  ;;  %v4653_v25 = vpop.f32.mrf.mxu3 }
 0xa2f   : > { %v4675_v12 = vpop.f32.mrf.mxu0 }
 0xa30   : > { %v4676_v15 = vadd.f32 %v4675_v12, %v4593_v34 }
 0xa33   : > { %v4695_v48 = vpop.f32.mrf.mxu1 }
 0xa34   : > { %v4696_v41 = vadd.f32 %v4695_v48, %v4613_v11 }
 0xa3a   : > { %v4715_v16 = vpop.f32.mrf.mxu2  ;;  %v4735_v59 = vpop.f32.mrf.mxu3 }
 0xa3b   : > { %v4716_v21 = vadd.f32 %v4715_v16, %v4633_v47  ;;  %v4736_v27 = vadd.f32 %v4735_v59, %v4653_v25  ;;  %v5388_v47 = vunpack.c.0.s8 %v5387_v32  ;;  %v5384_v25 = vpop.permute.xlu0 %5383 }
 0xa3d   : > { %v5389_v34 = vperm.slane %v5384_v25, %v5388_v47 }
 0xa3f   : > { %5393 = vst [vmem:[#allocation1 + $0x10] ss:$2 sm:$0xff] %v5389_v34 }
 0xa40   : > { %5391 = vst [vmem:[#allocation1] ss:$2 sm:$0xff] %v5389_v34 }
 0xa43   : > { %v4801_v30 = vpop.f32.mrf.mxu2  ;;  %v4821_v55 = vpop.f32.mrf.mxu3 }
 0xa44   : > { %v4761_v10 = vpop.f32.mrf.mxu0  ;;  %v4781_v24 = vpop.f32.mrf.mxu1  ;;  %v4826_v7 = vadd.f32 %v4801_v30, %v4716_v21  ;;  %v4827_v29 = vadd.f32 %v4821_v55, %v4736_v27 }
 0xa45   : > { %v4824_v26 = vadd.f32 %v4761_v10, %v4676_v15  ;;  %v4825_v2 = vadd.f32 %v4781_v24, %v4696_v41 }
 0xa47   : > { %4830 = vrot.lane.b32.xlu2 %v4825_v2, %s6334_s0  ;;  %4828 = vrot.lane.b32.xlu1 %v4824_v26, %s6334_s0  ;;  %v5394_v26 = vld.sshfl [vmem:[#allocation1] sm:$0xff pattern:$0x75316420]  ;;  %v5395_v2 = vld.sshfl [vmem:[#allocation1 + $0x8] sm:$0xff pattern:$0x75316420] }
 0xa4c   : > { %v4903_v42 = vpop.f32.mrf.mxu2  ;;  %v4923_v1 = vpop.f32.mrf.mxu3 }
 0xa4d   : > { %v4863_v57 = vpop.f32.mrf.mxu0  ;;  %v4883_v5 = vpop.f32.mrf.mxu1 }
 0xa4f   : > { %4834 = vrot.lane.b32.xlu2 %v4827_v29, %s6334_s0  ;;  %4832 = vrot.lane.b32.xlu1 %v4826_v7, %s6334_s0 }
 0xa54   : > { %v4989_v3 = vpop.f32.mrf.mxu2 }
 0xa55   : > { %v5009_v51 = vpop.f32.mrf.mxu3  ;;  %v4990_v43 = vadd.f32 %v4989_v3, %v4903_v42  ;;  %v4949_v6 = vpop.f32.mrf.mxu0 }
 0xa56   : > { %v5010_v18 = vadd.f32 %v5009_v51, %v4923_v1  ;;  %v4969_v9 = vpop.f32.mrf.mxu1  ;;  %v4950_v28 = vadd.f32 %v4949_v6, %v4863_v57 }
 0xa57   : > { %v4970_v0 = vadd.f32 %v4969_v9, %v4883_v5 }
 0xa5c   : > { %v5075_v4 = vpop.f32.mrf.mxu2 }
 0xa5d   : > { %v5095_v8 = vpop.f32.mrf.mxu3  ;;  %v5100_v58 = vadd.f32 %v5075_v4, %v4990_v43  ;;  %v5035_v49 = vpop.f32.mrf.mxu0 }
 0xa5e   : > { %v5101_v14 = vadd.f32 %v5095_v8, %v5010_v18  ;;  %v5055_v13 = vpop.f32.mrf.mxu1  ;;  %v5098_v56 = vadd.f32 %v5035_v49, %v4950_v28  ;;  %v5396_v28 = vld.sshfl [vmem:[#allocation1 + $0x10] sm:$0xff pattern:$0x75316420] }
 0xa5f   : > { %v5099_v60 = vadd.f32 %v5055_v13, %v4970_v0  ;;  %v5397_v0 = vld.sshfl [vmem:[#allocation1 + $0x18] sm:$0xff pattern:$0x75316420] }
 0xa64   : > { %v5169_v35 = vpop.f32.mrf.mxu2 }
 0xa65   : > { %v5129_v17 = vpop.f32.mrf.mxu0  ;;  %v5189_v37 = vpop.f32.mrf.mxu3 }
 0xa66   : > { %v5149_v40 = vpop.f32.mrf.mxu1 }
 0xa6c   : > { %v5255_v61 = vpop.f32.mrf.mxu2 }
 0xa6d   : > { %v5215_v22 = vpop.f32.mrf.mxu0  ;;  %v5275_v23 = vpop.f32.mrf.mxu3  ;;  %v5256_v63 = vadd.f32 %v5255_v61, %v5169_v35 }
 0xa6e   : > { %v5235_v20 = vpop.f32.mrf.mxu1  ;;  %v5216_v50 = vadd.f32 %v5215_v22, %v5129_v17  ;;  %v5276_v19 = vadd.f32 %v5275_v23, %v5189_v37 }
 0xa6f   : > { %v5236_v52 = vadd.f32 %v5235_v20, %v5149_v40 }
 0xa74   : > { %v5339_v44 = vpop.f32.mrf.mxu2 }
 0xa75   : > { %v5364_v36 = vadd.f32 %v5339_v44, %v5256_v63  ;;  %v5299_v31 = vpop.f32.mrf.mxu0  ;;  %v5359_v33 = vpop.f32.mrf.mxu3 }
 0xa76   : > { %v5319_v62 = vpop.f32.mrf.mxu1  ;;  %v5362_v54 = vadd.f32 %v5299_v31, %v5216_v50  ;;  %v5365_v39 = vadd.f32 %v5359_v33, %v5276_v19 }
 0xa77   : > { %v5363_v38 = vadd.f32 %v5319_v62, %v5236_v52  ;;  %5370 = vrot.lane.b32.xlu2 %v5364_v36, %s6336_s16 }
 0xa78   : > { %5366 = vrot.lane.b32.xlu0 %v5362_v54, %s6336_s16 }
 0xa79   : > { %5368 = vrot.lane.b32.xlu1 %v5363_v38, %s6336_s16 }
 0xa80   : > { %5372 = vrot.lane.b32.xlu0 %v5365_v39, %s6336_s16 }
 0xaa1   : > { %v4831_v11 = vpop.permute.xlu2 %4830 }
 0xaa9   : > { %v4835_v59 = vpop.permute.xlu2 %4834 }
 0xab9   : > { %v4829_v16 = vpop.permute.xlu1 %4828 }
 0xaba   : > { %v4838_v48 = vsel %vm1995_vm15, %v4829_v16, %v4831_v11  ;;  %v4839_v15 = vsel %vm1995_vm15, %v4835_v59, %v4829_v16 }
 0xabb   : > { %v5102_v30 = vadd.f32 %v5098_v56, %v4839_v15  ;;  %v5103_v55 = vadd.f32 %v5099_v60, %v4838_v48 }
 0xac1   : > { %v4833_v12 = vpop.permute.xlu1 %4832 }
 0xac2   : > { %v4836_v57 = vsel %vm1995_vm15, %v4833_v12, %v4835_v59  ;;  %v4837_v5 = vsel %vm1995_vm15, %v4831_v11, %v4833_v12 }
 0xac3   : > { %v5104_v45 = vadd.f32 %v5100_v58, %v4837_v5  ;;  %v5105_v3 = vadd.f32 %v5101_v14, %v4836_v57 }
 0xad1   : > { %v5371_v41 = vpop.permute.xlu2 %5370 }
 0xaea   : > { %v5367_v10 = vpop.permute.xlu0 %5366 }
 0xaeb   : > { %v5369_v24 = vpop.permute.xlu1 %5368 }
 0xaec   : > { %v5375_v21 = vsel %vm2156_vm0, %v5369_v24, %v5371_v41  ;;  %v5376_v27 = vsel %vm2156_vm0, %v5367_v10, %v5369_v24 }
 0xaed   : > { %v5378_v42 = vadd.f32 %v5376_v27, %v5102_v30  ;;  %v5379_v1 = vadd.f32 %v5375_v21, %v5103_v55 }
 0xaef   : > { %v5402_v7 = vadd.f32 %v5394_v26, %v5378_v42  ;;  %v5403_v29 = vadd.f32 %v5395_v2, %v5379_v1 }
 0xaf2   : > { %v5373_v51 = vpop.permute.xlu0 %5372  ;;  %5409 = sbr.rel (%p5858_p11) target bundleno = 2814 (0xafe), region = 80 }
 0xaf3   : > { %v5374_v43 = vsel %vm2156_vm0, %v5371_v41, %v5373_v51  ;;  %v5377_v18 = vsel %vm2156_vm0, %v5373_v51, %v5367_v10 }
 0xaf4   : > { %v5380_v6 = vadd.f32 %v5374_v43, %v5104_v45  ;;  %v5381_v9 = vadd.f32 %v5377_v18, %v5105_v3 }
 0xaf6   : > { %v5404_v4 = vadd.f32 %v5396_v28, %v5380_v6  ;;  %v5405_v8 = vadd.f32 %v5397_v0, %v5381_v9 }
 0xaf7   : > { %v5410_v49 = vmax.f32 %v5402_v7, 0.0  ;;  %v5411_v58 = vmax.f32 %v5403_v29, 0.0  ;;  %vm5420_vm13 = vcmask 1043456  }
 0xaf8   : > { %v5412_v14 = vmax.f32 %v5404_v4, 0.0  ;;  %v5413_v13 = vmax.f32 %v5405_v8, 0.0 }
 0xaf9   : > { %v5418_v56 = vrot.slane %v5411_v58, 4 }
 0xafa   : > { %v5419_v60 = vrot.slane %v5413_v13, 4 }
 0xafb   : > { %v5421_v46 = vsel %vm5420_vm13, %v5410_v49, %v5418_v56 }
 0xafc   : > { %5425 = vst [vmem:[%s6511_s4] sm:$0x77] %v5421_v46  ;;  %v5422_v35 = vsel %vm5420_vm13, %v5412_v14, %v5419_v60 }
 0xafd   : > { %5426 = vst [vmem:[%s6511_s4 + $0x8] sm:$0x77] %v5422_v35 }
 0xafe PF: > { %p5859_p12 = scmp.ne.s32.totalorder %s6256_s22, 1 }
 0xb00   : > { %5430 = sbr.rel (%p5859_p12) target bundleno = 2835 (0xb13), region = 84 }
 0xb05   : > { %6214 = vtanh.f32 %v5402_v7  ;;  %vm5441_vm14 = vcmask 1043456  }
 0xb06   : > { %6216 = vtanh.f32 %v5403_v29 }
 0xb07   : > { %6218 = vtanh.f32 %v5404_v4 }
 0xb08   : > { %6220 = vtanh.f32 %v5405_v8 }
 0xb0b   : > { %v6215_v17 = vpop.eup %6214 }
 0xb0c   : > { %v6217_v40 = vpop.eup %6216 }
 0xb0d   : > { %v6219_v37 = vpop.eup %6218  ;;  %v5439_v61 = vrot.slane %v6217_v40, 4 }
 0xb0e   : > { %v6221_v22 = vpop.eup %6220 }
 0xb0f   : > { %v5442_v20 = vsel %vm5441_vm14, %v6215_v17, %v5439_v61  ;;  %v5440_v23 = vrot.slane %v6221_v22, 4 }
 0xb10   : > { %5446 = vst [vmem:[%s6511_s4] sm:$0x77] %v5442_v20 }
 0xb11   : > { %v5443_v63 = vsel %vm5441_vm14, %v6219_v37, %v5440_v23 }
 0xb12   : > { %5447 = vst [vmem:[%s6511_s4 + $0x8] sm:$0x77] %v5443_v63 }
 0xb13 PF: > { %s10141_s22 = sld [smem:[#allocation7_spill]] }
 0xb14   : > { %s10142_s21 = sld [smem:[#allocation4_spill]] }
 0xb15   : > { %s10144_s23 = sld [smem:[#allocation6_spill]] }
 0xb16   : > { %s10145_s24 = sld [smem:[#allocation8_spill]] }
 0xb17   : > { %s10146_s25 = sld [smem:[#allocation9_spill]] }
 0xb18   : > { %s10147_s26 = sld [smem:[#allocation10_spill]] }
 0xb19   : > { %s22_s27 = sadd.s32 1, %s10141_s22   ;;  %s10143_s22 = sld [smem:[#allocation5_spill]] }
 0xb1a   : > { %p19_p13 = scmp.ge.s32.totalorder %s22_s27, 14  }
 0xb1c   :  { %21 = sbr.rel (!%p19_p13) target bundleno = 10 (0xa), region = 142 }

</bundles_post_ra>
